<compile_context>
chip_gen: v6e
topology: v6e:2x2x1
jax: 0.10.0
libtpu: 0.0.40
codegen_flags: <defaults>
</compile_context>

<pallas_src>
import math

import jax
import jax.numpy as jnp
from jax.experimental import pallas as pl
from jax.experimental.pallas import tpu as pltpu


def _round_up(x, m):
    return ((x + m - 1) // m) * m


def _choose_tb(bsz, max_tb=128, min_tiles=2):
    """Node-tile size: multiple of 8, capped, >= min_tiles grid steps when batch allows."""
    bsz = max(int(bsz), 1)
    if min_tiles > 1 and bsz >= 8 * min_tiles:
        tb = _round_up((bsz + min_tiles - 1) // min_tiles, 8)
    else:
        tb = _round_up(bsz, 8)
    return min(tb, max_tb)


def _pad_ids(ids, tb):
    bsz = int(ids.shape[0])
    bpad = _round_up(bsz, tb)
    ids = ids.astype(jnp.int32)
    if bpad != bsz:
        # Pad ids are 0 -> they gather row 0 of the table; output rows are sliced off.
        ids = jnp.pad(ids, (0, bpad - bsz))
    return ids, bsz, bpad


# --------------------------- in-kernel DMA row gather -----------------------------

def _issue_row_gather(ids_ref, base, src_hbm, dst_ref, dst_base, sem, rows):
    """Start one DMA per row: src_hbm[ids_ref[base+r]] -> dst_ref[dst_base+r].

    Fully unrolled so the descriptor stream is visible to the scheduler and the DMA
    engine stays saturated. All copies share `sem` (equal sizes -> drain per row).
    """
    for r in range(rows):
        idx = ids_ref[base + r]
        pltpu.make_async_copy(src_hbm.at[pl.ds(idx, 1), :],
                              dst_ref.at[pl.ds(dst_base + r, 1), :],
                              sem).start()


def _wait_row_gather(src_hbm, dst_ref, dst_base, sem, rows):
    """Drain `rows` equal-sized row copies from the shared semaphore (no SMEM re-reads)."""
    for r in range(rows):
        pltpu.make_async_copy(src_hbm.at[pl.ds(0, 1), :],
                              dst_ref.at[pl.ds(dst_base + r, 1), :],
                              sem).wait()


# ------------------------------ Pallas kernels -------------------------------

def _gather_project_kernel(ids_ref, feat_hbm, w_ref, b_ref, o_ref, buf, sems):
    """Featured ntype: out = feat[ids] @ W + b, gather fused and double-buffered."""
    i = pl.program_id(0)
    n = pl.num_programs(0)
    tb = o_ref.shape[0]
    slot = i & 1

    # Prime the pipeline: gather tile 0 into slot 0 on the first step.
    @pl.when(i == 0)
    def _prime():
        _issue_row_gather(ids_ref, 0, feat_hbm, buf, 0, sems.at[0], tb)

    # Cross-step double buffer: issue the NEXT tile's gathers *before* waiting on the
    # current slot so they overlap this step's drain, matmul and output writeback.
    @pl.when(i + 1 < n)
    def _issue_next():
        nxt = i + 1
        nslot = nxt & 1
        _issue_row_gather(ids_ref, nxt * tb, feat_hbm, buf, nslot * tb,
                          sems.at[nslot], tb)

    # Drain the current slot's gathers.
    _wait_row_gather(feat_hbm, buf, slot * tb, sems.at[slot], tb)

    off = pl.multiple_of(slot * tb, 8)
    x = buf[pl.ds(off, tb), :]                          # bf16 activations
    o_ref[...] = (jnp.dot(x, w_ref[...], preferred_element_type=jnp.float32)
                  + b_ref[...])


def _embed_lookup_kernel(ids_ref, table_hbm, o_ref, sem):
    """Featureless ntype: out = emb_table[ids]; rows DMA'd straight into the output block."""
    tb = o_ref.shape[0]
    base = pl.program_id(0) * tb
    _issue_row_gather(ids_ref, base, table_hbm, o_ref, 0, sem.at[0], tb)
    _wait_row_gather(table_hbm, o_ref, 0, sem.at[0], tb)


# ------------------------------ kernel wrappers -------------------------------

def gather_project(feat, ids, w, b, *, max_tb=128):
    """feat[ids] @ w + b with the gather done in-kernel via per-row HBM DMAs."""
    if feat.dtype != jnp.bfloat16:
        feat = feat.astype(jnp.bfloat16)          # prefer storing the table bf16 at init
    tb = _choose_tb(ids.shape[0], max_tb=max_tb, min_tiles=2)
    ids_p, bsz, bpad = _pad_ids(ids, tb)
    din, e = w.shape
    w16 = w.astype(jnp.bfloat16)
    b2 = b.reshape(1, e).astype(jnp.float32)
    out = pl.pallas_call(
        _gather_project_kernel,
        out_shape=jax.ShapeDtypeStruct((bpad, e), jnp.float32),
        grid_spec=pltpu.PrefetchScalarGridSpec(
            num_scalar_prefetch=1,
            grid=(bpad // tb,),
            in_specs=[pl.BlockSpec(memory_space=pl.ANY),              # feature table stays in HBM
                      pl.BlockSpec((din, e), lambda i, ids: (0, 0)),  # weight: VMEM resident
                      pl.BlockSpec((1, e), lambda i, ids: (0, 0))],   # bias:   VMEM resident
            out_specs=pl.BlockSpec((tb, e), lambda i, ids: (i, 0)),
            scratch_shapes=[pltpu.VMEM((2 * tb, din), jnp.bfloat16),  # gather double buffer
                            pltpu.SemaphoreType.DMA((2,))]),          # one DMA sem per slot
        # The gather double-buffer carries state across grid steps, so the node axis
        # must run sequentially (no megacore split of this axis).
        compiler_params=pltpu.CompilerParams(
            dimension_semantics=("arbitrary",)),
    )(ids_p, feat, w16, b2)
    return out[:bsz]


def embed_lookup(table, ids, *, max_tb=128):
    """table[ids] (nn.Embedding forward), gathered in-kernel straight into the output."""
    tb = _choose_tb(ids.shape[0], max_tb=max_tb, min_tiles=2)
    ids_p, bsz, bpad = _pad_ids(ids, tb)
    _, e = table.shape
    out = pl.pallas_call(
        _embed_lookup_kernel,
        out_shape=jax.ShapeDtypeStruct((bpad, e), table.dtype),
        grid_spec=pltpu.PrefetchScalarGridSpec(
            num_scalar_prefetch=1,
            grid=(bpad // tb,),
            in_specs=[pl.BlockSpec(memory_space=pl.ANY)],             # embedding table in HBM
            out_specs=pl.BlockSpec((tb, e), lambda i, ids: (i, 0)),
            scratch_shapes=[pltpu.SemaphoreType.DMA((1,))]),
        compiler_params=pltpu.CompilerParams(
            dimension_semantics=("parallel",)),                       # no cross-step carry
    )(ids_p, table)
    return out[:bsz]


# ------------------------------- model glue -----------------------------------

def init_params(key, embed_size, feat_dims, num_nodes, ntypes_w_feat):
    params = {"feat": {}, "proj_w": {}, "proj_b": {}, "emb": {}}
    for ntype in sorted(num_nodes):
        key, k1, k2, k3 = jax.random.split(key, 4)
        if ntype in ntypes_w_feat:
            din = feat_dims[ntype]
            # Feature table stored bf16 in HBM: halves per-row gather DMA bytes; the
            # MXU operands are bf16 anyway (f32 accumulation).
            params["feat"][ntype] = jax.random.normal(
                k1, (num_nodes[ntype], din), jnp.float32).astype(jnp.bfloat16)
            xav = math.sqrt(6.0 / (din + embed_size))       # xavier_uniform_ on Linear weight
            params["proj_w"][ntype] = jax.random.uniform(
                k2, (din, embed_size), jnp.float32, -xav, xav)
            bound = 1.0 / math.sqrt(din)                     # default nn.Linear bias init
            params["proj_b"][ntype] = jax.random.uniform(
                k3, (embed_size,), jnp.float32, -bound, bound)
        else:
            # nn.Embedding(num_nodes, embed_size) with uniform_(-1, 1) init
            params["emb"][ntype] = jax.random.uniform(
                k1, (num_nodes[ntype], embed_size), jnp.float32, -1.0, 1.0)
    return params


def dist_embed_forward(params, node_ids, ntypes_w_feat, *, max_tb=128):
    embeds = {}
    for ntype, ids in node_ids.items():
        if ntype in ntypes_w_feat:
            embeds[ntype] = gather_project(params["feat"][ntype], ids,
                                           params["proj_w"][ntype],
                                           params["proj_b"][ntype], max_tb=max_tb)
        else:
            embeds[ntype] = embed_lookup(params["emb"][ntype], ids, max_tb=max_tb)
    return embeds


# Pure-JAX reference (no Pallas) for the correctness check.
def dist_embed_reference(params, node_ids, ntypes_w_feat):
    embeds = {}
    for ntype, ids in node_ids.items():
        if ntype in ntypes_w_feat:
            feat = params["feat"][ntype][ids].astype(jnp.float32)
            embeds[ntype] = feat @ params["proj_w"][ntype] + params["proj_b"][ntype]
        else:
            embeds[ntype] = params["emb"][ntype][ids]
    return embeds


if __name__ == "__main__":
    embed_size = 128
    ntypes_w_feat = {"paper"}
    num_nodes = {"paper": 300, "author": 200, "institution": 64}
    feat_dims = {"paper": 256}

    key = jax.random.PRNGKey(0)
    kp, ki = jax.random.split(key)
    params = init_params(kp, embed_size, feat_dims, num_nodes, ntypes_w_feat)

    batch = {"paper": 90, "author": 70, "institution": 40}
    node_ids = {}
    for j, ntype in enumerate(sorted(batch)):
        node_ids[ntype] = jax.random.randint(
            jax.random.fold_in(ki, j), (batch[ntype],), 0, num_nodes[ntype],
            dtype=jnp.int32)

    embeds = dist_embed_forward(params, node_ids, ntypes_w_feat, max_tb=128)
    for v in embeds.values():
        jax.block_until_ready(v)

    ref = dist_embed_reference(params, node_ids, ntypes_w_feat)
    for ntype in node_ids:
        assert embeds[ntype].shape == (batch[ntype], embed_size)
        err = float(jnp.max(jnp.abs(embeds[ntype].astype(jnp.float32) - ref[ntype])))
        # Featured path uses bf16 weight/feature operands (f32 accumulate) vs f32 ref.
        tol = 1e-1 if ntype in ntypes_w_feat else 1e-6
        assert err < tol, f"mismatch for {ntype}: max abs err {err}"

    print("KERNEL_OK")
</pallas_src>

<mosaic_0001>
module attributes {stable_mosaic.version = 11 : i64} {
  func.func @_embed_lookup_kernel(%arg0: i32, %arg1: memref<80xi32, #tpu.memory_space<smem>>, %arg2: memref<200x128xf32, #tpu.memory_space<any>>, %arg3: memref<40x128xf32, #tpu.memory_space<vmem>>, %arg4: memref<1x!tpu.dma_semaphore, #tpu.memory_space<semaphore_mem>>) attributes {dimension_semantics = [#tpu.dimension_semantics<parallel>], iteration_bounds = array<i64: 2>, scalar_prefetch = 1 : i64, scratch_operands = 1 : i64, tpu.core_type = #tpu.core_type<tc>, window_params = [{}, {transform_indices = @transform_1, window_bounds = array<i64: 40, 128>}]} {
    %c40_i32 = arith.constant 40 : i32
    %0 = arith.muli %arg0, %c40_i32 : i32
    %c0_i32 = arith.constant 0 : i32
    %1 = arith.addi %0, %c0_i32 : i32
    %2 = arith.index_cast %1 : i32 to index
    %3 = memref.load %arg1[%2] : memref<80xi32, #tpu.memory_space<smem>>
    %c0_i32_0 = arith.constant 0 : i32
    %c0_i32_1 = arith.constant 0 : i32
    %4 = tpu.memref_slice %arg2[%3, %c0_i32_1] : memref<200x128xf32, #tpu.memory_space<any>> -> memref<1x128xf32, #tpu.memory_space<any>>
    %c0_i32_2 = arith.constant 0 : i32
    %c0_i32_3 = arith.constant 0 : i32
    %5 = tpu.memref_slice %arg3[%c0_i32_2, %c0_i32_3] : memref<40x128xf32, #tpu.memory_space<vmem>> -> memref<1x128xf32, #tpu.memory_space<vmem>>
    %6 = tpu.memref_slice %arg4[%c0_i32_0] : memref<1x!tpu.dma_semaphore, #tpu.memory_space<semaphore_mem>> -> memref<1x!tpu.dma_semaphore, #tpu.memory_space<semaphore_mem>>
    %7 = tpu.memref_squeeze %6 : memref<1x!tpu.dma_semaphore, #tpu.memory_space<semaphore_mem>> -> memref<!tpu.dma_semaphore, #tpu.memory_space<semaphore_mem>>
    tpu.enqueue_dma source(%4 : memref<1x128xf32, #tpu.memory_space<any>>) target(%5 : memref<1x128xf32, #tpu.memory_space<vmem>>) target_semaphore(%7 : memref<!tpu.dma_semaphore, #tpu.memory_space<semaphore_mem>>)
    %c1_i32 = arith.constant 1 : i32
    %8 = arith.addi %0, %c1_i32 : i32
    %9 = arith.index_cast %8 : i32 to index
    %10 = memref.load %arg1[%9] : memref<80xi32, #tpu.memory_space<smem>>
    %c0_i32_4 = arith.constant 0 : i32
    %c0_i32_5 = arith.constant 0 : i32
    %11 = tpu.memref_slice %arg2[%10, %c0_i32_5] : memref<200x128xf32, #tpu.memory_space<any>> -> memref<1x128xf32, #tpu.memory_space<any>>
    %c1_i32_6 = arith.constant 1 : i32
    %c0_i32_7 = arith.constant 0 : i32
    %12 = tpu.memref_slice %arg3[%c1_i32_6, %c0_i32_7] : memref<40x128xf32, #tpu.memory_space<vmem>> -> memref<1x128xf32, #tpu.memory_space<vmem>>
    %13 = tpu.memref_slice %arg4[%c0_i32_4] : memref<1x!tpu.dma_semaphore, #tpu.memory_space<semaphore_mem>> -> memref<1x!tpu.dma_semaphore, #tpu.memory_space<semaphore_mem>>
    %14 = tpu.memref_squeeze %13 : memref<1x!tpu.dma_semaphore, #tpu.memory_space<semaphore_mem>> -> memref<!tpu.dma_semaphore, #tpu.memory_space<semaphore_mem>>
    tpu.enqueue_dma source(%11 : memref<1x128xf32, #tpu.memory_space<any>>) target(%12 : memref<1x128xf32, #tpu.memory_space<vmem>>) target_semaphore(%14 : memref<!tpu.dma_semaphore, #tpu.memory_space<semaphore_mem>>)
    %c2_i32 = arith.constant 2 : i32
    %15 = arith.addi %0, %c2_i32 : i32
    %16 = arith.index_cast %15 : i32 to index
    %17 = memref.load %arg1[%16] : memref<80xi32, #tpu.memory_space<smem>>
    %c0_i32_8 = arith.constant 0 : i32
    %c0_i32_9 = arith.constant 0 : i32
    %18 = tpu.memref_slice %arg2[%17, %c0_i32_9] : memref<200x128xf32, #tpu.memory_space<any>> -> memref<1x128xf32, #tpu.memory_space<any>>
    %c2_i32_10 = arith.constant 2 : i32
    %c0_i32_11 = arith.constant 0 : i32
    %19 = tpu.memref_slice %arg3[%c2_i32_10, %c0_i32_11] : memref<40x128xf32, #tpu.memory_space<vmem>> -> memref<1x128xf32, #tpu.memory_space<vmem>>
    %20 = tpu.memref_slice %arg4[%c0_i32_8] : memref<1x!tpu.dma_semaphore, #tpu.memory_space<semaphore_mem>> -> memref<1x!tpu.dma_semaphore, #tpu.memory_space<semaphore_mem>>
    %21 = tpu.memref_squeeze %20 : memref<1x!tpu.dma_semaphore, #tpu.memory_space<semaphore_mem>> -> memref<!tpu.dma_semaphore, #tpu.memory_space<semaphore_mem>>
    tpu.enqueue_dma source(%18 : memref<1x128xf32, #tpu.memory_space<any>>) target(%19 : memref<1x128xf32, #tpu.memory_space<vmem>>) target_semaphore(%21 : memref<!tpu.dma_semaphore, #tpu.memory_space<semaphore_mem>>)
    %c3_i32 = arith.constant 3 : i32
    %22 = arith.addi %0, %c3_i32 : i32
    %23 = arith.index_cast %22 : i32 to index
    %24 = memref.load %arg1[%23] : memref<80xi32, #tpu.memory_space<smem>>
    %c0_i32_12 = arith.constant 0 : i32
    %c0_i32_13 = arith.constant 0 : i32
    %25 = tpu.memref_slice %arg2[%24, %c0_i32_13] : memref<200x128xf32, #tpu.memory_space<any>> -> memref<1x128xf32, #tpu.memory_space<any>>
    %c3_i32_14 = arith.constant 3 : i32
    %c0_i32_15 = arith.constant 0 : i32
    %26 = tpu.memref_slice %arg3[%c3_i32_14, %c0_i32_15] : memref<40x128xf32, #tpu.memory_space<vmem>> -> memref<1x128xf32, #tpu.memory_space<vmem>>
    %27 = tpu.memref_slice %arg4[%c0_i32_12] : memref<1x!tpu.dma_semaphore, #tpu.memory_space<semaphore_mem>> -> memref<1x!tpu.dma_semaphore, #tpu.memory_space<semaphore_mem>>
    %28 = tpu.memref_squeeze %27 : memref<1x!tpu.dma_semaphore, #tpu.memory_space<semaphore_mem>> -> memref<!tpu.dma_semaphore, #tpu.memory_space<semaphore_mem>>
    tpu.enqueue_dma source(%25 : memref<1x128xf32, #tpu.memory_space<any>>) target(%26 : memref<1x128xf32, #tpu.memory_space<vmem>>) target_semaphore(%28 : memref<!tpu.dma_semaphore, #tpu.memory_space<semaphore_mem>>)
    %c4_i32 = arith.constant 4 : i32
    %29 = arith.addi %0, %c4_i32 : i32
    %30 = arith.index_cast %29 : i32 to index
    %31 = memref.load %arg1[%30] : memref<80xi32, #tpu.memory_space<smem>>
    %c0_i32_16 = arith.constant 0 : i32
    %c0_i32_17 = arith.constant 0 : i32
    %32 = tpu.memref_slice %arg2[%31, %c0_i32_17] : memref<200x128xf32, #tpu.memory_space<any>> -> memref<1x128xf32, #tpu.memory_space<any>>
    %c4_i32_18 = arith.constant 4 : i32
    %c0_i32_19 = arith.constant 0 : i32
    %33 = tpu.memref_slice %arg3[%c4_i32_18, %c0_i32_19] : memref<40x128xf32, #tpu.memory_space<vmem>> -> memref<1x128xf32, #tpu.memory_space<vmem>>
    %34 = tpu.memref_slice %arg4[%c0_i32_16] : memref<1x!tpu.dma_semaphore, #tpu.memory_space<semaphore_mem>> -> memref<1x!tpu.dma_semaphore, #tpu.memory_space<semaphore_mem>>
    %35 = tpu.memref_squeeze %34 : memref<1x!tpu.dma_semaphore, #tpu.memory_space<semaphore_mem>> -> memref<!tpu.dma_semaphore, #tpu.memory_space<semaphore_mem>>
    tpu.enqueue_dma source(%32 : memref<1x128xf32, #tpu.memory_space<any>>) target(%33 : memref<1x128xf32, #tpu.memory_space<vmem>>) target_semaphore(%35 : memref<!tpu.dma_semaphore, #tpu.memory_space<semaphore_mem>>)
    %c5_i32 = arith.constant 5 : i32
    %36 = arith.addi %0, %c5_i32 : i32
    %37 = arith.index_cast %36 : i32 to index
    %38 = memref.load %arg1[%37] : memref<80xi32, #tpu.memory_space<smem>>
    %c0_i32_20 = arith.constant 0 : i32
    %c0_i32_21 = arith.constant 0 : i32
    %39 = tpu.memref_slice %arg2[%38, %c0_i32_21] : memref<200x128xf32, #tpu.memory_space<any>> -> memref<1x128xf32, #tpu.memory_space<any>>
    %c5_i32_22 = arith.constant 5 : i32
    %c0_i32_23 = arith.constant 0 : i32
    %40 = tpu.memref_slice %arg3[%c5_i32_22, %c0_i32_23] : memref<40x128xf32, #tpu.memory_space<vmem>> -> memref<1x128xf32, #tpu.memory_space<vmem>>
    %41 = tpu.memref_slice %arg4[%c0_i32_20] : memref<1x!tpu.dma_semaphore, #tpu.memory_space<semaphore_mem>> -> memref<1x!tpu.dma_semaphore, #tpu.memory_space<semaphore_mem>>
    %42 = tpu.memref_squeeze %41 : memref<1x!tpu.dma_semaphore, #tpu.memory_space<semaphore_mem>> -> memref<!tpu.dma_semaphore, #tpu.memory_space<semaphore_mem>>
    tpu.enqueue_dma source(%39 : memref<1x128xf32, #tpu.memory_space<any>>) target(%40 : memref<1x128xf32, #tpu.memory_space<vmem>>) target_semaphore(%42 : memref<!tpu.dma_semaphore, #tpu.memory_space<semaphore_mem>>)
    %c6_i32 = arith.constant 6 : i32
    %43 = arith.addi %0, %c6_i32 : i32
    %44 = arith.index_cast %43 : i32 to index
    %45 = memref.load %arg1[%44] : memref<80xi32, #tpu.memory_space<smem>>
    %c0_i32_24 = arith.constant 0 : i32
    %c0_i32_25 = arith.constant 0 : i32
    %46 = tpu.memref_slice %arg2[%45, %c0_i32_25] : memref<200x128xf32, #tpu.memory_space<any>> -> memref<1x128xf32, #tpu.memory_space<any>>
    %c6_i32_26 = arith.constant 6 : i32
    %c0_i32_27 = arith.constant 0 : i32
    %47 = tpu.memref_slice %arg3[%c6_i32_26, %c0_i32_27] : memref<40x128xf32, #tpu.memory_space<vmem>> -> memref<1x128xf32, #tpu.memory_space<vmem>>
    %48 = tpu.memref_slice %arg4[%c0_i32_24] : memref<1x!tpu.dma_semaphore, #tpu.memory_space<semaphore_mem>> -> memref<1x!tpu.dma_semaphore, #tpu.memory_space<semaphore_mem>>
    %49 = tpu.memref_squeeze %48 : memref<1x!tpu.dma_semaphore, #tpu.memory_space<semaphore_mem>> -> memref<!tpu.dma_semaphore, #tpu.memory_space<semaphore_mem>>
    tpu.enqueue_dma source(%46 : memref<1x128xf32, #tpu.memory_space<any>>) target(%47 : memref<1x128xf32, #tpu.memory_space<vmem>>) target_semaphore(%49 : memref<!tpu.dma_semaphore, #tpu.memory_space<semaphore_mem>>)
    %c7_i32 = arith.constant 7 : i32
    %50 = arith.addi %0, %c7_i32 : i32
    %51 = arith.index_cast %50 : i32 to index
    %52 = memref.load %arg1[%51] : memref<80xi32, #tpu.memory_space<smem>>
    %c0_i32_28 = arith.constant 0 : i32
    %c0_i32_29 = arith.constant 0 : i32
    %53 = tpu.memref_slice %arg2[%52, %c0_i32_29] : memref<200x128xf32, #tpu.memory_space<any>> -> memref<1x128xf32, #tpu.memory_space<any>>
    %c7_i32_30 = arith.constant 7 : i32
    %c0_i32_31 = arith.constant 0 : i32
    %54 = tpu.memref_slice %arg3[%c7_i32_30, %c0_i32_31] : memref<40x128xf32, #tpu.memory_space<vmem>> -> memref<1x128xf32, #tpu.memory_space<vmem>>
    %55 = tpu.memref_slice %arg4[%c0_i32_28] : memref<1x!tpu.dma_semaphore, #tpu.memory_space<semaphore_mem>> -> memref<1x!tpu.dma_semaphore, #tpu.memory_space<semaphore_mem>>
    %56 = tpu.memref_squeeze %55 : memref<1x!tpu.dma_semaphore, #tpu.memory_space<semaphore_mem>> -> memref<!tpu.dma_semaphore, #tpu.memory_space<semaphore_mem>>
    tpu.enqueue_dma source(%53 : memref<1x128xf32, #tpu.memory_space<any>>) target(%54 : memref<1x128xf32, #tpu.memory_space<vmem>>) target_semaphore(%56 : memref<!tpu.dma_semaphore, #tpu.memory_space<semaphore_mem>>)
    %c8_i32 = arith.constant 8 : i32
    %57 = arith.addi %0, %c8_i32 : i32
    %58 = arith.index_cast %57 : i32 to index
    %59 = memref.load %arg1[%58] : memref<80xi32, #tpu.memory_space<smem>>
    %c0_i32_32 = arith.constant 0 : i32
    %c0_i32_33 = arith.constant 0 : i32
    %60 = tpu.memref_slice %arg2[%59, %c0_i32_33] : memref<200x128xf32, #tpu.memory_space<any>> -> memref<1x128xf32, #tpu.memory_space<any>>
    %c8_i32_34 = arith.constant 8 : i32
    %c0_i32_35 = arith.constant 0 : i32
    %61 = tpu.memref_slice %arg3[%c8_i32_34, %c0_i32_35] : memref<40x128xf32, #tpu.memory_space<vmem>> -> memref<1x128xf32, #tpu.memory_space<vmem>>
    %62 = tpu.memref_slice %arg4[%c0_i32_32] : memref<1x!tpu.dma_semaphore, #tpu.memory_space<semaphore_mem>> -> memref<1x!tpu.dma_semaphore, #tpu.memory_space<semaphore_mem>>
    %63 = tpu.memref_squeeze %62 : memref<1x!tpu.dma_semaphore, #tpu.memory_space<semaphore_mem>> -> memref<!tpu.dma_semaphore, #tpu.memory_space<semaphore_mem>>
    tpu.enqueue_dma source(%60 : memref<1x128xf32, #tpu.memory_space<any>>) target(%61 : memref<1x128xf32, #tpu.memory_space<vmem>>) target_semaphore(%63 : memref<!tpu.dma_semaphore, #tpu.memory_space<semaphore_mem>>)
    %c9_i32 = arith.constant 9 : i32
    %64 = arith.addi %0, %c9_i32 : i32
    %65 = arith.index_cast %64 : i32 to index
    %66 = memref.load %arg1[%65] : memref<80xi32, #tpu.memory_space<smem>>
    %c0_i32_36 = arith.constant 0 : i32
    %c0_i32_37 = arith.constant 0 : i32
    %67 = tpu.memref_slice %arg2[%66, %c0_i32_37] : memref<200x128xf32, #tpu.memory_space<any>> -> memref<1x128xf32, #tpu.memory_space<any>>
    %c9_i32_38 = arith.constant 9 : i32
    %c0_i32_39 = arith.constant 0 : i32
    %68 = tpu.memref_slice %arg3[%c9_i32_38, %c0_i32_39] : memref<40x128xf32, #tpu.memory_space<vmem>> -> memref<1x128xf32, #tpu.memory_space<vmem>>
    %69 = tpu.memref_slice %arg4[%c0_i32_36] : memref<1x!tpu.dma_semaphore, #tpu.memory_space<semaphore_mem>> -> memref<1x!tpu.dma_semaphore, #tpu.memory_space<semaphore_mem>>
    %70 = tpu.memref_squeeze %69 : memref<1x!tpu.dma_semaphore, #tpu.memory_space<semaphore_mem>> -> memref<!tpu.dma_semaphore, #tpu.memory_space<semaphore_mem>>
    tpu.enqueue_dma source(%67 : memref<1x128xf32, #tpu.memory_space<any>>) target(%68 : memref<1x128xf32, #tpu.memory_space<vmem>>) target_semaphore(%70 : memref<!tpu.dma_semaphore, #tpu.memory_space<semaphore_mem>>)
    %c10_i32 = arith.constant 10 : i32
    %71 = arith.addi %0, %c10_i32 : i32
    %72 = arith.index_cast %71 : i32 to index
    %73 = memref.load %arg1[%72] : memref<80xi32, #tpu.memory_space<smem>>
    %c0_i32_40 = arith.constant 0 : i32
    %c0_i32_41 = arith.constant 0 : i32
    %74 = tpu.memref_slice %arg2[%73, %c0_i32_41] : memref<200x128xf32, #tpu.memory_space<any>> -> memref<1x128xf32, #tpu.memory_space<any>>
    %c10_i32_42 = arith.constant 10 : i32
    %c0_i32_43 = arith.constant 0 : i32
    %75 = tpu.memref_slice %arg3[%c10_i32_42, %c0_i32_43] : memref<40x128xf32, #tpu.memory_space<vmem>> -> memref<1x128xf32, #tpu.memory_space<vmem>>
    %76 = tpu.memref_slice %arg4[%c0_i32_40] : memref<1x!tpu.dma_semaphore, #tpu.memory_space<semaphore_mem>> -> memref<1x!tpu.dma_semaphore, #tpu.memory_space<semaphore_mem>>
    %77 = tpu.memref_squeeze %76 : memref<1x!tpu.dma_semaphore, #tpu.memory_space<semaphore_mem>> -> memref<!tpu.dma_semaphore, #tpu.memory_space<semaphore_mem>>
    tpu.enqueue_dma source(%74 : memref<1x128xf32, #tpu.memory_space<any>>) target(%75 : memref<1x128xf32, #tpu.memory_space<vmem>>) target_semaphore(%77 : memref<!tpu.dma_semaphore, #tpu.memory_space<semaphore_mem>>)
    %c11_i32 = arith.constant 11 : i32
    %78 = arith.addi %0, %c11_i32 : i32
    %79 = arith.index_cast %78 : i32 to index
    %80 = memref.load %arg1[%79] : memref<80xi32, #tpu.memory_space<smem>>
    %c0_i32_44 = arith.constant 0 : i32
    %c0_i32_45 = arith.constant 0 : i32
    %81 = tpu.memref_slice %arg2[%80, %c0_i32_45] : memref<200x128xf32, #tpu.memory_space<any>> -> memref<1x128xf32, #tpu.memory_space<any>>
    %c11_i32_46 = arith.constant 11 : i32
    %c0_i32_47 = arith.constant 0 : i32
    %82 = tpu.memref_slice %arg3[%c11_i32_46, %c0_i32_47] : memref<40x128xf32, #tpu.memory_space<vmem>> -> memref<1x128xf32, #tpu.memory_space<vmem>>
    %83 = tpu.memref_slice %arg4[%c0_i32_44] : memref<1x!tpu.dma_semaphore, #tpu.memory_space<semaphore_mem>> -> memref<1x!tpu.dma_semaphore, #tpu.memory_space<semaphore_mem>>
    %84 = tpu.memref_squeeze %83 : memref<1x!tpu.dma_semaphore, #tpu.memory_space<semaphore_mem>> -> memref<!tpu.dma_semaphore, #tpu.memory_space<semaphore_mem>>
    tpu.enqueue_dma source(%81 : memref<1x128xf32, #tpu.memory_space<any>>) target(%82 : memref<1x128xf32, #tpu.memory_space<vmem>>) target_semaphore(%84 : memref<!tpu.dma_semaphore, #tpu.memory_space<semaphore_mem>>)
    %c12_i32 = arith.constant 12 : i32
    %85 = arith.addi %0, %c12_i32 : i32
    %86 = arith.index_cast %85 : i32 to index
    %87 = memref.load %arg1[%86] : memref<80xi32, #tpu.memory_space<smem>>
    %c0_i32_48 = arith.constant 0 : i32
    %c0_i32_49 = arith.constant 0 : i32
    %88 = tpu.memref_slice %arg2[%87, %c0_i32_49] : memref<200x128xf32, #tpu.memory_space<any>> -> memref<1x128xf32, #tpu.memory_space<any>>
    %c12_i32_50 = arith.constant 12 : i32
    %c0_i32_51 = arith.constant 0 : i32
    %89 = tpu.memref_slice %arg3[%c12_i32_50, %c0_i32_51] : memref<40x128xf32, #tpu.memory_space<vmem>> -> memref<1x128xf32, #tpu.memory_space<vmem>>
    %90 = tpu.memref_slice %arg4[%c0_i32_48] : memref<1x!tpu.dma_semaphore, #tpu.memory_space<semaphore_mem>> -> memref<1x!tpu.dma_semaphore, #tpu.memory_space<semaphore_mem>>
    %91 = tpu.memref_squeeze %90 : memref<1x!tpu.dma_semaphore, #tpu.memory_space<semaphore_mem>> -> memref<!tpu.dma_semaphore, #tpu.memory_space<semaphore_mem>>
    tpu.enqueue_dma source(%88 : memref<1x128xf32, #tpu.memory_space<any>>) target(%89 : memref<1x128xf32, #tpu.memory_space<vmem>>) target_semaphore(%91 : memref<!tpu.dma_semaphore, #tpu.memory_space<semaphore_mem>>)
    %c13_i32 = arith.constant 13 : i32
    %92 = arith.addi %0, %c13_i32 : i32
    %93 = arith.index_cast %92 : i32 to index
    %94 = memref.load %arg1[%93] : memref<80xi32, #tpu.memory_space<smem>>
    %c0_i32_52 = arith.constant 0 : i32
    %c0_i32_53 = arith.constant 0 : i32
    %95 = tpu.memref_slice %arg2[%94, %c0_i32_53] : memref<200x128xf32, #tpu.memory_space<any>> -> memref<1x128xf32, #tpu.memory_space<any>>
    %c13_i32_54 = arith.constant 13 : i32
    %c0_i32_55 = arith.constant 0 : i32
    %96 = tpu.memref_slice %arg3[%c13_i32_54, %c0_i32_55] : memref<40x128xf32, #tpu.memory_space<vmem>> -> memref<1x128xf32, #tpu.memory_space<vmem>>
    %97 = tpu.memref_slice %arg4[%c0_i32_52] : memref<1x!tpu.dma_semaphore, #tpu.memory_space<semaphore_mem>> -> memref<1x!tpu.dma_semaphore, #tpu.memory_space<semaphore_mem>>
    %98 = tpu.memref_squeeze %97 : memref<1x!tpu.dma_semaphore, #tpu.memory_space<semaphore_mem>> -> memref<!tpu.dma_semaphore, #tpu.memory_space<semaphore_mem>>
    tpu.enqueue_dma source(%95 : memref<1x128xf32, #tpu.memory_space<any>>) target(%96 : memref<1x128xf32, #tpu.memory_space<vmem>>) target_semaphore(%98 : memref<!tpu.dma_semaphore, #tpu.memory_space<semaphore_mem>>)
    %c14_i32 = arith.constant 14 : i32
    %99 = arith.addi %0, %c14_i32 : i32
    %100 = arith.index_cast %99 : i32 to index
    %101 = memref.load %arg1[%100] : memref<80xi32, #tpu.memory_space<smem>>
    %c0_i32_56 = arith.constant 0 : i32
    %c0_i32_57 = arith.constant 0 : i32
    %102 = tpu.memref_slice %arg2[%101, %c0_i32_57] : memref<200x128xf32, #tpu.memory_space<any>> -> memref<1x128xf32, #tpu.memory_space<any>>
    %c14_i32_58 = arith.constant 14 : i32
    %c0_i32_59 = arith.constant 0 : i32
    %103 = tpu.memref_slice %arg3[%c14_i32_58, %c0_i32_59] : memref<40x128xf32, #tpu.memory_space<vmem>> -> memref<1x128xf32, #tpu.memory_space<vmem>>
    %104 = tpu.memref_slice %arg4[%c0_i32_56] : memref<1x!tpu.dma_semaphore, #tpu.memory_space<semaphore_mem>> -> memref<1x!tpu.dma_semaphore, #tpu.memory_space<semaphore_mem>>
    %105 = tpu.memref_squeeze %104 : memref<1x!tpu.dma_semaphore, #tpu.memory_space<semaphore_mem>> -> memref<!tpu.dma_semaphore, #tpu.memory_space<semaphore_mem>>
    tpu.enqueue_dma source(%102 : memref<1x128xf32, #tpu.memory_space<any>>) target(%103 : memref<1x128xf32, #tpu.memory_space<vmem>>) target_semaphore(%105 : memref<!tpu.dma_semaphore, #tpu.memory_space<semaphore_mem>>)
    %c15_i32 = arith.constant 15 : i32
    %106 = arith.addi %0, %c15_i32 : i32
    %107 = arith.index_cast %106 : i32 to index
    %108 = memref.load %arg1[%107] : memref<80xi32, #tpu.memory_space<smem>>
    %c0_i32_60 = arith.constant 0 : i32
    %c0_i32_61 = arith.constant 0 : i32
    %109 = tpu.memref_slice %arg2[%108, %c0_i32_61] : memref<200x128xf32, #tpu.memory_space<any>> -> memref<1x128xf32, #tpu.memory_space<any>>
    %c15_i32_62 = arith.constant 15 : i32
    %c0_i32_63 = arith.constant 0 : i32
    %110 = tpu.memref_slice %arg3[%c15_i32_62, %c0_i32_63] : memref<40x128xf32, #tpu.memory_space<vmem>> -> memref<1x128xf32, #tpu.memory_space<vmem>>
    %111 = tpu.memref_slice %arg4[%c0_i32_60] : memref<1x!tpu.dma_semaphore, #tpu.memory_space<semaphore_mem>> -> memref<1x!tpu.dma_semaphore, #tpu.memory_space<semaphore_mem>>
    %112 = tpu.memref_squeeze %111 : memref<1x!tpu.dma_semaphore, #tpu.memory_space<semaphore_mem>> -> memref<!tpu.dma_semaphore, #tpu.memory_space<semaphore_mem>>
    tpu.enqueue_dma source(%109 : memref<1x128xf32, #tpu.memory_space<any>>) target(%110 : memref<1x128xf32, #tpu.memory_space<vmem>>) target_semaphore(%112 : memref<!tpu.dma_semaphore, #tpu.memory_space<semaphore_mem>>)
    %c16_i32 = arith.constant 16 : i32
    %113 = arith.addi %0, %c16_i32 : i32
    %114 = arith.index_cast %113 : i32 to index
    %115 = memref.load %arg1[%114] : memref<80xi32, #tpu.memory_space<smem>>
    %c0_i32_64 = arith.constant 0 : i32
    %c0_i32_65 = arith.constant 0 : i32
    %116 = tpu.memref_slice %arg2[%115, %c0_i32_65] : memref<200x128xf32, #tpu.memory_space<any>> -> memref<1x128xf32, #tpu.memory_space<any>>
    %c16_i32_66 = arith.constant 16 : i32
    %c0_i32_67 = arith.constant 0 : i32
    %117 = tpu.memref_slice %arg3[%c16_i32_66, %c0_i32_67] : memref<40x128xf32, #tpu.memory_space<vmem>> -> memref<1x128xf32, #tpu.memory_space<vmem>>
    %118 = tpu.memref_slice %arg4[%c0_i32_64] : memref<1x!tpu.dma_semaphore, #tpu.memory_space<semaphore_mem>> -> memref<1x!tpu.dma_semaphore, #tpu.memory_space<semaphore_mem>>
    %119 = tpu.memref_squeeze %118 : memref<1x!tpu.dma_semaphore, #tpu.memory_space<semaphore_mem>> -> memref<!tpu.dma_semaphore, #tpu.memory_space<semaphore_mem>>
    tpu.enqueue_dma source(%116 : memref<1x128xf32, #tpu.memory_space<any>>) target(%117 : memref<1x128xf32, #tpu.memory_space<vmem>>) target_semaphore(%119 : memref<!tpu.dma_semaphore, #tpu.memory_space<semaphore_mem>>)
    %c17_i32 = arith.constant 17 : i32
    %120 = arith.addi %0, %c17_i32 : i32
    %121 = arith.index_cast %120 : i32 to index
    %122 = memref.load %arg1[%121] : memref<80xi32, #tpu.memory_space<smem>>
    %c0_i32_68 = arith.constant 0 : i32
    %c0_i32_69 = arith.constant 0 : i32
    %123 = tpu.memref_slice %arg2[%122, %c0_i32_69] : memref<200x128xf32, #tpu.memory_space<any>> -> memref<1x128xf32, #tpu.memory_space<any>>
    %c17_i32_70 = arith.constant 17 : i32
    %c0_i32_71 = arith.constant 0 : i32
    %124 = tpu.memref_slice %arg3[%c17_i32_70, %c0_i32_71] : memref<40x128xf32, #tpu.memory_space<vmem>> -> memref<1x128xf32, #tpu.memory_space<vmem>>
    %125 = tpu.memref_slice %arg4[%c0_i32_68] : memref<1x!tpu.dma_semaphore, #tpu.memory_space<semaphore_mem>> -> memref<1x!tpu.dma_semaphore, #tpu.memory_space<semaphore_mem>>
    %126 = tpu.memref_squeeze %125 : memref<1x!tpu.dma_semaphore, #tpu.memory_space<semaphore_mem>> -> memref<!tpu.dma_semaphore, #tpu.memory_space<semaphore_mem>>
    tpu.enqueue_dma source(%123 : memref<1x128xf32, #tpu.memory_space<any>>) target(%124 : memref<1x128xf32, #tpu.memory_space<vmem>>) target_semaphore(%126 : memref<!tpu.dma_semaphore, #tpu.memory_space<semaphore_mem>>)
    %c18_i32 = arith.constant 18 : i32
    %127 = arith.addi %0, %c18_i32 : i32
    %128 = arith.index_cast %127 : i32 to index
    %129 = memref.load %arg1[%128] : memref<80xi32, #tpu.memory_space<smem>>
    %c0_i32_72 = arith.constant 0 : i32
    %c0_i32_73 = arith.constant 0 : i32
    %130 = tpu.memref_slice %arg2[%129, %c0_i32_73] : memref<200x128xf32, #tpu.memory_space<any>> -> memref<1x128xf32, #tpu.memory_space<any>>
    %c18_i32_74 = arith.constant 18 : i32
    %c0_i32_75 = arith.constant 0 : i32
    %131 = tpu.memref_slice %arg3[%c18_i32_74, %c0_i32_75] : memref<40x128xf32, #tpu.memory_space<vmem>> -> memref<1x128xf32, #tpu.memory_space<vmem>>
    %132 = tpu.memref_slice %arg4[%c0_i32_72] : memref<1x!tpu.dma_semaphore, #tpu.memory_space<semaphore_mem>> -> memref<1x!tpu.dma_semaphore, #tpu.memory_space<semaphore_mem>>
    %133 = tpu.memref_squeeze %132 : memref<1x!tpu.dma_semaphore, #tpu.memory_space<semaphore_mem>> -> memref<!tpu.dma_semaphore, #tpu.memory_space<semaphore_mem>>
    tpu.enqueue_dma source(%130 : memref<1x128xf32, #tpu.memory_space<any>>) target(%131 : memref<1x128xf32, #tpu.memory_space<vmem>>) target_semaphore(%133 : memref<!tpu.dma_semaphore, #tpu.memory_space<semaphore_mem>>)
    %c19_i32 = arith.constant 19 : i32
    %134 = arith.addi %0, %c19_i32 : i32
    %135 = arith.index_cast %134 : i32 to index
    %136 = memref.load %arg1[%135] : memref<80xi32, #tpu.memory_space<smem>>
    %c0_i32_76 = arith.constant 0 : i32
    %c0_i32_77 = arith.constant 0 : i32
    %137 = tpu.memref_slice %arg2[%136, %c0_i32_77] : memref<200x128xf32, #tpu.memory_space<any>> -> memref<1x128xf32, #tpu.memory_space<any>>
    %c19_i32_78 = arith.constant 19 : i32
    %c0_i32_79 = arith.constant 0 : i32
    %138 = tpu.memref_slice %arg3[%c19_i32_78, %c0_i32_79] : memref<40x128xf32, #tpu.memory_space<vmem>> -> memref<1x128xf32, #tpu.memory_space<vmem>>
    %139 = tpu.memref_slice %arg4[%c0_i32_76] : memref<1x!tpu.dma_semaphore, #tpu.memory_space<semaphore_mem>> -> memref<1x!tpu.dma_semaphore, #tpu.memory_space<semaphore_mem>>
    %140 = tpu.memref_squeeze %139 : memref<1x!tpu.dma_semaphore, #tpu.memory_space<semaphore_mem>> -> memref<!tpu.dma_semaphore, #tpu.memory_space<semaphore_mem>>
    tpu.enqueue_dma source(%137 : memref<1x128xf32, #tpu.memory_space<any>>) target(%138 : memref<1x128xf32, #tpu.memory_space<vmem>>) target_semaphore(%140 : memref<!tpu.dma_semaphore, #tpu.memory_space<semaphore_mem>>)
    %c20_i32 = arith.constant 20 : i32
    %141 = arith.addi %0, %c20_i32 : i32
    %142 = arith.index_cast %141 : i32 to index
    %143 = memref.load %arg1[%142] : memref<80xi32, #tpu.memory_space<smem>>
    %c0_i32_80 = arith.constant 0 : i32
    %c0_i32_81 = arith.constant 0 : i32
    %144 = tpu.memref_slice %arg2[%143, %c0_i32_81] : memref<200x128xf32, #tpu.memory_space<any>> -> memref<1x128xf32, #tpu.memory_space<any>>
    %c20_i32_82 = arith.constant 20 : i32
    %c0_i32_83 = arith.constant 0 : i32
    %145 = tpu.memref_slice %arg3[%c20_i32_82, %c0_i32_83] : memref<40x128xf32, #tpu.memory_space<vmem>> -> memref<1x128xf32, #tpu.memory_space<vmem>>
    %146 = tpu.memref_slice %arg4[%c0_i32_80] : memref<1x!tpu.dma_semaphore, #tpu.memory_space<semaphore_mem>> -> memref<1x!tpu.dma_semaphore, #tpu.memory_space<semaphore_mem>>
    %147 = tpu.memref_squeeze %146 : memref<1x!tpu.dma_semaphore, #tpu.memory_space<semaphore_mem>> -> memref<!tpu.dma_semaphore, #tpu.memory_space<semaphore_mem>>
    tpu.enqueue_dma source(%144 : memref<1x128xf32, #tpu.memory_space<any>>) target(%145 : memref<1x128xf32, #tpu.memory_space<vmem>>) target_semaphore(%147 : memref<!tpu.dma_semaphore, #tpu.memory_space<semaphore_mem>>)
    %c21_i32 = arith.constant 21 : i32
    %148 = arith.addi %0, %c21_i32 : i32
    %149 = arith.index_cast %148 : i32 to index
    %150 = memref.load %arg1[%149] : memref<80xi32, #tpu.memory_space<smem>>
    %c0_i32_84 = arith.constant 0 : i32
    %c0_i32_85 = arith.constant 0 : i32
    %151 = tpu.memref_slice %arg2[%150, %c0_i32_85] : memref<200x128xf32, #tpu.memory_space<any>> -> memref<1x128xf32, #tpu.memory_space<any>>
    %c21_i32_86 = arith.constant 21 : i32
    %c0_i32_87 = arith.constant 0 : i32
    %152 = tpu.memref_slice %arg3[%c21_i32_86, %c0_i32_87] : memref<40x128xf32, #tpu.memory_space<vmem>> -> memref<1x128xf32, #tpu.memory_space<vmem>>
    %153 = tpu.memref_slice %arg4[%c0_i32_84] : memref<1x!tpu.dma_semaphore, #tpu.memory_space<semaphore_mem>> -> memref<1x!tpu.dma_semaphore, #tpu.memory_space<semaphore_mem>>
    %154 = tpu.memref_squeeze %153 : memref<1x!tpu.dma_semaphore, #tpu.memory_space<semaphore_mem>> -> memref<!tpu.dma_semaphore, #tpu.memory_space<semaphore_mem>>
    tpu.enqueue_dma source(%151 : memref<1x128xf32, #tpu.memory_space<any>>) target(%152 : memref<1x128xf32, #tpu.memory_space<vmem>>) target_semaphore(%154 : memref<!tpu.dma_semaphore, #tpu.memory_space<semaphore_mem>>)
    %c22_i32 = arith.constant 22 : i32
    %155 = arith.addi %0, %c22_i32 : i32
    %156 = arith.index_cast %155 : i32 to index
    %157 = memref.load %arg1[%156] : memref<80xi32, #tpu.memory_space<smem>>
    %c0_i32_88 = arith.constant 0 : i32
    %c0_i32_89 = arith.constant 0 : i32
    %158 = tpu.memref_slice %arg2[%157, %c0_i32_89] : memref<200x128xf32, #tpu.memory_space<any>> -> memref<1x128xf32, #tpu.memory_space<any>>
    %c22_i32_90 = arith.constant 22 : i32
    %c0_i32_91 = arith.constant 0 : i32
    %159 = tpu.memref_slice %arg3[%c22_i32_90, %c0_i32_91] : memref<40x128xf32, #tpu.memory_space<vmem>> -> memref<1x128xf32, #tpu.memory_space<vmem>>
    %160 = tpu.memref_slice %arg4[%c0_i32_88] : memref<1x!tpu.dma_semaphore, #tpu.memory_space<semaphore_mem>> -> memref<1x!tpu.dma_semaphore, #tpu.memory_space<semaphore_mem>>
    %161 = tpu.memref_squeeze %160 : memref<1x!tpu.dma_semaphore, #tpu.memory_space<semaphore_mem>> -> memref<!tpu.dma_semaphore, #tpu.memory_space<semaphore_mem>>
    tpu.enqueue_dma source(%158 : memref<1x128xf32, #tpu.memory_space<any>>) target(%159 : memref<1x128xf32, #tpu.memory_space<vmem>>) target_semaphore(%161 : memref<!tpu.dma_semaphore, #tpu.memory_space<semaphore_mem>>)
    %c23_i32 = arith.constant 23 : i32
    %162 = arith.addi %0, %c23_i32 : i32
    %163 = arith.index_cast %162 : i32 to index
    %164 = memref.load %arg1[%163] : memref<80xi32, #tpu.memory_space<smem>>
    %c0_i32_92 = arith.constant 0 : i32
    %c0_i32_93 = arith.constant 0 : i32
    %165 = tpu.memref_slice %arg2[%164, %c0_i32_93] : memref<200x128xf32, #tpu.memory_space<any>> -> memref<1x128xf32, #tpu.memory_space<any>>
    %c23_i32_94 = arith.constant 23 : i32
    %c0_i32_95 = arith.constant 0 : i32
    %166 = tpu.memref_slice %arg3[%c23_i32_94, %c0_i32_95] : memref<40x128xf32, #tpu.memory_space<vmem>> -> memref<1x128xf32, #tpu.memory_space<vmem>>
    %167 = tpu.memref_slice %arg4[%c0_i32_92] : memref<1x!tpu.dma_semaphore, #tpu.memory_space<semaphore_mem>> -> memref<1x!tpu.dma_semaphore, #tpu.memory_space<semaphore_mem>>
    %168 = tpu.memref_squeeze %167 : memref<1x!tpu.dma_semaphore, #tpu.memory_space<semaphore_mem>> -> memref<!tpu.dma_semaphore, #tpu.memory_space<semaphore_mem>>
    tpu.enqueue_dma source(%165 : memref<1x128xf32, #tpu.memory_space<any>>) target(%166 : memref<1x128xf32, #tpu.memory_space<vmem>>) target_semaphore(%168 : memref<!tpu.dma_semaphore, #tpu.memory_space<semaphore_mem>>)
    %c24_i32 = arith.constant 24 : i32
    %169 = arith.addi %0, %c24_i32 : i32
    %170 = arith.index_cast %169 : i32 to index
    %171 = memref.load %arg1[%170] : memref<80xi32, #tpu.memory_space<smem>>
    %c0_i32_96 = arith.constant 0 : i32
    %c0_i32_97 = arith.constant 0 : i32
    %172 = tpu.memref_slice %arg2[%171, %c0_i32_97] : memref<200x128xf32, #tpu.memory_space<any>> -> memref<1x128xf32, #tpu.memory_space<any>>
    %c24_i32_98 = arith.constant 24 : i32
    %c0_i32_99 = arith.constant 0 : i32
    %173 = tpu.memref_slice %arg3[%c24_i32_98, %c0_i32_99] : memref<40x128xf32, #tpu.memory_space<vmem>> -> memref<1x128xf32, #tpu.memory_space<vmem>>
    %174 = tpu.memref_slice %arg4[%c0_i32_96] : memref<1x!tpu.dma_semaphore, #tpu.memory_space<semaphore_mem>> -> memref<1x!tpu.dma_semaphore, #tpu.memory_space<semaphore_mem>>
    %175 = tpu.memref_squeeze %174 : memref<1x!tpu.dma_semaphore, #tpu.memory_space<semaphore_mem>> -> memref<!tpu.dma_semaphore, #tpu.memory_space<semaphore_mem>>
    tpu.enqueue_dma source(%172 : memref<1x128xf32, #tpu.memory_space<any>>) target(%173 : memref<1x128xf32, #tpu.memory_space<vmem>>) target_semaphore(%175 : memref<!tpu.dma_semaphore, #tpu.memory_space<semaphore_mem>>)
    %c25_i32 = arith.constant 25 : i32
    %176 = arith.addi %0, %c25_i32 : i32
    %177 = arith.index_cast %176 : i32 to index
    %178 = memref.load %arg1[%177] : memref<80xi32, #tpu.memory_space<smem>>
    %c0_i32_100 = arith.constant 0 : i32
    %c0_i32_101 = arith.constant 0 : i32
    %179 = tpu.memref_slice %arg2[%178, %c0_i32_101] : memref<200x128xf32, #tpu.memory_space<any>> -> memref<1x128xf32, #tpu.memory_space<any>>
    %c25_i32_102 = arith.constant 25 : i32
    %c0_i32_103 = arith.constant 0 : i32
    %180 = tpu.memref_slice %arg3[%c25_i32_102, %c0_i32_103] : memref<40x128xf32, #tpu.memory_space<vmem>> -> memref<1x128xf32, #tpu.memory_space<vmem>>
    %181 = tpu.memref_slice %arg4[%c0_i32_100] : memref<1x!tpu.dma_semaphore, #tpu.memory_space<semaphore_mem>> -> memref<1x!tpu.dma_semaphore, #tpu.memory_space<semaphore_mem>>
    %182 = tpu.memref_squeeze %181 : memref<1x!tpu.dma_semaphore, #tpu.memory_space<semaphore_mem>> -> memref<!tpu.dma_semaphore, #tpu.memory_space<semaphore_mem>>
    tpu.enqueue_dma source(%179 : memref<1x128xf32, #tpu.memory_space<any>>) target(%180 : memref<1x128xf32, #tpu.memory_space<vmem>>) target_semaphore(%182 : memref<!tpu.dma_semaphore, #tpu.memory_space<semaphore_mem>>)
    %c26_i32 = arith.constant 26 : i32
    %183 = arith.addi %0, %c26_i32 : i32
    %184 = arith.index_cast %183 : i32 to index
    %185 = memref.load %arg1[%184] : memref<80xi32, #tpu.memory_space<smem>>
    %c0_i32_104 = arith.constant 0 : i32
    %c0_i32_105 = arith.constant 0 : i32
    %186 = tpu.memref_slice %arg2[%185, %c0_i32_105] : memref<200x128xf32, #tpu.memory_space<any>> -> memref<1x128xf32, #tpu.memory_space<any>>
    %c26_i32_106 = arith.constant 26 : i32
    %c0_i32_107 = arith.constant 0 : i32
    %187 = tpu.memref_slice %arg3[%c26_i32_106, %c0_i32_107] : memref<40x128xf32, #tpu.memory_space<vmem>> -> memref<1x128xf32, #tpu.memory_space<vmem>>
    %188 = tpu.memref_slice %arg4[%c0_i32_104] : memref<1x!tpu.dma_semaphore, #tpu.memory_space<semaphore_mem>> -> memref<1x!tpu.dma_semaphore, #tpu.memory_space<semaphore_mem>>
    %189 = tpu.memref_squeeze %188 : memref<1x!tpu.dma_semaphore, #tpu.memory_space<semaphore_mem>> -> memref<!tpu.dma_semaphore, #tpu.memory_space<semaphore_mem>>
    tpu.enqueue_dma source(%186 : memref<1x128xf32, #tpu.memory_space<any>>) target(%187 : memref<1x128xf32, #tpu.memory_space<vmem>>) target_semaphore(%189 : memref<!tpu.dma_semaphore, #tpu.memory_space<semaphore_mem>>)
    %c27_i32 = arith.constant 27 : i32
    %190 = arith.addi %0, %c27_i32 : i32
    %191 = arith.index_cast %190 : i32 to index
    %192 = memref.load %arg1[%191] : memref<80xi32, #tpu.memory_space<smem>>
    %c0_i32_108 = arith.constant 0 : i32
    %c0_i32_109 = arith.constant 0 : i32
    %193 = tpu.memref_slice %arg2[%192, %c0_i32_109] : memref<200x128xf32, #tpu.memory_space<any>> -> memref<1x128xf32, #tpu.memory_space<any>>
    %c27_i32_110 = arith.constant 27 : i32
    %c0_i32_111 = arith.constant 0 : i32
    %194 = tpu.memref_slice %arg3[%c27_i32_110, %c0_i32_111] : memref<40x128xf32, #tpu.memory_space<vmem>> -> memref<1x128xf32, #tpu.memory_space<vmem>>
    %195 = tpu.memref_slice %arg4[%c0_i32_108] : memref<1x!tpu.dma_semaphore, #tpu.memory_space<semaphore_mem>> -> memref<1x!tpu.dma_semaphore, #tpu.memory_space<semaphore_mem>>
    %196 = tpu.memref_squeeze %195 : memref<1x!tpu.dma_semaphore, #tpu.memory_space<semaphore_mem>> -> memref<!tpu.dma_semaphore, #tpu.memory_space<semaphore_mem>>
    tpu.enqueue_dma source(%193 : memref<1x128xf32, #tpu.memory_space<any>>) target(%194 : memref<1x128xf32, #tpu.memory_space<vmem>>) target_semaphore(%196 : memref<!tpu.dma_semaphore, #tpu.memory_space<semaphore_mem>>)
    %c28_i32 = arith.constant 28 : i32
    %197 = arith.addi %0, %c28_i32 : i32
    %198 = arith.index_cast %197 : i32 to index
    %199 = memref.load %arg1[%198] : memref<80xi32, #tpu.memory_space<smem>>
    %c0_i32_112 = arith.constant 0 : i32
    %c0_i32_113 = arith.constant 0 : i32
    %200 = tpu.memref_slice %arg2[%199, %c0_i32_113] : memref<200x128xf32, #tpu.memory_space<any>> -> memref<1x128xf32, #tpu.memory_space<any>>
    %c28_i32_114 = arith.constant 28 : i32
    %c0_i32_115 = arith.constant 0 : i32
    %201 = tpu.memref_slice %arg3[%c28_i32_114, %c0_i32_115] : memref<40x128xf32, #tpu.memory_space<vmem>> -> memref<1x128xf32, #tpu.memory_space<vmem>>
    %202 = tpu.memref_slice %arg4[%c0_i32_112] : memref<1x!tpu.dma_semaphore, #tpu.memory_space<semaphore_mem>> -> memref<1x!tpu.dma_semaphore, #tpu.memory_space<semaphore_mem>>
    %203 = tpu.memref_squeeze %202 : memref<1x!tpu.dma_semaphore, #tpu.memory_space<semaphore_mem>> -> memref<!tpu.dma_semaphore, #tpu.memory_space<semaphore_mem>>
    tpu.enqueue_dma source(%200 : memref<1x128xf32, #tpu.memory_space<any>>) target(%201 : memref<1x128xf32, #tpu.memory_space<vmem>>) target_semaphore(%203 : memref<!tpu.dma_semaphore, #tpu.memory_space<semaphore_mem>>)
    %c29_i32 = arith.constant 29 : i32
    %204 = arith.addi %0, %c29_i32 : i32
    %205 = arith.index_cast %204 : i32 to index
    %206 = memref.load %arg1[%205] : memref<80xi32, #tpu.memory_space<smem>>
    %c0_i32_116 = arith.constant 0 : i32
    %c0_i32_117 = arith.constant 0 : i32
    %207 = tpu.memref_slice %arg2[%206, %c0_i32_117] : memref<200x128xf32, #tpu.memory_space<any>> -> memref<1x128xf32, #tpu.memory_space<any>>
    %c29_i32_118 = arith.constant 29 : i32
    %c0_i32_119 = arith.constant 0 : i32
    %208 = tpu.memref_slice %arg3[%c29_i32_118, %c0_i32_119] : memref<40x128xf32, #tpu.memory_space<vmem>> -> memref<1x128xf32, #tpu.memory_space<vmem>>
    %209 = tpu.memref_slice %arg4[%c0_i32_116] : memref<1x!tpu.dma_semaphore, #tpu.memory_space<semaphore_mem>> -> memref<1x!tpu.dma_semaphore, #tpu.memory_space<semaphore_mem>>
    %210 = tpu.memref_squeeze %209 : memref<1x!tpu.dma_semaphore, #tpu.memory_space<semaphore_mem>> -> memref<!tpu.dma_semaphore, #tpu.memory_space<semaphore_mem>>
    tpu.enqueue_dma source(%207 : memref<1x128xf32, #tpu.memory_space<any>>) target(%208 : memref<1x128xf32, #tpu.memory_space<vmem>>) target_semaphore(%210 : memref<!tpu.dma_semaphore, #tpu.memory_space<semaphore_mem>>)
    %c30_i32 = arith.constant 30 : i32
    %211 = arith.addi %0, %c30_i32 : i32
    %212 = arith.index_cast %211 : i32 to index
    %213 = memref.load %arg1[%212] : memref<80xi32, #tpu.memory_space<smem>>
    %c0_i32_120 = arith.constant 0 : i32
    %c0_i32_121 = arith.constant 0 : i32
    %214 = tpu.memref_slice %arg2[%213, %c0_i32_121] : memref<200x128xf32, #tpu.memory_space<any>> -> memref<1x128xf32, #tpu.memory_space<any>>
    %c30_i32_122 = arith.constant 30 : i32
    %c0_i32_123 = arith.constant 0 : i32
    %215 = tpu.memref_slice %arg3[%c30_i32_122, %c0_i32_123] : memref<40x128xf32, #tpu.memory_space<vmem>> -> memref<1x128xf32, #tpu.memory_space<vmem>>
    %216 = tpu.memref_slice %arg4[%c0_i32_120] : memref<1x!tpu.dma_semaphore, #tpu.memory_space<semaphore_mem>> -> memref<1x!tpu.dma_semaphore, #tpu.memory_space<semaphore_mem>>
    %217 = tpu.memref_squeeze %216 : memref<1x!tpu.dma_semaphore, #tpu.memory_space<semaphore_mem>> -> memref<!tpu.dma_semaphore, #tpu.memory_space<semaphore_mem>>
    tpu.enqueue_dma source(%214 : memref<1x128xf32, #tpu.memory_space<any>>) target(%215 : memref<1x128xf32, #tpu.memory_space<vmem>>) target_semaphore(%217 : memref<!tpu.dma_semaphore, #tpu.memory_space<semaphore_mem>>)
    %c31_i32 = arith.constant 31 : i32
    %218 = arith.addi %0, %c31_i32 : i32
    %219 = arith.index_cast %218 : i32 to index
    %220 = memref.load %arg1[%219] : memref<80xi32, #tpu.memory_space<smem>>
    %c0_i32_124 = arith.constant 0 : i32
    %c0_i32_125 = arith.constant 0 : i32
    %221 = tpu.memref_slice %arg2[%220, %c0_i32_125] : memref<200x128xf32, #tpu.memory_space<any>> -> memref<1x128xf32, #tpu.memory_space<any>>
    %c31_i32_126 = arith.constant 31 : i32
    %c0_i32_127 = arith.constant 0 : i32
    %222 = tpu.memref_slice %arg3[%c31_i32_126, %c0_i32_127] : memref<40x128xf32, #tpu.memory_space<vmem>> -> memref<1x128xf32, #tpu.memory_space<vmem>>
    %223 = tpu.memref_slice %arg4[%c0_i32_124] : memref<1x!tpu.dma_semaphore, #tpu.memory_space<semaphore_mem>> -> memref<1x!tpu.dma_semaphore, #tpu.memory_space<semaphore_mem>>
    %224 = tpu.memref_squeeze %223 : memref<1x!tpu.dma_semaphore, #tpu.memory_space<semaphore_mem>> -> memref<!tpu.dma_semaphore, #tpu.memory_space<semaphore_mem>>
    tpu.enqueue_dma source(%221 : memref<1x128xf32, #tpu.memory_space<any>>) target(%222 : memref<1x128xf32, #tpu.memory_space<vmem>>) target_semaphore(%224 : memref<!tpu.dma_semaphore, #tpu.memory_space<semaphore_mem>>)
    %c32_i32 = arith.constant 32 : i32
    %225 = arith.addi %0, %c32_i32 : i32
    %226 = arith.index_cast %225 : i32 to index
    %227 = memref.load %arg1[%226] : memref<80xi32, #tpu.memory_space<smem>>
    %c0_i32_128 = arith.constant 0 : i32
    %c0_i32_129 = arith.constant 0 : i32
    %228 = tpu.memref_slice %arg2[%227, %c0_i32_129] : memref<200x128xf32, #tpu.memory_space<any>> -> memref<1x128xf32, #tpu.memory_space<any>>
    %c32_i32_130 = arith.constant 32 : i32
    %c0_i32_131 = arith.constant 0 : i32
    %229 = tpu.memref_slice %arg3[%c32_i32_130, %c0_i32_131] : memref<40x128xf32, #tpu.memory_space<vmem>> -> memref<1x128xf32, #tpu.memory_space<vmem>>
    %230 = tpu.memref_slice %arg4[%c0_i32_128] : memref<1x!tpu.dma_semaphore, #tpu.memory_space<semaphore_mem>> -> memref<1x!tpu.dma_semaphore, #tpu.memory_space<semaphore_mem>>
    %231 = tpu.memref_squeeze %230 : memref<1x!tpu.dma_semaphore, #tpu.memory_space<semaphore_mem>> -> memref<!tpu.dma_semaphore, #tpu.memory_space<semaphore_mem>>
    tpu.enqueue_dma source(%228 : memref<1x128xf32, #tpu.memory_space<any>>) target(%229 : memref<1x128xf32, #tpu.memory_space<vmem>>) target_semaphore(%231 : memref<!tpu.dma_semaphore, #tpu.memory_space<semaphore_mem>>)
    %c33_i32 = arith.constant 33 : i32
    %232 = arith.addi %0, %c33_i32 : i32
    %233 = arith.index_cast %232 : i32 to index
    %234 = memref.load %arg1[%233] : memref<80xi32, #tpu.memory_space<smem>>
    %c0_i32_132 = arith.constant 0 : i32
    %c0_i32_133 = arith.constant 0 : i32
    %235 = tpu.memref_slice %arg2[%234, %c0_i32_133] : memref<200x128xf32, #tpu.memory_space<any>> -> memref<1x128xf32, #tpu.memory_space<any>>
    %c33_i32_134 = arith.constant 33 : i32
    %c0_i32_135 = arith.constant 0 : i32
    %236 = tpu.memref_slice %arg3[%c33_i32_134, %c0_i32_135] : memref<40x128xf32, #tpu.memory_space<vmem>> -> memref<1x128xf32, #tpu.memory_space<vmem>>
    %237 = tpu.memref_slice %arg4[%c0_i32_132] : memref<1x!tpu.dma_semaphore, #tpu.memory_space<semaphore_mem>> -> memref<1x!tpu.dma_semaphore, #tpu.memory_space<semaphore_mem>>
    %238 = tpu.memref_squeeze %237 : memref<1x!tpu.dma_semaphore, #tpu.memory_space<semaphore_mem>> -> memref<!tpu.dma_semaphore, #tpu.memory_space<semaphore_mem>>
    tpu.enqueue_dma source(%235 : memref<1x128xf32, #tpu.memory_space<any>>) target(%236 : memref<1x128xf32, #tpu.memory_space<vmem>>) target_semaphore(%238 : memref<!tpu.dma_semaphore, #tpu.memory_space<semaphore_mem>>)
    %c34_i32 = arith.constant 34 : i32
    %239 = arith.addi %0, %c34_i32 : i32
    %240 = arith.index_cast %239 : i32 to index
    %241 = memref.load %arg1[%240] : memref<80xi32, #tpu.memory_space<smem>>
    %c0_i32_136 = arith.constant 0 : i32
    %c0_i32_137 = arith.constant 0 : i32
    %242 = tpu.memref_slice %arg2[%241, %c0_i32_137] : memref<200x128xf32, #tpu.memory_space<any>> -> memref<1x128xf32, #tpu.memory_space<any>>
    %c34_i32_138 = arith.constant 34 : i32
    %c0_i32_139 = arith.constant 0 : i32
    %243 = tpu.memref_slice %arg3[%c34_i32_138, %c0_i32_139] : memref<40x128xf32, #tpu.memory_space<vmem>> -> memref<1x128xf32, #tpu.memory_space<vmem>>
    %244 = tpu.memref_slice %arg4[%c0_i32_136] : memref<1x!tpu.dma_semaphore, #tpu.memory_space<semaphore_mem>> -> memref<1x!tpu.dma_semaphore, #tpu.memory_space<semaphore_mem>>
    %245 = tpu.memref_squeeze %244 : memref<1x!tpu.dma_semaphore, #tpu.memory_space<semaphore_mem>> -> memref<!tpu.dma_semaphore, #tpu.memory_space<semaphore_mem>>
    tpu.enqueue_dma source(%242 : memref<1x128xf32, #tpu.memory_space<any>>) target(%243 : memref<1x128xf32, #tpu.memory_space<vmem>>) target_semaphore(%245 : memref<!tpu.dma_semaphore, #tpu.memory_space<semaphore_mem>>)
    %c35_i32 = arith.constant 35 : i32
    %246 = arith.addi %0, %c35_i32 : i32
    %247 = arith.index_cast %246 : i32 to index
    %248 = memref.load %arg1[%247] : memref<80xi32, #tpu.memory_space<smem>>
    %c0_i32_140 = arith.constant 0 : i32
    %c0_i32_141 = arith.constant 0 : i32
    %249 = tpu.memref_slice %arg2[%248, %c0_i32_141] : memref<200x128xf32, #tpu.memory_space<any>> -> memref<1x128xf32, #tpu.memory_space<any>>
    %c35_i32_142 = arith.constant 35 : i32
    %c0_i32_143 = arith.constant 0 : i32
    %250 = tpu.memref_slice %arg3[%c35_i32_142, %c0_i32_143] : memref<40x128xf32, #tpu.memory_space<vmem>> -> memref<1x128xf32, #tpu.memory_space<vmem>>
    %251 = tpu.memref_slice %arg4[%c0_i32_140] : memref<1x!tpu.dma_semaphore, #tpu.memory_space<semaphore_mem>> -> memref<1x!tpu.dma_semaphore, #tpu.memory_space<semaphore_mem>>
    %252 = tpu.memref_squeeze %251 : memref<1x!tpu.dma_semaphore, #tpu.memory_space<semaphore_mem>> -> memref<!tpu.dma_semaphore, #tpu.memory_space<semaphore_mem>>
    tpu.enqueue_dma source(%249 : memref<1x128xf32, #tpu.memory_space<any>>) target(%250 : memref<1x128xf32, #tpu.memory_space<vmem>>) target_semaphore(%252 : memref<!tpu.dma_semaphore, #tpu.memory_space<semaphore_mem>>)
    %c36_i32 = arith.constant 36 : i32
    %253 = arith.addi %0, %c36_i32 : i32
    %254 = arith.index_cast %253 : i32 to index
    %255 = memref.load %arg1[%254] : memref<80xi32, #tpu.memory_space<smem>>
    %c0_i32_144 = arith.constant 0 : i32
    %c0_i32_145 = arith.constant 0 : i32
    %256 = tpu.memref_slice %arg2[%255, %c0_i32_145] : memref<200x128xf32, #tpu.memory_space<any>> -> memref<1x128xf32, #tpu.memory_space<any>>
    %c36_i32_146 = arith.constant 36 : i32
    %c0_i32_147 = arith.constant 0 : i32
    %257 = tpu.memref_slice %arg3[%c36_i32_146, %c0_i32_147] : memref<40x128xf32, #tpu.memory_space<vmem>> -> memref<1x128xf32, #tpu.memory_space<vmem>>
    %258 = tpu.memref_slice %arg4[%c0_i32_144] : memref<1x!tpu.dma_semaphore, #tpu.memory_space<semaphore_mem>> -> memref<1x!tpu.dma_semaphore, #tpu.memory_space<semaphore_mem>>
    %259 = tpu.memref_squeeze %258 : memref<1x!tpu.dma_semaphore, #tpu.memory_space<semaphore_mem>> -> memref<!tpu.dma_semaphore, #tpu.memory_space<semaphore_mem>>
    tpu.enqueue_dma source(%256 : memref<1x128xf32, #tpu.memory_space<any>>) target(%257 : memref<1x128xf32, #tpu.memory_space<vmem>>) target_semaphore(%259 : memref<!tpu.dma_semaphore, #tpu.memory_space<semaphore_mem>>)
    %c37_i32 = arith.constant 37 : i32
    %260 = arith.addi %0, %c37_i32 : i32
    %261 = arith.index_cast %260 : i32 to index
    %262 = memref.load %arg1[%261] : memref<80xi32, #tpu.memory_space<smem>>
    %c0_i32_148 = arith.constant 0 : i32
    %c0_i32_149 = arith.constant 0 : i32
    %263 = tpu.memref_slice %arg2[%262, %c0_i32_149] : memref<200x128xf32, #tpu.memory_space<any>> -> memref<1x128xf32, #tpu.memory_space<any>>
    %c37_i32_150 = arith.constant 37 : i32
    %c0_i32_151 = arith.constant 0 : i32
    %264 = tpu.memref_slice %arg3[%c37_i32_150, %c0_i32_151] : memref<40x128xf32, #tpu.memory_space<vmem>> -> memref<1x128xf32, #tpu.memory_space<vmem>>
    %265 = tpu.memref_slice %arg4[%c0_i32_148] : memref<1x!tpu.dma_semaphore, #tpu.memory_space<semaphore_mem>> -> memref<1x!tpu.dma_semaphore, #tpu.memory_space<semaphore_mem>>
    %266 = tpu.memref_squeeze %265 : memref<1x!tpu.dma_semaphore, #tpu.memory_space<semaphore_mem>> -> memref<!tpu.dma_semaphore, #tpu.memory_space<semaphore_mem>>
    tpu.enqueue_dma source(%263 : memref<1x128xf32, #tpu.memory_space<any>>) target(%264 : memref<1x128xf32, #tpu.memory_space<vmem>>) target_semaphore(%266 : memref<!tpu.dma_semaphore, #tpu.memory_space<semaphore_mem>>)
    %c38_i32 = arith.constant 38 : i32
    %267 = arith.addi %0, %c38_i32 : i32
    %268 = arith.index_cast %267 : i32 to index
    %269 = memref.load %arg1[%268] : memref<80xi32, #tpu.memory_space<smem>>
    %c0_i32_152 = arith.constant 0 : i32
    %c0_i32_153 = arith.constant 0 : i32
    %270 = tpu.memref_slice %arg2[%269, %c0_i32_153] : memref<200x128xf32, #tpu.memory_space<any>> -> memref<1x128xf32, #tpu.memory_space<any>>
    %c38_i32_154 = arith.constant 38 : i32
    %c0_i32_155 = arith.constant 0 : i32
    %271 = tpu.memref_slice %arg3[%c38_i32_154, %c0_i32_155] : memref<40x128xf32, #tpu.memory_space<vmem>> -> memref<1x128xf32, #tpu.memory_space<vmem>>
    %272 = tpu.memref_slice %arg4[%c0_i32_152] : memref<1x!tpu.dma_semaphore, #tpu.memory_space<semaphore_mem>> -> memref<1x!tpu.dma_semaphore, #tpu.memory_space<semaphore_mem>>
    %273 = tpu.memref_squeeze %272 : memref<1x!tpu.dma_semaphore, #tpu.memory_space<semaphore_mem>> -> memref<!tpu.dma_semaphore, #tpu.memory_space<semaphore_mem>>
    tpu.enqueue_dma source(%270 : memref<1x128xf32, #tpu.memory_space<any>>) target(%271 : memref<1x128xf32, #tpu.memory_space<vmem>>) target_semaphore(%273 : memref<!tpu.dma_semaphore, #tpu.memory_space<semaphore_mem>>)
    %c39_i32 = arith.constant 39 : i32
    %274 = arith.addi %0, %c39_i32 : i32
    %275 = arith.index_cast %274 : i32 to index
    %276 = memref.load %arg1[%275] : memref<80xi32, #tpu.memory_space<smem>>
    %c0_i32_156 = arith.constant 0 : i32
    %c0_i32_157 = arith.constant 0 : i32
    %277 = tpu.memref_slice %arg2[%276, %c0_i32_157] : memref<200x128xf32, #tpu.memory_space<any>> -> memref<1x128xf32, #tpu.memory_space<any>>
    %c39_i32_158 = arith.constant 39 : i32
    %c0_i32_159 = arith.constant 0 : i32
    %278 = tpu.memref_slice %arg3[%c39_i32_158, %c0_i32_159] : memref<40x128xf32, #tpu.memory_space<vmem>> -> memref<1x128xf32, #tpu.memory_space<vmem>>
    %279 = tpu.memref_slice %arg4[%c0_i32_156] : memref<1x!tpu.dma_semaphore, #tpu.memory_space<semaphore_mem>> -> memref<1x!tpu.dma_semaphore, #tpu.memory_space<semaphore_mem>>
    %280 = tpu.memref_squeeze %279 : memref<1x!tpu.dma_semaphore, #tpu.memory_space<semaphore_mem>> -> memref<!tpu.dma_semaphore, #tpu.memory_space<semaphore_mem>>
    tpu.enqueue_dma source(%277 : memref<1x128xf32, #tpu.memory_space<any>>) target(%278 : memref<1x128xf32, #tpu.memory_space<vmem>>) target_semaphore(%280 : memref<!tpu.dma_semaphore, #tpu.memory_space<semaphore_mem>>)
    %c0_i32_160 = arith.constant 0 : i32
    %c0_i32_161 = arith.constant 0 : i32
    %c0_i32_162 = arith.constant 0 : i32
    %281 = tpu.memref_slice %arg2[%c0_i32_161, %c0_i32_162] : memref<200x128xf32, #tpu.memory_space<any>> -> memref<1x128xf32, #tpu.memory_space<any>>
    %c0_i32_163 = arith.constant 0 : i32
    %c0_i32_164 = arith.constant 0 : i32
    %282 = tpu.memref_slice %arg3[%c0_i32_163, %c0_i32_164] : memref<40x128xf32, #tpu.memory_space<vmem>> -> memref<1x128xf32, #tpu.memory_space<vmem>>
    %283 = tpu.memref_slice %arg4[%c0_i32_160] : memref<1x!tpu.dma_semaphore, #tpu.memory_space<semaphore_mem>> -> memref<1x!tpu.dma_semaphore, #tpu.memory_space<semaphore_mem>>
    %284 = tpu.memref_squeeze %283 : memref<1x!tpu.dma_semaphore, #tpu.memory_space<semaphore_mem>> -> memref<!tpu.dma_semaphore, #tpu.memory_space<semaphore_mem>>
    tpu.wait_dma2 semaphore(%284 : memref<!tpu.dma_semaphore, #tpu.memory_space<semaphore_mem>>) src(%281 : memref<1x128xf32, #tpu.memory_space<any>>) dst(%282 : memref<1x128xf32, #tpu.memory_space<vmem>>)
    %c0_i32_165 = arith.constant 0 : i32
    %c0_i32_166 = arith.constant 0 : i32
    %c0_i32_167 = arith.constant 0 : i32
    %285 = tpu.memref_slice %arg2[%c0_i32_166, %c0_i32_167] : memref<200x128xf32, #tpu.memory_space<any>> -> memref<1x128xf32, #tpu.memory_space<any>>
    %c1_i32_168 = arith.constant 1 : i32
    %c0_i32_169 = arith.constant 0 : i32
    %286 = tpu.memref_slice %arg3[%c1_i32_168, %c0_i32_169] : memref<40x128xf32, #tpu.memory_space<vmem>> -> memref<1x128xf32, #tpu.memory_space<vmem>>
    %287 = tpu.memref_slice %arg4[%c0_i32_165] : memref<1x!tpu.dma_semaphore, #tpu.memory_space<semaphore_mem>> -> memref<1x!tpu.dma_semaphore, #tpu.memory_space<semaphore_mem>>
    %288 = tpu.memref_squeeze %287 : memref<1x!tpu.dma_semaphore, #tpu.memory_space<semaphore_mem>> -> memref<!tpu.dma_semaphore, #tpu.memory_space<semaphore_mem>>
    tpu.wait_dma2 semaphore(%288 : memref<!tpu.dma_semaphore, #tpu.memory_space<semaphore_mem>>) src(%285 : memref<1x128xf32, #tpu.memory_space<any>>) dst(%286 : memref<1x128xf32, #tpu.memory_space<vmem>>)
    %c0_i32_170 = arith.constant 0 : i32
    %c0_i32_171 = arith.constant 0 : i32
    %c0_i32_172 = arith.constant 0 : i32
    %289 = tpu.memref_slice %arg2[%c0_i32_171, %c0_i32_172] : memref<200x128xf32, #tpu.memory_space<any>> -> memref<1x128xf32, #tpu.memory_space<any>>
    %c2_i32_173 = arith.constant 2 : i32
    %c0_i32_174 = arith.constant 0 : i32
    %290 = tpu.memref_slice %arg3[%c2_i32_173, %c0_i32_174] : memref<40x128xf32, #tpu.memory_space<vmem>> -> memref<1x128xf32, #tpu.memory_space<vmem>>
    %291 = tpu.memref_slice %arg4[%c0_i32_170] : memref<1x!tpu.dma_semaphore, #tpu.memory_space<semaphore_mem>> -> memref<1x!tpu.dma_semaphore, #tpu.memory_space<semaphore_mem>>
    %292 = tpu.memref_squeeze %291 : memref<1x!tpu.dma_semaphore, #tpu.memory_space<semaphore_mem>> -> memref<!tpu.dma_semaphore, #tpu.memory_space<semaphore_mem>>
    tpu.wait_dma2 semaphore(%292 : memref<!tpu.dma_semaphore, #tpu.memory_space<semaphore_mem>>) src(%289 : memref<1x128xf32, #tpu.memory_space<any>>) dst(%290 : memref<1x128xf32, #tpu.memory_space<vmem>>)
    %c0_i32_175 = arith.constant 0 : i32
    %c0_i32_176 = arith.constant 0 : i32
    %c0_i32_177 = arith.constant 0 : i32
    %293 = tpu.memref_slice %arg2[%c0_i32_176, %c0_i32_177] : memref<200x128xf32, #tpu.memory_space<any>> -> memref<1x128xf32, #tpu.memory_space<any>>
    %c3_i32_178 = arith.constant 3 : i32
    %c0_i32_179 = arith.constant 0 : i32
    %294 = tpu.memref_slice %arg3[%c3_i32_178, %c0_i32_179] : memref<40x128xf32, #tpu.memory_space<vmem>> -> memref<1x128xf32, #tpu.memory_space<vmem>>
    %295 = tpu.memref_slice %arg4[%c0_i32_175] : memref<1x!tpu.dma_semaphore, #tpu.memory_space<semaphore_mem>> -> memref<1x!tpu.dma_semaphore, #tpu.memory_space<semaphore_mem>>
    %296 = tpu.memref_squeeze %295 : memref<1x!tpu.dma_semaphore, #tpu.memory_space<semaphore_mem>> -> memref<!tpu.dma_semaphore, #tpu.memory_space<semaphore_mem>>
    tpu.wait_dma2 semaphore(%296 : memref<!tpu.dma_semaphore, #tpu.memory_space<semaphore_mem>>) src(%293 : memref<1x128xf32, #tpu.memory_space<any>>) dst(%294 : memref<1x128xf32, #tpu.memory_space<vmem>>)
    %c0_i32_180 = arith.constant 0 : i32
    %c0_i32_181 = arith.constant 0 : i32
    %c0_i32_182 = arith.constant 0 : i32
    %297 = tpu.memref_slice %arg2[%c0_i32_181, %c0_i32_182] : memref<200x128xf32, #tpu.memory_space<any>> -> memref<1x128xf32, #tpu.memory_space<any>>
    %c4_i32_183 = arith.constant 4 : i32
    %c0_i32_184 = arith.constant 0 : i32
    %298 = tpu.memref_slice %arg3[%c4_i32_183, %c0_i32_184] : memref<40x128xf32, #tpu.memory_space<vmem>> -> memref<1x128xf32, #tpu.memory_space<vmem>>
    %299 = tpu.memref_slice %arg4[%c0_i32_180] : memref<1x!tpu.dma_semaphore, #tpu.memory_space<semaphore_mem>> -> memref<1x!tpu.dma_semaphore, #tpu.memory_space<semaphore_mem>>
    %300 = tpu.memref_squeeze %299 : memref<1x!tpu.dma_semaphore, #tpu.memory_space<semaphore_mem>> -> memref<!tpu.dma_semaphore, #tpu.memory_space<semaphore_mem>>
    tpu.wait_dma2 semaphore(%300 : memref<!tpu.dma_semaphore, #tpu.memory_space<semaphore_mem>>) src(%297 : memref<1x128xf32, #tpu.memory_space<any>>) dst(%298 : memref<1x128xf32, #tpu.memory_space<vmem>>)
    %c0_i32_185 = arith.constant 0 : i32
    %c0_i32_186 = arith.constant 0 : i32
    %c0_i32_187 = arith.constant 0 : i32
    %301 = tpu.memref_slice %arg2[%c0_i32_186, %c0_i32_187] : memref<200x128xf32, #tpu.memory_space<any>> -> memref<1x128xf32, #tpu.memory_space<any>>
    %c5_i32_188 = arith.constant 5 : i32
    %c0_i32_189 = arith.constant 0 : i32
    %302 = tpu.memref_slice %arg3[%c5_i32_188, %c0_i32_189] : memref<40x128xf32, #tpu.memory_space<vmem>> -> memref<1x128xf32, #tpu.memory_space<vmem>>
    %303 = tpu.memref_slice %arg4[%c0_i32_185] : memref<1x!tpu.dma_semaphore, #tpu.memory_space<semaphore_mem>> -> memref<1x!tpu.dma_semaphore, #tpu.memory_space<semaphore_mem>>
    %304 = tpu.memref_squeeze %303 : memref<1x!tpu.dma_semaphore, #tpu.memory_space<semaphore_mem>> -> memref<!tpu.dma_semaphore, #tpu.memory_space<semaphore_mem>>
    tpu.wait_dma2 semaphore(%304 : memref<!tpu.dma_semaphore, #tpu.memory_space<semaphore_mem>>) src(%301 : memref<1x128xf32, #tpu.memory_space<any>>) dst(%302 : memref<1x128xf32, #tpu.memory_space<vmem>>)
    %c0_i32_190 = arith.constant 0 : i32
    %c0_i32_191 = arith.constant 0 : i32
    %c0_i32_192 = arith.constant 0 : i32
    %305 = tpu.memref_slice %arg2[%c0_i32_191, %c0_i32_192] : memref<200x128xf32, #tpu.memory_space<any>> -> memref<1x128xf32, #tpu.memory_space<any>>
    %c6_i32_193 = arith.constant 6 : i32
    %c0_i32_194 = arith.constant 0 : i32
    %306 = tpu.memref_slice %arg3[%c6_i32_193, %c0_i32_194] : memref<40x128xf32, #tpu.memory_space<vmem>> -> memref<1x128xf32, #tpu.memory_space<vmem>>
    %307 = tpu.memref_slice %arg4[%c0_i32_190] : memref<1x!tpu.dma_semaphore, #tpu.memory_space<semaphore_mem>> -> memref<1x!tpu.dma_semaphore, #tpu.memory_space<semaphore_mem>>
    %308 = tpu.memref_squeeze %307 : memref<1x!tpu.dma_semaphore, #tpu.memory_space<semaphore_mem>> -> memref<!tpu.dma_semaphore, #tpu.memory_space<semaphore_mem>>
    tpu.wait_dma2 semaphore(%308 : memref<!tpu.dma_semaphore, #tpu.memory_space<semaphore_mem>>) src(%305 : memref<1x128xf32, #tpu.memory_space<any>>) dst(%306 : memref<1x128xf32, #tpu.memory_space<vmem>>)
    %c0_i32_195 = arith.constant 0 : i32
    %c0_i32_196 = arith.constant 0 : i32
    %c0_i32_197 = arith.constant 0 : i32
    %309 = tpu.memref_slice %arg2[%c0_i32_196, %c0_i32_197] : memref<200x128xf32, #tpu.memory_space<any>> -> memref<1x128xf32, #tpu.memory_space<any>>
    %c7_i32_198 = arith.constant 7 : i32
    %c0_i32_199 = arith.constant 0 : i32
    %310 = tpu.memref_slice %arg3[%c7_i32_198, %c0_i32_199] : memref<40x128xf32, #tpu.memory_space<vmem>> -> memref<1x128xf32, #tpu.memory_space<vmem>>
    %311 = tpu.memref_slice %arg4[%c0_i32_195] : memref<1x!tpu.dma_semaphore, #tpu.memory_space<semaphore_mem>> -> memref<1x!tpu.dma_semaphore, #tpu.memory_space<semaphore_mem>>
    %312 = tpu.memref_squeeze %311 : memref<1x!tpu.dma_semaphore, #tpu.memory_space<semaphore_mem>> -> memref<!tpu.dma_semaphore, #tpu.memory_space<semaphore_mem>>
    tpu.wait_dma2 semaphore(%312 : memref<!tpu.dma_semaphore, #tpu.memory_space<semaphore_mem>>) src(%309 : memref<1x128xf32, #tpu.memory_space<any>>) dst(%310 : memref<1x128xf32, #tpu.memory_space<vmem>>)
    %c0_i32_200 = arith.constant 0 : i32
    %c0_i32_201 = arith.constant 0 : i32
    %c0_i32_202 = arith.constant 0 : i32
    %313 = tpu.memref_slice %arg2[%c0_i32_201, %c0_i32_202] : memref<200x128xf32, #tpu.memory_space<any>> -> memref<1x128xf32, #tpu.memory_space<any>>
    %c8_i32_203 = arith.constant 8 : i32
    %c0_i32_204 = arith.constant 0 : i32
    %314 = tpu.memref_slice %arg3[%c8_i32_203, %c0_i32_204] : memref<40x128xf32, #tpu.memory_space<vmem>> -> memref<1x128xf32, #tpu.memory_space<vmem>>
    %315 = tpu.memref_slice %arg4[%c0_i32_200] : memref<1x!tpu.dma_semaphore, #tpu.memory_space<semaphore_mem>> -> memref<1x!tpu.dma_semaphore, #tpu.memory_space<semaphore_mem>>
    %316 = tpu.memref_squeeze %315 : memref<1x!tpu.dma_semaphore, #tpu.memory_space<semaphore_mem>> -> memref<!tpu.dma_semaphore, #tpu.memory_space<semaphore_mem>>
    tpu.wait_dma2 semaphore(%316 : memref<!tpu.dma_semaphore, #tpu.memory_space<semaphore_mem>>) src(%313 : memref<1x128xf32, #tpu.memory_space<any>>) dst(%314 : memref<1x128xf32, #tpu.memory_space<vmem>>)
    %c0_i32_205 = arith.constant 0 : i32
    %c0_i32_206 = arith.constant 0 : i32
    %c0_i32_207 = arith.constant 0 : i32
    %317 = tpu.memref_slice %arg2[%c0_i32_206, %c0_i32_207] : memref<200x128xf32, #tpu.memory_space<any>> -> memref<1x128xf32, #tpu.memory_space<any>>
    %c9_i32_208 = arith.constant 9 : i32
    %c0_i32_209 = arith.constant 0 : i32
    %318 = tpu.memref_slice %arg3[%c9_i32_208, %c0_i32_209] : memref<40x128xf32, #tpu.memory_space<vmem>> -> memref<1x128xf32, #tpu.memory_space<vmem>>
    %319 = tpu.memref_slice %arg4[%c0_i32_205] : memref<1x!tpu.dma_semaphore, #tpu.memory_space<semaphore_mem>> -> memref<1x!tpu.dma_semaphore, #tpu.memory_space<semaphore_mem>>
    %320 = tpu.memref_squeeze %319 : memref<1x!tpu.dma_semaphore, #tpu.memory_space<semaphore_mem>> -> memref<!tpu.dma_semaphore, #tpu.memory_space<semaphore_mem>>
    tpu.wait_dma2 semaphore(%320 : memref<!tpu.dma_semaphore, #tpu.memory_space<semaphore_mem>>) src(%317 : memref<1x128xf32, #tpu.memory_space<any>>) dst(%318 : memref<1x128xf32, #tpu.memory_space<vmem>>)
    %c0_i32_210 = arith.constant 0 : i32
    %c0_i32_211 = arith.constant 0 : i32
    %c0_i32_212 = arith.constant 0 : i32
    %321 = tpu.memref_slice %arg2[%c0_i32_211, %c0_i32_212] : memref<200x128xf32, #tpu.memory_space<any>> -> memref<1x128xf32, #tpu.memory_space<any>>
    %c10_i32_213 = arith.constant 10 : i32
    %c0_i32_214 = arith.constant 0 : i32
    %322 = tpu.memref_slice %arg3[%c10_i32_213, %c0_i32_214] : memref<40x128xf32, #tpu.memory_space<vmem>> -> memref<1x128xf32, #tpu.memory_space<vmem>>
    %323 = tpu.memref_slice %arg4[%c0_i32_210] : memref<1x!tpu.dma_semaphore, #tpu.memory_space<semaphore_mem>> -> memref<1x!tpu.dma_semaphore, #tpu.memory_space<semaphore_mem>>
    %324 = tpu.memref_squeeze %323 : memref<1x!tpu.dma_semaphore, #tpu.memory_space<semaphore_mem>> -> memref<!tpu.dma_semaphore, #tpu.memory_space<semaphore_mem>>
    tpu.wait_dma2 semaphore(%324 : memref<!tpu.dma_semaphore, #tpu.memory_space<semaphore_mem>>) src(%321 : memref<1x128xf32, #tpu.memory_space<any>>) dst(%322 : memref<1x128xf32, #tpu.memory_space<vmem>>)
    %c0_i32_215 = arith.constant 0 : i32
    %c0_i32_216 = arith.constant 0 : i32
    %c0_i32_217 = arith.constant 0 : i32
    %325 = tpu.memref_slice %arg2[%c0_i32_216, %c0_i32_217] : memref<200x128xf32, #tpu.memory_space<any>> -> memref<1x128xf32, #tpu.memory_space<any>>
    %c11_i32_218 = arith.constant 11 : i32
    %c0_i32_219 = arith.constant 0 : i32
    %326 = tpu.memref_slice %arg3[%c11_i32_218, %c0_i32_219] : memref<40x128xf32, #tpu.memory_space<vmem>> -> memref<1x128xf32, #tpu.memory_space<vmem>>
    %327 = tpu.memref_slice %arg4[%c0_i32_215] : memref<1x!tpu.dma_semaphore, #tpu.memory_space<semaphore_mem>> -> memref<1x!tpu.dma_semaphore, #tpu.memory_space<semaphore_mem>>
    %328 = tpu.memref_squeeze %327 : memref<1x!tpu.dma_semaphore, #tpu.memory_space<semaphore_mem>> -> memref<!tpu.dma_semaphore, #tpu.memory_space<semaphore_mem>>
    tpu.wait_dma2 semaphore(%328 : memref<!tpu.dma_semaphore, #tpu.memory_space<semaphore_mem>>) src(%325 : memref<1x128xf32, #tpu.memory_space<any>>) dst(%326 : memref<1x128xf32, #tpu.memory_space<vmem>>)
    %c0_i32_220 = arith.constant 0 : i32
    %c0_i32_221 = arith.constant 0 : i32
    %c0_i32_222 = arith.constant 0 : i32
    %329 = tpu.memref_slice %arg2[%c0_i32_221, %c0_i32_222] : memref<200x128xf32, #tpu.memory_space<any>> -> memref<1x128xf32, #tpu.memory_space<any>>
    %c12_i32_223 = arith.constant 12 : i32
    %c0_i32_224 = arith.constant 0 : i32
    %330 = tpu.memref_slice %arg3[%c12_i32_223, %c0_i32_224] : memref<40x128xf32, #tpu.memory_space<vmem>> -> memref<1x128xf32, #tpu.memory_space<vmem>>
    %331 = tpu.memref_slice %arg4[%c0_i32_220] : memref<1x!tpu.dma_semaphore, #tpu.memory_space<semaphore_mem>> -> memref<1x!tpu.dma_semaphore, #tpu.memory_space<semaphore_mem>>
    %332 = tpu.memref_squeeze %331 : memref<1x!tpu.dma_semaphore, #tpu.memory_space<semaphore_mem>> -> memref<!tpu.dma_semaphore, #tpu.memory_space<semaphore_mem>>
    tpu.wait_dma2 semaphore(%332 : memref<!tpu.dma_semaphore, #tpu.memory_space<semaphore_mem>>) src(%329 : memref<1x128xf32, #tpu.memory_space<any>>) dst(%330 : memref<1x128xf32, #tpu.memory_space<vmem>>)
    %c0_i32_225 = arith.constant 0 : i32
    %c0_i32_226 = arith.constant 0 : i32
    %c0_i32_227 = arith.constant 0 : i32
    %333 = tpu.memref_slice %arg2[%c0_i32_226, %c0_i32_227] : memref<200x128xf32, #tpu.memory_space<any>> -> memref<1x128xf32, #tpu.memory_space<any>>
    %c13_i32_228 = arith.constant 13 : i32
    %c0_i32_229 = arith.constant 0 : i32
    %334 = tpu.memref_slice %arg3[%c13_i32_228, %c0_i32_229] : memref<40x128xf32, #tpu.memory_space<vmem>> -> memref<1x128xf32, #tpu.memory_space<vmem>>
    %335 = tpu.memref_slice %arg4[%c0_i32_225] : memref<1x!tpu.dma_semaphore, #tpu.memory_space<semaphore_mem>> -> memref<1x!tpu.dma_semaphore, #tpu.memory_space<semaphore_mem>>
    %336 = tpu.memref_squeeze %335 : memref<1x!tpu.dma_semaphore, #tpu.memory_space<semaphore_mem>> -> memref<!tpu.dma_semaphore, #tpu.memory_space<semaphore_mem>>
    tpu.wait_dma2 semaphore(%336 : memref<!tpu.dma_semaphore, #tpu.memory_space<semaphore_mem>>) src(%333 : memref<1x128xf32, #tpu.memory_space<any>>) dst(%334 : memref<1x128xf32, #tpu.memory_space<vmem>>)
    %c0_i32_230 = arith.constant 0 : i32
    %c0_i32_231 = arith.constant 0 : i32
    %c0_i32_232 = arith.constant 0 : i32
    %337 = tpu.memref_slice %arg2[%c0_i32_231, %c0_i32_232] : memref<200x128xf32, #tpu.memory_space<any>> -> memref<1x128xf32, #tpu.memory_space<any>>
    %c14_i32_233 = arith.constant 14 : i32
    %c0_i32_234 = arith.constant 0 : i32
    %338 = tpu.memref_slice %arg3[%c14_i32_233, %c0_i32_234] : memref<40x128xf32, #tpu.memory_space<vmem>> -> memref<1x128xf32, #tpu.memory_space<vmem>>
    %339 = tpu.memref_slice %arg4[%c0_i32_230] : memref<1x!tpu.dma_semaphore, #tpu.memory_space<semaphore_mem>> -> memref<1x!tpu.dma_semaphore, #tpu.memory_space<semaphore_mem>>
    %340 = tpu.memref_squeeze %339 : memref<1x!tpu.dma_semaphore, #tpu.memory_space<semaphore_mem>> -> memref<!tpu.dma_semaphore, #tpu.memory_space<semaphore_mem>>
    tpu.wait_dma2 semaphore(%340 : memref<!tpu.dma_semaphore, #tpu.memory_space<semaphore_mem>>) src(%337 : memref<1x128xf32, #tpu.memory_space<any>>) dst(%338 : memref<1x128xf32, #tpu.memory_space<vmem>>)
    %c0_i32_235 = arith.constant 0 : i32
    %c0_i32_236 = arith.constant 0 : i32
    %c0_i32_237 = arith.constant 0 : i32
    %341 = tpu.memref_slice %arg2[%c0_i32_236, %c0_i32_237] : memref<200x128xf32, #tpu.memory_space<any>> -> memref<1x128xf32, #tpu.memory_space<any>>
    %c15_i32_238 = arith.constant 15 : i32
    %c0_i32_239 = arith.constant 0 : i32
    %342 = tpu.memref_slice %arg3[%c15_i32_238, %c0_i32_239] : memref<40x128xf32, #tpu.memory_space<vmem>> -> memref<1x128xf32, #tpu.memory_space<vmem>>
    %343 = tpu.memref_slice %arg4[%c0_i32_235] : memref<1x!tpu.dma_semaphore, #tpu.memory_space<semaphore_mem>> -> memref<1x!tpu.dma_semaphore, #tpu.memory_space<semaphore_mem>>
    %344 = tpu.memref_squeeze %343 : memref<1x!tpu.dma_semaphore, #tpu.memory_space<semaphore_mem>> -> memref<!tpu.dma_semaphore, #tpu.memory_space<semaphore_mem>>
    tpu.wait_dma2 semaphore(%344 : memref<!tpu.dma_semaphore, #tpu.memory_space<semaphore_mem>>) src(%341 : memref<1x128xf32, #tpu.memory_space<any>>) dst(%342 : memref<1x128xf32, #tpu.memory_space<vmem>>)
    %c0_i32_240 = arith.constant 0 : i32
    %c0_i32_241 = arith.constant 0 : i32
    %c0_i32_242 = arith.constant 0 : i32
    %345 = tpu.memref_slice %arg2[%c0_i32_241, %c0_i32_242] : memref<200x128xf32, #tpu.memory_space<any>> -> memref<1x128xf32, #tpu.memory_space<any>>
    %c16_i32_243 = arith.constant 16 : i32
    %c0_i32_244 = arith.constant 0 : i32
    %346 = tpu.memref_slice %arg3[%c16_i32_243, %c0_i32_244] : memref<40x128xf32, #tpu.memory_space<vmem>> -> memref<1x128xf32, #tpu.memory_space<vmem>>
    %347 = tpu.memref_slice %arg4[%c0_i32_240] : memref<1x!tpu.dma_semaphore, #tpu.memory_space<semaphore_mem>> -> memref<1x!tpu.dma_semaphore, #tpu.memory_space<semaphore_mem>>
    %348 = tpu.memref_squeeze %347 : memref<1x!tpu.dma_semaphore, #tpu.memory_space<semaphore_mem>> -> memref<!tpu.dma_semaphore, #tpu.memory_space<semaphore_mem>>
    tpu.wait_dma2 semaphore(%348 : memref<!tpu.dma_semaphore, #tpu.memory_space<semaphore_mem>>) src(%345 : memref<1x128xf32, #tpu.memory_space<any>>) dst(%346 : memref<1x128xf32, #tpu.memory_space<vmem>>)
    %c0_i32_245 = arith.constant 0 : i32
    %c0_i32_246 = arith.constant 0 : i32
    %c0_i32_247 = arith.constant 0 : i32
    %349 = tpu.memref_slice %arg2[%c0_i32_246, %c0_i32_247] : memref<200x128xf32, #tpu.memory_space<any>> -> memref<1x128xf32, #tpu.memory_space<any>>
    %c17_i32_248 = arith.constant 17 : i32
    %c0_i32_249 = arith.constant 0 : i32
    %350 = tpu.memref_slice %arg3[%c17_i32_248, %c0_i32_249] : memref<40x128xf32, #tpu.memory_space<vmem>> -> memref<1x128xf32, #tpu.memory_space<vmem>>
    %351 = tpu.memref_slice %arg4[%c0_i32_245] : memref<1x!tpu.dma_semaphore, #tpu.memory_space<semaphore_mem>> -> memref<1x!tpu.dma_semaphore, #tpu.memory_space<semaphore_mem>>
    %352 = tpu.memref_squeeze %351 : memref<1x!tpu.dma_semaphore, #tpu.memory_space<semaphore_mem>> -> memref<!tpu.dma_semaphore, #tpu.memory_space<semaphore_mem>>
    tpu.wait_dma2 semaphore(%352 : memref<!tpu.dma_semaphore, #tpu.memory_space<semaphore_mem>>) src(%349 : memref<1x128xf32, #tpu.memory_space<any>>) dst(%350 : memref<1x128xf32, #tpu.memory_space<vmem>>)
    %c0_i32_250 = arith.constant 0 : i32
    %c0_i32_251 = arith.constant 0 : i32
    %c0_i32_252 = arith.constant 0 : i32
    %353 = tpu.memref_slice %arg2[%c0_i32_251, %c0_i32_252] : memref<200x128xf32, #tpu.memory_space<any>> -> memref<1x128xf32, #tpu.memory_space<any>>
    %c18_i32_253 = arith.constant 18 : i32
    %c0_i32_254 = arith.constant 0 : i32
    %354 = tpu.memref_slice %arg3[%c18_i32_253, %c0_i32_254] : memref<40x128xf32, #tpu.memory_space<vmem>> -> memref<1x128xf32, #tpu.memory_space<vmem>>
    %355 = tpu.memref_slice %arg4[%c0_i32_250] : memref<1x!tpu.dma_semaphore, #tpu.memory_space<semaphore_mem>> -> memref<1x!tpu.dma_semaphore, #tpu.memory_space<semaphore_mem>>
    %356 = tpu.memref_squeeze %355 : memref<1x!tpu.dma_semaphore, #tpu.memory_space<semaphore_mem>> -> memref<!tpu.dma_semaphore, #tpu.memory_space<semaphore_mem>>
    tpu.wait_dma2 semaphore(%356 : memref<!tpu.dma_semaphore, #tpu.memory_space<semaphore_mem>>) src(%353 : memref<1x128xf32, #tpu.memory_space<any>>) dst(%354 : memref<1x128xf32, #tpu.memory_space<vmem>>)
    %c0_i32_255 = arith.constant 0 : i32
    %c0_i32_256 = arith.constant 0 : i32
    %c0_i32_257 = arith.constant 0 : i32
    %357 = tpu.memref_slice %arg2[%c0_i32_256, %c0_i32_257] : memref<200x128xf32, #tpu.memory_space<any>> -> memref<1x128xf32, #tpu.memory_space<any>>
    %c19_i32_258 = arith.constant 19 : i32
    %c0_i32_259 = arith.constant 0 : i32
    %358 = tpu.memref_slice %arg3[%c19_i32_258, %c0_i32_259] : memref<40x128xf32, #tpu.memory_space<vmem>> -> memref<1x128xf32, #tpu.memory_space<vmem>>
    %359 = tpu.memref_slice %arg4[%c0_i32_255] : memref<1x!tpu.dma_semaphore, #tpu.memory_space<semaphore_mem>> -> memref<1x!tpu.dma_semaphore, #tpu.memory_space<semaphore_mem>>
    %360 = tpu.memref_squeeze %359 : memref<1x!tpu.dma_semaphore, #tpu.memory_space<semaphore_mem>> -> memref<!tpu.dma_semaphore, #tpu.memory_space<semaphore_mem>>
    tpu.wait_dma2 semaphore(%360 : memref<!tpu.dma_semaphore, #tpu.memory_space<semaphore_mem>>) src(%357 : memref<1x128xf32, #tpu.memory_space<any>>) dst(%358 : memref<1x128xf32, #tpu.memory_space<vmem>>)
    %c0_i32_260 = arith.constant 0 : i32
    %c0_i32_261 = arith.constant 0 : i32
    %c0_i32_262 = arith.constant 0 : i32
    %361 = tpu.memref_slice %arg2[%c0_i32_261, %c0_i32_262] : memref<200x128xf32, #tpu.memory_space<any>> -> memref<1x128xf32, #tpu.memory_space<any>>
    %c20_i32_263 = arith.constant 20 : i32
    %c0_i32_264 = arith.constant 0 : i32
    %362 = tpu.memref_slice %arg3[%c20_i32_263, %c0_i32_264] : memref<40x128xf32, #tpu.memory_space<vmem>> -> memref<1x128xf32, #tpu.memory_space<vmem>>
    %363 = tpu.memref_slice %arg4[%c0_i32_260] : memref<1x!tpu.dma_semaphore, #tpu.memory_space<semaphore_mem>> -> memref<1x!tpu.dma_semaphore, #tpu.memory_space<semaphore_mem>>
    %364 = tpu.memref_squeeze %363 : memref<1x!tpu.dma_semaphore, #tpu.memory_space<semaphore_mem>> -> memref<!tpu.dma_semaphore, #tpu.memory_space<semaphore_mem>>
    tpu.wait_dma2 semaphore(%364 : memref<!tpu.dma_semaphore, #tpu.memory_space<semaphore_mem>>) src(%361 : memref<1x128xf32, #tpu.memory_space<any>>) dst(%362 : memref<1x128xf32, #tpu.memory_space<vmem>>)
    %c0_i32_265 = arith.constant 0 : i32
    %c0_i32_266 = arith.constant 0 : i32
    %c0_i32_267 = arith.constant 0 : i32
    %365 = tpu.memref_slice %arg2[%c0_i32_266, %c0_i32_267] : memref<200x128xf32, #tpu.memory_space<any>> -> memref<1x128xf32, #tpu.memory_space<any>>
    %c21_i32_268 = arith.constant 21 : i32
    %c0_i32_269 = arith.constant 0 : i32
    %366 = tpu.memref_slice %arg3[%c21_i32_268, %c0_i32_269] : memref<40x128xf32, #tpu.memory_space<vmem>> -> memref<1x128xf32, #tpu.memory_space<vmem>>
    %367 = tpu.memref_slice %arg4[%c0_i32_265] : memref<1x!tpu.dma_semaphore, #tpu.memory_space<semaphore_mem>> -> memref<1x!tpu.dma_semaphore, #tpu.memory_space<semaphore_mem>>
    %368 = tpu.memref_squeeze %367 : memref<1x!tpu.dma_semaphore, #tpu.memory_space<semaphore_mem>> -> memref<!tpu.dma_semaphore, #tpu.memory_space<semaphore_mem>>
    tpu.wait_dma2 semaphore(%368 : memref<!tpu.dma_semaphore, #tpu.memory_space<semaphore_mem>>) src(%365 : memref<1x128xf32, #tpu.memory_space<any>>) dst(%366 : memref<1x128xf32, #tpu.memory_space<vmem>>)
    %c0_i32_270 = arith.constant 0 : i32
    %c0_i32_271 = arith.constant 0 : i32
    %c0_i32_272 = arith.constant 0 : i32
    %369 = tpu.memref_slice %arg2[%c0_i32_271, %c0_i32_272] : memref<200x128xf32, #tpu.memory_space<any>> -> memref<1x128xf32, #tpu.memory_space<any>>
    %c22_i32_273 = arith.constant 22 : i32
    %c0_i32_274 = arith.constant 0 : i32
    %370 = tpu.memref_slice %arg3[%c22_i32_273, %c0_i32_274] : memref<40x128xf32, #tpu.memory_space<vmem>> -> memref<1x128xf32, #tpu.memory_space<vmem>>
    %371 = tpu.memref_slice %arg4[%c0_i32_270] : memref<1x!tpu.dma_semaphore, #tpu.memory_space<semaphore_mem>> -> memref<1x!tpu.dma_semaphore, #tpu.memory_space<semaphore_mem>>
    %372 = tpu.memref_squeeze %371 : memref<1x!tpu.dma_semaphore, #tpu.memory_space<semaphore_mem>> -> memref<!tpu.dma_semaphore, #tpu.memory_space<semaphore_mem>>
    tpu.wait_dma2 semaphore(%372 : memref<!tpu.dma_semaphore, #tpu.memory_space<semaphore_mem>>) src(%369 : memref<1x128xf32, #tpu.memory_space<any>>) dst(%370 : memref<1x128xf32, #tpu.memory_space<vmem>>)
    %c0_i32_275 = arith.constant 0 : i32
    %c0_i32_276 = arith.constant 0 : i32
    %c0_i32_277 = arith.constant 0 : i32
    %373 = tpu.memref_slice %arg2[%c0_i32_276, %c0_i32_277] : memref<200x128xf32, #tpu.memory_space<any>> -> memref<1x128xf32, #tpu.memory_space<any>>
    %c23_i32_278 = arith.constant 23 : i32
    %c0_i32_279 = arith.constant 0 : i32
    %374 = tpu.memref_slice %arg3[%c23_i32_278, %c0_i32_279] : memref<40x128xf32, #tpu.memory_space<vmem>> -> memref<1x128xf32, #tpu.memory_space<vmem>>
    %375 = tpu.memref_slice %arg4[%c0_i32_275] : memref<1x!tpu.dma_semaphore, #tpu.memory_space<semaphore_mem>> -> memref<1x!tpu.dma_semaphore, #tpu.memory_space<semaphore_mem>>
    %376 = tpu.memref_squeeze %375 : memref<1x!tpu.dma_semaphore, #tpu.memory_space<semaphore_mem>> -> memref<!tpu.dma_semaphore, #tpu.memory_space<semaphore_mem>>
    tpu.wait_dma2 semaphore(%376 : memref<!tpu.dma_semaphore, #tpu.memory_space<semaphore_mem>>) src(%373 : memref<1x128xf32, #tpu.memory_space<any>>) dst(%374 : memref<1x128xf32, #tpu.memory_space<vmem>>)
    %c0_i32_280 = arith.constant 0 : i32
    %c0_i32_281 = arith.constant 0 : i32
    %c0_i32_282 = arith.constant 0 : i32
    %377 = tpu.memref_slice %arg2[%c0_i32_281, %c0_i32_282] : memref<200x128xf32, #tpu.memory_space<any>> -> memref<1x128xf32, #tpu.memory_space<any>>
    %c24_i32_283 = arith.constant 24 : i32
    %c0_i32_284 = arith.constant 0 : i32
    %378 = tpu.memref_slice %arg3[%c24_i32_283, %c0_i32_284] : memref<40x128xf32, #tpu.memory_space<vmem>> -> memref<1x128xf32, #tpu.memory_space<vmem>>
    %379 = tpu.memref_slice %arg4[%c0_i32_280] : memref<1x!tpu.dma_semaphore, #tpu.memory_space<semaphore_mem>> -> memref<1x!tpu.dma_semaphore, #tpu.memory_space<semaphore_mem>>
    %380 = tpu.memref_squeeze %379 : memref<1x!tpu.dma_semaphore, #tpu.memory_space<semaphore_mem>> -> memref<!tpu.dma_semaphore, #tpu.memory_space<semaphore_mem>>
    tpu.wait_dma2 semaphore(%380 : memref<!tpu.dma_semaphore, #tpu.memory_space<semaphore_mem>>) src(%377 : memref<1x128xf32, #tpu.memory_space<any>>) dst(%378 : memref<1x128xf32, #tpu.memory_space<vmem>>)
    %c0_i32_285 = arith.constant 0 : i32
    %c0_i32_286 = arith.constant 0 : i32
    %c0_i32_287 = arith.constant 0 : i32
    %381 = tpu.memref_slice %arg2[%c0_i32_286, %c0_i32_287] : memref<200x128xf32, #tpu.memory_space<any>> -> memref<1x128xf32, #tpu.memory_space<any>>
    %c25_i32_288 = arith.constant 25 : i32
    %c0_i32_289 = arith.constant 0 : i32
    %382 = tpu.memref_slice %arg3[%c25_i32_288, %c0_i32_289] : memref<40x128xf32, #tpu.memory_space<vmem>> -> memref<1x128xf32, #tpu.memory_space<vmem>>
    %383 = tpu.memref_slice %arg4[%c0_i32_285] : memref<1x!tpu.dma_semaphore, #tpu.memory_space<semaphore_mem>> -> memref<1x!tpu.dma_semaphore, #tpu.memory_space<semaphore_mem>>
    %384 = tpu.memref_squeeze %383 : memref<1x!tpu.dma_semaphore, #tpu.memory_space<semaphore_mem>> -> memref<!tpu.dma_semaphore, #tpu.memory_space<semaphore_mem>>
    tpu.wait_dma2 semaphore(%384 : memref<!tpu.dma_semaphore, #tpu.memory_space<semaphore_mem>>) src(%381 : memref<1x128xf32, #tpu.memory_space<any>>) dst(%382 : memref<1x128xf32, #tpu.memory_space<vmem>>)
    %c0_i32_290 = arith.constant 0 : i32
    %c0_i32_291 = arith.constant 0 : i32
    %c0_i32_292 = arith.constant 0 : i32
    %385 = tpu.memref_slice %arg2[%c0_i32_291, %c0_i32_292] : memref<200x128xf32, #tpu.memory_space<any>> -> memref<1x128xf32, #tpu.memory_space<any>>
    %c26_i32_293 = arith.constant 26 : i32
    %c0_i32_294 = arith.constant 0 : i32
    %386 = tpu.memref_slice %arg3[%c26_i32_293, %c0_i32_294] : memref<40x128xf32, #tpu.memory_space<vmem>> -> memref<1x128xf32, #tpu.memory_space<vmem>>
    %387 = tpu.memref_slice %arg4[%c0_i32_290] : memref<1x!tpu.dma_semaphore, #tpu.memory_space<semaphore_mem>> -> memref<1x!tpu.dma_semaphore, #tpu.memory_space<semaphore_mem>>
    %388 = tpu.memref_squeeze %387 : memref<1x!tpu.dma_semaphore, #tpu.memory_space<semaphore_mem>> -> memref<!tpu.dma_semaphore, #tpu.memory_space<semaphore_mem>>
    tpu.wait_dma2 semaphore(%388 : memref<!tpu.dma_semaphore, #tpu.memory_space<semaphore_mem>>) src(%385 : memref<1x128xf32, #tpu.memory_space<any>>) dst(%386 : memref<1x128xf32, #tpu.memory_space<vmem>>)
    %c0_i32_295 = arith.constant 0 : i32
    %c0_i32_296 = arith.constant 0 : i32
    %c0_i32_297 = arith.constant 0 : i32
    %389 = tpu.memref_slice %arg2[%c0_i32_296, %c0_i32_297] : memref<200x128xf32, #tpu.memory_space<any>> -> memref<1x128xf32, #tpu.memory_space<any>>
    %c27_i32_298 = arith.constant 27 : i32
    %c0_i32_299 = arith.constant 0 : i32
    %390 = tpu.memref_slice %arg3[%c27_i32_298, %c0_i32_299] : memref<40x128xf32, #tpu.memory_space<vmem>> -> memref<1x128xf32, #tpu.memory_space<vmem>>
    %391 = tpu.memref_slice %arg4[%c0_i32_295] : memref<1x!tpu.dma_semaphore, #tpu.memory_space<semaphore_mem>> -> memref<1x!tpu.dma_semaphore, #tpu.memory_space<semaphore_mem>>
    %392 = tpu.memref_squeeze %391 : memref<1x!tpu.dma_semaphore, #tpu.memory_space<semaphore_mem>> -> memref<!tpu.dma_semaphore, #tpu.memory_space<semaphore_mem>>
    tpu.wait_dma2 semaphore(%392 : memref<!tpu.dma_semaphore, #tpu.memory_space<semaphore_mem>>) src(%389 : memref<1x128xf32, #tpu.memory_space<any>>) dst(%390 : memref<1x128xf32, #tpu.memory_space<vmem>>)
    %c0_i32_300 = arith.constant 0 : i32
    %c0_i32_301 = arith.constant 0 : i32
    %c0_i32_302 = arith.constant 0 : i32
    %393 = tpu.memref_slice %arg2[%c0_i32_301, %c0_i32_302] : memref<200x128xf32, #tpu.memory_space<any>> -> memref<1x128xf32, #tpu.memory_space<any>>
    %c28_i32_303 = arith.constant 28 : i32
    %c0_i32_304 = arith.constant 0 : i32
    %394 = tpu.memref_slice %arg3[%c28_i32_303, %c0_i32_304] : memref<40x128xf32, #tpu.memory_space<vmem>> -> memref<1x128xf32, #tpu.memory_space<vmem>>
    %395 = tpu.memref_slice %arg4[%c0_i32_300] : memref<1x!tpu.dma_semaphore, #tpu.memory_space<semaphore_mem>> -> memref<1x!tpu.dma_semaphore, #tpu.memory_space<semaphore_mem>>
    %396 = tpu.memref_squeeze %395 : memref<1x!tpu.dma_semaphore, #tpu.memory_space<semaphore_mem>> -> memref<!tpu.dma_semaphore, #tpu.memory_space<semaphore_mem>>
    tpu.wait_dma2 semaphore(%396 : memref<!tpu.dma_semaphore, #tpu.memory_space<semaphore_mem>>) src(%393 : memref<1x128xf32, #tpu.memory_space<any>>) dst(%394 : memref<1x128xf32, #tpu.memory_space<vmem>>)
    %c0_i32_305 = arith.constant 0 : i32
    %c0_i32_306 = arith.constant 0 : i32
    %c0_i32_307 = arith.constant 0 : i32
    %397 = tpu.memref_slice %arg2[%c0_i32_306, %c0_i32_307] : memref<200x128xf32, #tpu.memory_space<any>> -> memref<1x128xf32, #tpu.memory_space<any>>
    %c29_i32_308 = arith.constant 29 : i32
    %c0_i32_309 = arith.constant 0 : i32
    %398 = tpu.memref_slice %arg3[%c29_i32_308, %c0_i32_309] : memref<40x128xf32, #tpu.memory_space<vmem>> -> memref<1x128xf32, #tpu.memory_space<vmem>>
    %399 = tpu.memref_slice %arg4[%c0_i32_305] : memref<1x!tpu.dma_semaphore, #tpu.memory_space<semaphore_mem>> -> memref<1x!tpu.dma_semaphore, #tpu.memory_space<semaphore_mem>>
    %400 = tpu.memref_squeeze %399 : memref<1x!tpu.dma_semaphore, #tpu.memory_space<semaphore_mem>> -> memref<!tpu.dma_semaphore, #tpu.memory_space<semaphore_mem>>
    tpu.wait_dma2 semaphore(%400 : memref<!tpu.dma_semaphore, #tpu.memory_space<semaphore_mem>>) src(%397 : memref<1x128xf32, #tpu.memory_space<any>>) dst(%398 : memref<1x128xf32, #tpu.memory_space<vmem>>)
    %c0_i32_310 = arith.constant 0 : i32
    %c0_i32_311 = arith.constant 0 : i32
    %c0_i32_312 = arith.constant 0 : i32
    %401 = tpu.memref_slice %arg2[%c0_i32_311, %c0_i32_312] : memref<200x128xf32, #tpu.memory_space<any>> -> memref<1x128xf32, #tpu.memory_space<any>>
    %c30_i32_313 = arith.constant 30 : i32
    %c0_i32_314 = arith.constant 0 : i32
    %402 = tpu.memref_slice %arg3[%c30_i32_313, %c0_i32_314] : memref<40x128xf32, #tpu.memory_space<vmem>> -> memref<1x128xf32, #tpu.memory_space<vmem>>
    %403 = tpu.memref_slice %arg4[%c0_i32_310] : memref<1x!tpu.dma_semaphore, #tpu.memory_space<semaphore_mem>> -> memref<1x!tpu.dma_semaphore, #tpu.memory_space<semaphore_mem>>
    %404 = tpu.memref_squeeze %403 : memref<1x!tpu.dma_semaphore, #tpu.memory_space<semaphore_mem>> -> memref<!tpu.dma_semaphore, #tpu.memory_space<semaphore_mem>>
    tpu.wait_dma2 semaphore(%404 : memref<!tpu.dma_semaphore, #tpu.memory_space<semaphore_mem>>) src(%401 : memref<1x128xf32, #tpu.memory_space<any>>) dst(%402 : memref<1x128xf32, #tpu.memory_space<vmem>>)
    %c0_i32_315 = arith.constant 0 : i32
    %c0_i32_316 = arith.constant 0 : i32
    %c0_i32_317 = arith.constant 0 : i32
    %405 = tpu.memref_slice %arg2[%c0_i32_316, %c0_i32_317] : memref<200x128xf32, #tpu.memory_space<any>> -> memref<1x128xf32, #tpu.memory_space<any>>
    %c31_i32_318 = arith.constant 31 : i32
    %c0_i32_319 = arith.constant 0 : i32
    %406 = tpu.memref_slice %arg3[%c31_i32_318, %c0_i32_319] : memref<40x128xf32, #tpu.memory_space<vmem>> -> memref<1x128xf32, #tpu.memory_space<vmem>>
    %407 = tpu.memref_slice %arg4[%c0_i32_315] : memref<1x!tpu.dma_semaphore, #tpu.memory_space<semaphore_mem>> -> memref<1x!tpu.dma_semaphore, #tpu.memory_space<semaphore_mem>>
    %408 = tpu.memref_squeeze %407 : memref<1x!tpu.dma_semaphore, #tpu.memory_space<semaphore_mem>> -> memref<!tpu.dma_semaphore, #tpu.memory_space<semaphore_mem>>
    tpu.wait_dma2 semaphore(%408 : memref<!tpu.dma_semaphore, #tpu.memory_space<semaphore_mem>>) src(%405 : memref<1x128xf32, #tpu.memory_space<any>>) dst(%406 : memref<1x128xf32, #tpu.memory_space<vmem>>)
    %c0_i32_320 = arith.constant 0 : i32
    %c0_i32_321 = arith.constant 0 : i32
    %c0_i32_322 = arith.constant 0 : i32
    %409 = tpu.memref_slice %arg2[%c0_i32_321, %c0_i32_322] : memref<200x128xf32, #tpu.memory_space<any>> -> memref<1x128xf32, #tpu.memory_space<any>>
    %c32_i32_323 = arith.constant 32 : i32
    %c0_i32_324 = arith.constant 0 : i32
    %410 = tpu.memref_slice %arg3[%c32_i32_323, %c0_i32_324] : memref<40x128xf32, #tpu.memory_space<vmem>> -> memref<1x128xf32, #tpu.memory_space<vmem>>
    %411 = tpu.memref_slice %arg4[%c0_i32_320] : memref<1x!tpu.dma_semaphore, #tpu.memory_space<semaphore_mem>> -> memref<1x!tpu.dma_semaphore, #tpu.memory_space<semaphore_mem>>
    %412 = tpu.memref_squeeze %411 : memref<1x!tpu.dma_semaphore, #tpu.memory_space<semaphore_mem>> -> memref<!tpu.dma_semaphore, #tpu.memory_space<semaphore_mem>>
    tpu.wait_dma2 semaphore(%412 : memref<!tpu.dma_semaphore, #tpu.memory_space<semaphore_mem>>) src(%409 : memref<1x128xf32, #tpu.memory_space<any>>) dst(%410 : memref<1x128xf32, #tpu.memory_space<vmem>>)
    %c0_i32_325 = arith.constant 0 : i32
    %c0_i32_326 = arith.constant 0 : i32
    %c0_i32_327 = arith.constant 0 : i32
    %413 = tpu.memref_slice %arg2[%c0_i32_326, %c0_i32_327] : memref<200x128xf32, #tpu.memory_space<any>> -> memref<1x128xf32, #tpu.memory_space<any>>
    %c33_i32_328 = arith.constant 33 : i32
    %c0_i32_329 = arith.constant 0 : i32
    %414 = tpu.memref_slice %arg3[%c33_i32_328, %c0_i32_329] : memref<40x128xf32, #tpu.memory_space<vmem>> -> memref<1x128xf32, #tpu.memory_space<vmem>>
    %415 = tpu.memref_slice %arg4[%c0_i32_325] : memref<1x!tpu.dma_semaphore, #tpu.memory_space<semaphore_mem>> -> memref<1x!tpu.dma_semaphore, #tpu.memory_space<semaphore_mem>>
    %416 = tpu.memref_squeeze %415 : memref<1x!tpu.dma_semaphore, #tpu.memory_space<semaphore_mem>> -> memref<!tpu.dma_semaphore, #tpu.memory_space<semaphore_mem>>
    tpu.wait_dma2 semaphore(%416 : memref<!tpu.dma_semaphore, #tpu.memory_space<semaphore_mem>>) src(%413 : memref<1x128xf32, #tpu.memory_space<any>>) dst(%414 : memref<1x128xf32, #tpu.memory_space<vmem>>)
    %c0_i32_330 = arith.constant 0 : i32
    %c0_i32_331 = arith.constant 0 : i32
    %c0_i32_332 = arith.constant 0 : i32
    %417 = tpu.memref_slice %arg2[%c0_i32_331, %c0_i32_332] : memref<200x128xf32, #tpu.memory_space<any>> -> memref<1x128xf32, #tpu.memory_space<any>>
    %c34_i32_333 = arith.constant 34 : i32
    %c0_i32_334 = arith.constant 0 : i32
    %418 = tpu.memref_slice %arg3[%c34_i32_333, %c0_i32_334] : memref<40x128xf32, #tpu.memory_space<vmem>> -> memref<1x128xf32, #tpu.memory_space<vmem>>
    %419 = tpu.memref_slice %arg4[%c0_i32_330] : memref<1x!tpu.dma_semaphore, #tpu.memory_space<semaphore_mem>> -> memref<1x!tpu.dma_semaphore, #tpu.memory_space<semaphore_mem>>
    %420 = tpu.memref_squeeze %419 : memref<1x!tpu.dma_semaphore, #tpu.memory_space<semaphore_mem>> -> memref<!tpu.dma_semaphore, #tpu.memory_space<semaphore_mem>>
    tpu.wait_dma2 semaphore(%420 : memref<!tpu.dma_semaphore, #tpu.memory_space<semaphore_mem>>) src(%417 : memref<1x128xf32, #tpu.memory_space<any>>) dst(%418 : memref<1x128xf32, #tpu.memory_space<vmem>>)
    %c0_i32_335 = arith.constant 0 : i32
    %c0_i32_336 = arith.constant 0 : i32
    %c0_i32_337 = arith.constant 0 : i32
    %421 = tpu.memref_slice %arg2[%c0_i32_336, %c0_i32_337] : memref<200x128xf32, #tpu.memory_space<any>> -> memref<1x128xf32, #tpu.memory_space<any>>
    %c35_i32_338 = arith.constant 35 : i32
    %c0_i32_339 = arith.constant 0 : i32
    %422 = tpu.memref_slice %arg3[%c35_i32_338, %c0_i32_339] : memref<40x128xf32, #tpu.memory_space<vmem>> -> memref<1x128xf32, #tpu.memory_space<vmem>>
    %423 = tpu.memref_slice %arg4[%c0_i32_335] : memref<1x!tpu.dma_semaphore, #tpu.memory_space<semaphore_mem>> -> memref<1x!tpu.dma_semaphore, #tpu.memory_space<semaphore_mem>>
    %424 = tpu.memref_squeeze %423 : memref<1x!tpu.dma_semaphore, #tpu.memory_space<semaphore_mem>> -> memref<!tpu.dma_semaphore, #tpu.memory_space<semaphore_mem>>
    tpu.wait_dma2 semaphore(%424 : memref<!tpu.dma_semaphore, #tpu.memory_space<semaphore_mem>>) src(%421 : memref<1x128xf32, #tpu.memory_space<any>>) dst(%422 : memref<1x128xf32, #tpu.memory_space<vmem>>)
    %c0_i32_340 = arith.constant 0 : i32
    %c0_i32_341 = arith.constant 0 : i32
    %c0_i32_342 = arith.constant 0 : i32
    %425 = tpu.memref_slice %arg2[%c0_i32_341, %c0_i32_342] : memref<200x128xf32, #tpu.memory_space<any>> -> memref<1x128xf32, #tpu.memory_space<any>>
    %c36_i32_343 = arith.constant 36 : i32
    %c0_i32_344 = arith.constant 0 : i32
    %426 = tpu.memref_slice %arg3[%c36_i32_343, %c0_i32_344] : memref<40x128xf32, #tpu.memory_space<vmem>> -> memref<1x128xf32, #tpu.memory_space<vmem>>
    %427 = tpu.memref_slice %arg4[%c0_i32_340] : memref<1x!tpu.dma_semaphore, #tpu.memory_space<semaphore_mem>> -> memref<1x!tpu.dma_semaphore, #tpu.memory_space<semaphore_mem>>
    %428 = tpu.memref_squeeze %427 : memref<1x!tpu.dma_semaphore, #tpu.memory_space<semaphore_mem>> -> memref<!tpu.dma_semaphore, #tpu.memory_space<semaphore_mem>>
    tpu.wait_dma2 semaphore(%428 : memref<!tpu.dma_semaphore, #tpu.memory_space<semaphore_mem>>) src(%425 : memref<1x128xf32, #tpu.memory_space<any>>) dst(%426 : memref<1x128xf32, #tpu.memory_space<vmem>>)
    %c0_i32_345 = arith.constant 0 : i32
    %c0_i32_346 = arith.constant 0 : i32
    %c0_i32_347 = arith.constant 0 : i32
    %429 = tpu.memref_slice %arg2[%c0_i32_346, %c0_i32_347] : memref<200x128xf32, #tpu.memory_space<any>> -> memref<1x128xf32, #tpu.memory_space<any>>
    %c37_i32_348 = arith.constant 37 : i32
    %c0_i32_349 = arith.constant 0 : i32
    %430 = tpu.memref_slice %arg3[%c37_i32_348, %c0_i32_349] : memref<40x128xf32, #tpu.memory_space<vmem>> -> memref<1x128xf32, #tpu.memory_space<vmem>>
    %431 = tpu.memref_slice %arg4[%c0_i32_345] : memref<1x!tpu.dma_semaphore, #tpu.memory_space<semaphore_mem>> -> memref<1x!tpu.dma_semaphore, #tpu.memory_space<semaphore_mem>>
    %432 = tpu.memref_squeeze %431 : memref<1x!tpu.dma_semaphore, #tpu.memory_space<semaphore_mem>> -> memref<!tpu.dma_semaphore, #tpu.memory_space<semaphore_mem>>
    tpu.wait_dma2 semaphore(%432 : memref<!tpu.dma_semaphore, #tpu.memory_space<semaphore_mem>>) src(%429 : memref<1x128xf32, #tpu.memory_space<any>>) dst(%430 : memref<1x128xf32, #tpu.memory_space<vmem>>)
    %c0_i32_350 = arith.constant 0 : i32
    %c0_i32_351 = arith.constant 0 : i32
    %c0_i32_352 = arith.constant 0 : i32
    %433 = tpu.memref_slice %arg2[%c0_i32_351, %c0_i32_352] : memref<200x128xf32, #tpu.memory_space<any>> -> memref<1x128xf32, #tpu.memory_space<any>>
    %c38_i32_353 = arith.constant 38 : i32
    %c0_i32_354 = arith.constant 0 : i32
    %434 = tpu.memref_slice %arg3[%c38_i32_353, %c0_i32_354] : memref<40x128xf32, #tpu.memory_space<vmem>> -> memref<1x128xf32, #tpu.memory_space<vmem>>
    %435 = tpu.memref_slice %arg4[%c0_i32_350] : memref<1x!tpu.dma_semaphore, #tpu.memory_space<semaphore_mem>> -> memref<1x!tpu.dma_semaphore, #tpu.memory_space<semaphore_mem>>
    %436 = tpu.memref_squeeze %435 : memref<1x!tpu.dma_semaphore, #tpu.memory_space<semaphore_mem>> -> memref<!tpu.dma_semaphore, #tpu.memory_space<semaphore_mem>>
    tpu.wait_dma2 semaphore(%436 : memref<!tpu.dma_semaphore, #tpu.memory_space<semaphore_mem>>) src(%433 : memref<1x128xf32, #tpu.memory_space<any>>) dst(%434 : memref<1x128xf32, #tpu.memory_space<vmem>>)
    %c0_i32_355 = arith.constant 0 : i32
    %c0_i32_356 = arith.constant 0 : i32
    %c0_i32_357 = arith.constant 0 : i32
    %437 = tpu.memref_slice %arg2[%c0_i32_356, %c0_i32_357] : memref<200x128xf32, #tpu.memory_space<any>> -> memref<1x128xf32, #tpu.memory_space<any>>
    %c39_i32_358 = arith.constant 39 : i32
    %c0_i32_359 = arith.constant 0 : i32
    %438 = tpu.memref_slice %arg3[%c39_i32_358, %c0_i32_359] : memref<40x128xf32, #tpu.memory_space<vmem>> -> memref<1x128xf32, #tpu.memory_space<vmem>>
    %439 = tpu.memref_slice %arg4[%c0_i32_355] : memref<1x!tpu.dma_semaphore, #tpu.memory_space<semaphore_mem>> -> memref<1x!tpu.dma_semaphore, #tpu.memory_space<semaphore_mem>>
    %440 = tpu.memref_squeeze %439 : memref<1x!tpu.dma_semaphore, #tpu.memory_space<semaphore_mem>> -> memref<!tpu.dma_semaphore, #tpu.memory_space<semaphore_mem>>
    tpu.wait_dma2 semaphore(%440 : memref<!tpu.dma_semaphore, #tpu.memory_space<semaphore_mem>>) src(%437 : memref<1x128xf32, #tpu.memory_space<any>>) dst(%438 : memref<1x128xf32, #tpu.memory_space<vmem>>)
    return
  }
  func.func @transform_1(%arg0: i32, %arg1: memref<80xi32, #tpu.memory_space<smem>>) -> (i32, i32) {
    %c0_i32 = arith.constant 0 : i32
    %c0_i32_0 = arith.constant 0 : i32
    return %arg0, %c0_i32 : i32, i32
  }
}

</mosaic_0001>

<bundles_post_ra>
// kernel: tpu_custom_call.1
= control target key start
LH: loop header
LB: loop body
LE: loop exit
PB: predicated region body
PF: predicated region fallthrough
CT: control target
= control target key end

     0   :  { %s1948_s9 = smov [#allocation4]   ;;  %s2711_s0 = inlined_call_operand.hbm [shape: s32[80], index: 0, kind: input, shape index: {}]   ;;  %s2712_s1 = inlined_call_operand.hbm [shape: f32[200,128], index: 1, kind: input, shape index: {}]   ;;  %s2713_s2 = inlined_call_operand.hbm [shape: f32[80,128], index: 2, kind: output, shape index: {}]  }
   0x1   :  { %8 = dma.hbm_to_smem %s2711_s0, 16, %s1948_s9, [#allocation3] }
   0x2   :  { %1928 = dma.done.wait [#allocation3], 16 }
   0x3   :  { %1929 = vsyncadd [#allocation3], 4294967280 }
   0x4   :  { %10 = sfence }
   0x5   :  { %11 = vsyncpa [#allocation6], 0 }
   0x6   :  { %13 = vsyncpa [#allocation6 + $0x1], 0  ;;  %s1970_s12 = smov 0   ;;  %s1972_s13 = smov 0  }
   0x7   :  { %s1974_s14 = smov 0  }
   0x8 LB: > { %s919_s0 = sadd.s32 4294967295, %s1946_s14   ;;  %s1987_s15 = sadd.s32 1, %s1946_s14   ;;  %s1946_s14 = sphi %s1974_s14, %s2722_s14   ;;  %s1942_s13 = sphi %s1972_s13, %s2721_s13   ;;  %s1938_s12 = sphi %s1970_s12, %s2720_s12  }
   0x9   : > { %s22_s16 = ssub.s32 %s1946_s14, %s1987_s15  ;;  %s25_s17 = sadd.s32 1, %s1942_s13 }
   0xa   : > { %p23_p0 = scmp.eq.s32.totalorder %s22_s16, 0  ;;  %p920_p1 = scmp.ne.s32.totalorder %s22_s16, 0 }
   0xb   : > { %p29_p2 = scmp.eq.s32.totalorder %s1946_s14, 1  ;;  %p34_p3 = scmp.ne.s32.totalorder %s1942_s13, %s1938_s12 }
   0xc   : > { %s1996_s18 = scalar_select %p23_p0, %s1942_s13, %s25_s17  }
   0xd   : > { %p1998_p4 = por %p920_p1, %p29_p2  ;;  %p35_p5 = scmp.eq.s32.totalorder %s919_s0, 1 }
   0xe   : > { %2715 = sst [smem:[#allocation92_spill]] %s1996_s18  ;;  %p921_p7 = scmp.ge.s32.totalorder %s1946_s14, 2 }
   0xf   : > { %p2002_p6 = por %p35_p5, %p34_p3  ;;  %s2714_s21 = sand.u32 (!%p921_p7), 1, %s1942_s13  }
  0x10   : > { %44 = sbr.rel (%p921_p7) target bundleno = 858 (0x35a), region = 12 }
  0x11   : > { %s2009_s22 = smul.u32 (!%p921_p7), 40, %s1946_s14 }
  0x12   : > { %s967_s23 = smul.u32 (!%p921_p7), 40, %s2714_s21 }
  0x13   : > { %s54_s24 = sld [smem:[#allocation4 + %s2009_s22]] (!%p921_p7)  ;;  %s68_s25 = sadd.s32 (!%p921_p7), 1, %s2009_s22 }
  0x14   : > { %s2015_s26 = sld [smem:[#allocation4 + %s68_s25]] (!%p921_p7)  ;;  %s2017_s27 = scalar_lea.vmem (!%p921_p7), [#allocation5], %s967_s23 }
  0x15   : > { %s64_s28 = sshll.u32 %s2017_s27, 4  ;;  %s72_s29 = scalar_lea.vmem %s2017_s27, 1 [#allocation5]  ;;  %s2021_s28 = int_to_ptr.vmem [resolvable:$true] %s64_s28 }
  0x16   : > { %s80_s30 = sshll.u32 %s72_s29, 4  ;;  %s84_s3 = sadd.s32 2, %s2009_s22  ;;  %s2023_s30 = int_to_ptr.vmem [resolvable:$true] %s80_s30 }
  0x17   : > { %s2026_s4 = sld [smem:[#allocation4 + %s84_s3]]  ;;  %s88_s5 = scalar_lea.vmem %s2017_s27, 2 [#allocation5] }
  0x18   : > { %s96_s7 = sshll.u32 %s88_s5, 4  ;;  %s2036_s23 = scalar_lea.hbm %s2712_s1, 3200  ;;  %s2059_s7 = int_to_ptr.vmem [resolvable:$true] %s96_s7 }
  0x19   : > { %s922_s6 = sshll.u32 %s54_s24, 4 }
  0x1a   : > { %s56_s10 = scalar_lea.hbm %s2712_s1, %s922_s6  ;;  %s923_s11 = sshll.u32 %s2015_s26, 4 }
  0x1b   : > { %s1010_s0 = scalar_lea.hbm %s56_s10, 16  ;;  %p1013_p9 = scmp.lt.s32.totalorder %s56_s10, %s2712_s1 }
  0x1c   : > { %p1011_p8 = scmp.ne.s32.totalorder %s56_s10, %s1010_s0  ;;  %p1014_p10 = scmp.lt.s32.totalorder %s2036_s23, %s1010_s0 }
  0x1e   : > { %p1015_p11 = por %p1014_p10, %p1013_p9 }
  0x20   : > { %p1016_p12 = pnand %p1015_p11, %p1011_p8 }
  0x22   : > { %1019 = shalt.err (!%p1016_p12)  }
  0x23   : > { %s1020_s24 = scalar_lea.vmem %s2021_s28, 16  ;;  %s1949_s26 = smov [#allocation5]  }
  0x24   : > { %p1021_p13 = scmp.ne.s32.totalorder %s2021_s28, %s1020_s24  ;;  %s1022_s3 = sshll.u32 %s1949_s26, 4  ;;  %s2044_s3 = int_to_ptr.vmem [resolvable:$false] %s1022_s3 }
  0x25   : > { %s2047_s5 = scalar_lea.vmem %s2044_s3, 1280  ;;  %p1025_p0 = scmp.lt.s32.totalorder %s2021_s28, %s2044_s3 }
  0x26   : > { %p1026_p1 = scmp.lt.s32.totalorder %s2047_s5, %s1020_s24 }
  0x28   : > { %p1027_p2 = por %p1026_p1, %p1025_p0 }
  0x2a   : > { %p1028_p3 = pnand %p1027_p2, %p1021_p13 }
  0x2c   : > { %1031 = shalt.err (!%p1028_p3)  }
  0x2d   : > { %67 = dma.hbm_to_vmem [thread:$0]  %s56_s10, 16, %s2021_s28, [#allocation2] }
  0x2e   : > { %s71_s9 = scalar_lea.hbm %s2712_s1, %s923_s11 }
  0x2f   : > { %s1032_s0 = scalar_lea.hbm %s71_s9, 16  ;;  %p1035_p7 = scmp.lt.s32.totalorder %s71_s9, %s2712_s1 }
  0x30   : > { %p1033_p5 = scmp.ne.s32.totalorder %s71_s9, %s1032_s0  ;;  %p1036_p8 = scmp.lt.s32.totalorder %s2036_s23, %s1032_s0 }
  0x32   : > { %p1037_p9 = por %p1036_p8, %p1035_p7 }
  0x34   : > { %p1038_p10 = pnand %p1037_p9, %p1033_p5 }
  0x36   : > { %1041 = shalt.err (!%p1038_p10)  }
  0x37   : > { %s1042_s10 = scalar_lea.vmem %s2023_s30, 16  ;;  %p1047_p12 = scmp.lt.s32.totalorder %s2023_s30, %s2044_s3 }
  0x38   : > { %p1043_p11 = scmp.ne.s32.totalorder %s2023_s30, %s1042_s10  ;;  %p1048_p13 = scmp.lt.s32.totalorder %s2047_s5, %s1042_s10 }
  0x3a   : > { %p1049_p1 = por %p1048_p13, %p1047_p12 }
  0x3c   : > { %p1050_p2 = pnand %p1049_p1, %p1043_p11 }
  0x3e   : > { %1053 = shalt.err (!%p1050_p2)  }
  0x3f   : > { %83 = dma.hbm_to_vmem [thread:$0]  %s71_s9, 16, %s2023_s30, [#allocation2] }
  0x40   : > { %s924_s11 = sshll.u32 %s2026_s4, 4  ;;  %s100_s25 = sadd.s32 3, %s2009_s22 }
  0x41   : > { %s87_s26 = scalar_lea.hbm %s2712_s1, %s924_s11  ;;  %s101_s6 = sld [smem:[#allocation4 + %s100_s25]] }
  0x42   : > { %s1054_s8 = scalar_lea.hbm %s87_s26, 16  ;;  %p1057_p5 = scmp.lt.s32.totalorder %s87_s26, %s2712_s1 }
  0x43   : > { %p1055_p3 = scmp.ne.s32.totalorder %s87_s26, %s1054_s8  ;;  %p1058_p7 = scmp.lt.s32.totalorder %s2036_s23, %s1054_s8 }
  0x45   : > { %p1059_p8 = por %p1058_p7, %p1057_p5 }
  0x47   : > { %p1060_p9 = pnand %p1059_p8, %p1055_p3 }
  0x49   : > { %1063 = shalt.err (!%p1060_p9)  }
  0x4a   : > { %s1064_s30 = scalar_lea.vmem %s2059_s7, 16  ;;  %p1069_p11 = scmp.lt.s32.totalorder %s2059_s7, %s2044_s3 }
  0x4b   : > { %p1065_p10 = scmp.ne.s32.totalorder %s2059_s7, %s1064_s30  ;;  %p1070_p12 = scmp.lt.s32.totalorder %s2047_s5, %s1064_s30 }
  0x4d   : > { %p1071_p13 = por %p1070_p12, %p1069_p11 }
  0x4f   : > { %p1072_p1 = pnand %p1071_p13, %p1065_p10 }
  0x51   : > { %1075 = shalt.err (!%p1072_p1)  }
  0x52   : > { %99 = dma.hbm_to_vmem [thread:$0]  %s87_s26, 16, %s2059_s7, [#allocation2] }
  0x53   : > { %s104_s4 = scalar_lea.vmem %s2017_s27, 3 [#allocation5]  ;;  %s116_s9 = sadd.s32 4, %s2009_s22 }
  0x54   : > { %s112_s17 = sshll.u32 %s104_s4, 4  ;;  %s117_s10 = sld [smem:[#allocation4 + %s116_s9]]  ;;  %s113_s17 = int_to_ptr.vmem [resolvable:$true] %s112_s17 }
  0x55   : > { %s120_s11 = scalar_lea.vmem %s2017_s27, 4 [#allocation5]  ;;  %s132_s29 = sadd.s32 5, %s2009_s22 }
  0x56   : > { %s128_s25 = sshll.u32 %s120_s11, 4  ;;  %s925_s24 = sshll.u32 %s101_s6, 4  ;;  %s2090_s25 = int_to_ptr.vmem [resolvable:$true] %s128_s25 }
  0x57   : > { %s103_s16 = scalar_lea.hbm %s2712_s1, %s925_s24  ;;  %s2095_s30 = sld [smem:[#allocation4 + %s132_s29]] }
  0x58   : > { %s1076_s21 = scalar_lea.hbm %s103_s16, 16  ;;  %p1079_p3 = scmp.lt.s32.totalorder %s103_s16, %s2712_s1 }
  0x59   : > { %p1077_p2 = scmp.ne.s32.totalorder %s103_s16, %s1076_s21  ;;  %p1080_p5 = scmp.lt.s32.totalorder %s2036_s23, %s1076_s21 }
  0x5b   : > { %p1081_p7 = por %p1080_p5, %p1079_p3 }
  0x5d   : > { %p1082_p8 = pnand %p1081_p7, %p1077_p2 }
  0x5f   : > { %1085 = shalt.err (!%p1082_p8)  }
  0x60   : > { %s1086_s4 = scalar_lea.vmem %s113_s17, 16  ;;  %p1091_p10 = scmp.lt.s32.totalorder %s113_s17, %s2044_s3 }
  0x61   : > { %p1087_p9 = scmp.ne.s32.totalorder %s113_s17, %s1086_s4  ;;  %p1092_p11 = scmp.lt.s32.totalorder %s2047_s5, %s1086_s4 }
  0x63   : > { %p1093_p12 = por %p1092_p11, %p1091_p10 }
  0x65   : > { %p1094_p13 = pnand %p1093_p12, %p1087_p9 }
  0x67   : > { %1097 = shalt.err (!%p1094_p13)  }
  0x68   : > { %115 = dma.hbm_to_vmem [thread:$0]  %s103_s16, 16, %s113_s17, [#allocation2] }
  0x69   : > { %s926_s6 = sshll.u32 %s117_s10, 4  ;;  %s136_s9 = scalar_lea.vmem %s2017_s27, 5 [#allocation5] }
  0x6a   : > { %s119_s21 = scalar_lea.hbm %s2712_s1, %s926_s6  ;;  %s144_s24 = sshll.u32 %s136_s9, 4  ;;  %s145_s24 = int_to_ptr.vmem [resolvable:$true] %s144_s24 }
  0x6b   : > { %s1098_s8 = scalar_lea.hbm %s119_s21, 16  ;;  %p1101_p2 = scmp.lt.s32.totalorder %s119_s21, %s2712_s1 }
  0x6c   : > { %p1099_p1 = scmp.ne.s32.totalorder %s119_s21, %s1098_s8  ;;  %p1102_p3 = scmp.lt.s32.totalorder %s2036_s23, %s1098_s8 }
  0x6e   : > { %p1103_p5 = por %p1102_p3, %p1101_p2 }
  0x70   : > { %p1104_p7 = pnand %p1103_p5, %p1099_p1 }
  0x72   : > { %1107 = shalt.err (!%p1104_p7)  }
  0x73   : > { %s1108_s17 = scalar_lea.vmem %s2090_s25, 16  ;;  %p1113_p9 = scmp.lt.s32.totalorder %s2090_s25, %s2044_s3 }
  0x74   : > { %p1109_p8 = scmp.ne.s32.totalorder %s2090_s25, %s1108_s17  ;;  %p1114_p10 = scmp.lt.s32.totalorder %s2047_s5, %s1108_s17 }
  0x76   : > { %p1115_p11 = por %p1114_p10, %p1113_p9 }
  0x78   : > { %p1116_p12 = pnand %p1115_p11, %p1109_p8 }
  0x7a   : > { %1119 = shalt.err (!%p1116_p12)  }
  0x7b   : > { %131 = dma.hbm_to_vmem [thread:$0]  %s119_s21, 16, %s2090_s25, [#allocation2] }
  0x7c   : > { %s148_s10 = sadd.s32 6, %s2009_s22  ;;  %s927_s16 = sshll.u32 %s2095_s30, 4 }
  0x7d   : > { %s149_s26 = sld [smem:[#allocation4 + %s148_s10]]  ;;  %s135_s9 = scalar_lea.hbm %s2712_s1, %s927_s16 }
  0x7e   : > { %s152_s11 = scalar_lea.vmem %s2017_s27, 6 [#allocation5]  ;;  %s1120_s29 = scalar_lea.hbm %s135_s9, 16 }
  0x7f   : > { %p1121_p13 = scmp.ne.s32.totalorder %s135_s9, %s1120_s29  ;;  %p1123_p1 = scmp.lt.s32.totalorder %s135_s9, %s2712_s1 }
  0x80   : > { %p1124_p2 = scmp.lt.s32.totalorder %s2036_s23, %s1120_s29 }
  0x82   : > { %p1125_p3 = por %p1124_p2, %p1123_p1 }
  0x84   : > { %p1126_p5 = pnand %p1125_p3, %p1121_p13 }
  0x86   : > { %1129 = shalt.err (!%p1126_p5)  }
  0x87   : > { %s1130_s25 = scalar_lea.vmem %s145_s24, 16  ;;  %p1135_p8 = scmp.lt.s32.totalorder %s145_s24, %s2044_s3 }
  0x88   : > { %p1131_p7 = scmp.ne.s32.totalorder %s145_s24, %s1130_s25  ;;  %p1136_p9 = scmp.lt.s32.totalorder %s2047_s5, %s1130_s25 }
  0x8a   : > { %p1137_p10 = por %p1136_p9, %p1135_p8 }
  0x8c   : > { %p1138_p11 = pnand %p1137_p10, %p1131_p7 }
  0x8e   : > { %1141 = shalt.err (!%p1138_p11)  }
  0x8f   : > { %147 = dma.hbm_to_vmem [thread:$0]  %s135_s9, 16, %s145_s24, [#allocation2] }
  0x90   : > { %s160_s30 = sshll.u32 %s152_s11, 4  ;;  %s164_s21 = sadd.s32 7, %s2009_s22  ;;  %s161_s30 = int_to_ptr.vmem [resolvable:$true] %s160_s30 }
  0x91   : > { %s165_s7 = sld [smem:[#allocation4 + %s164_s21]]  ;;  %s168_s17 = scalar_lea.vmem %s2017_s27, 7 [#allocation5] }
  0x92   : > { %s180_s10 = sadd.s32 8, %s2009_s22  ;;  %s928_s16 = sshll.u32 %s149_s26, 4 }
  0x93   : > { %s176_s4 = sshll.u32 %s168_s17, 4  ;;  %s151_s8 = scalar_lea.hbm %s2712_s1, %s928_s16  ;;  %s2135_s4 = int_to_ptr.vmem [resolvable:$true] %s176_s4 }
  0x94   : > { %s1142_s0 = scalar_lea.hbm %s151_s8, 16  ;;  %p1145_p13 = scmp.lt.s32.totalorder %s151_s8, %s2712_s1 }
  0x95   : > { %p1143_p12 = scmp.ne.s32.totalorder %s151_s8, %s1142_s0  ;;  %p1146_p1 = scmp.lt.s32.totalorder %s2036_s23, %s1142_s0 }
  0x97   : > { %p1147_p2 = por %p1146_p1, %p1145_p13 }
  0x99   : > { %p1148_p3 = pnand %p1147_p2, %p1143_p12 }
  0x9b   : > { %1151 = shalt.err (!%p1148_p3)  }
  0x9c   : > { %s1152_s11 = scalar_lea.vmem %s161_s30, 16  ;;  %p1157_p7 = scmp.lt.s32.totalorder %s161_s30, %s2044_s3 }
  0x9d   : > { %p1153_p5 = scmp.ne.s32.totalorder %s161_s30, %s1152_s11  ;;  %p1158_p8 = scmp.lt.s32.totalorder %s2047_s5, %s1152_s11 }
  0x9f   : > { %p1159_p9 = por %p1158_p8, %p1157_p7 }
  0xa1   : > { %p1160_p10 = pnand %p1159_p9, %p1153_p5 }
  0xa3   : > { %1163 = shalt.err (!%p1160_p10)  }
  0xa4   : > { %163 = dma.hbm_to_vmem [thread:$0]  %s151_s8, 16, %s161_s30, [#allocation2] }
  0xa5   : > { %s181_s26 = sld [smem:[#allocation4 + %s180_s10]]  ;;  %s184_s25 = scalar_lea.vmem %s2017_s27, 8 [#allocation5] }
  0xa6   : > { %s929_s21 = sshll.u32 %s165_s7, 4  ;;  %s192_s17 = sshll.u32 %s184_s25, 4  ;;  %s2147_s17 = int_to_ptr.vmem [resolvable:$true] %s192_s17 }
  0xa7   : > { %s167_s29 = scalar_lea.hbm %s2712_s1, %s929_s21 }
  0xa8   : > { %s1164_s0 = scalar_lea.hbm %s167_s29, 16  ;;  %p1167_p12 = scmp.lt.s32.totalorder %s167_s29, %s2712_s1 }
  0xa9   : > { %p1165_p11 = scmp.ne.s32.totalorder %s167_s29, %s1164_s0  ;;  %p1168_p13 = scmp.lt.s32.totalorder %s2036_s23, %s1164_s0 }
  0xab   : > { %p1169_p1 = por %p1168_p13, %p1167_p12 }
  0xad   : > { %p1170_p2 = pnand %p1169_p1, %p1165_p11 }
  0xaf   : > { %1173 = shalt.err (!%p1170_p2)  }
  0xb0   : > { %s1174_s30 = scalar_lea.vmem %s2135_s4, 16  ;;  %p1179_p5 = scmp.lt.s32.totalorder %s2135_s4, %s2044_s3 }
  0xb1   : > { %p1175_p3 = scmp.ne.s32.totalorder %s2135_s4, %s1174_s30  ;;  %p1180_p7 = scmp.lt.s32.totalorder %s2047_s5, %s1174_s30 }
  0xb3   : > { %p1181_p8 = por %p1180_p7, %p1179_p5 }
  0xb5   : > { %p1182_p9 = pnand %p1181_p8, %p1175_p3 }
  0xb7   : > { %1185 = shalt.err (!%p1182_p9)  }
  0xb8   : > { %179 = dma.hbm_to_vmem [thread:$0]  %s167_s29, 16, %s2135_s4, [#allocation2] }
  0xb9   : > { %s196_s7 = sadd.s32 9, %s2009_s22  ;;  %s200_s10 = scalar_lea.vmem %s2017_s27, 9 [#allocation5] }
  0xba   : > { %s197_s8 = sld [smem:[#allocation4 + %s196_s7]]  ;;  %s208_s11 = sshll.u32 %s200_s10, 4  ;;  %s2161_s11 = int_to_ptr.vmem [resolvable:$true] %s208_s11 }
  0xbb   : > { %s930_s25 = sshll.u32 %s181_s26, 4  ;;  %s212_s0 = sadd.s32 10, %s2009_s22 }
  0xbc   : > { %s183_s6 = scalar_lea.hbm %s2712_s1, %s930_s25 }
  0xbd   : > { %s1186_s24 = scalar_lea.hbm %s183_s6, 16  ;;  %p1189_p11 = scmp.lt.s32.totalorder %s183_s6, %s2712_s1 }
  0xbe   : > { %p1187_p10 = scmp.ne.s32.totalorder %s183_s6, %s1186_s24  ;;  %p1190_p12 = scmp.lt.s32.totalorder %s2036_s23, %s1186_s24 }
  0xc0   : > { %p1191_p13 = por %p1190_p12, %p1189_p11 }
  0xc2   : > { %p1192_p1 = pnand %p1191_p13, %p1187_p10 }
  0xc4   : > { %1195 = shalt.err (!%p1192_p1)  }
  0xc5   : > { %s1196_s4 = scalar_lea.vmem %s2147_s17, 16  ;;  %p1201_p3 = scmp.lt.s32.totalorder %s2147_s17, %s2044_s3 }
  0xc6   : > { %p1197_p2 = scmp.ne.s32.totalorder %s2147_s17, %s1196_s4  ;;  %p1202_p5 = scmp.lt.s32.totalorder %s2047_s5, %s1196_s4 }
  0xc8   : > { %p1203_p7 = por %p1202_p5, %p1201_p3 }
  0xca   : > { %p1204_p8 = pnand %p1203_p7, %p1197_p2 }
  0xcc   : > { %1207 = shalt.err (!%p1204_p8)  }
  0xcd   : > { %195 = dma.hbm_to_vmem [thread:$0]  %s183_s6, 16, %s2147_s17, [#allocation2] }
  0xce   : > { %s213_s26 = sld [smem:[#allocation4 + %s212_s0]]  ;;  %s216_s29 = scalar_lea.vmem %s2017_s27, 10 [#allocation5] }
  0xcf   : > { %s224_s7 = sshll.u32 %s216_s29, 4  ;;  %s228_s10 = sadd.s32 11, %s2009_s22  ;;  %s2179_s7 = int_to_ptr.vmem [resolvable:$true] %s224_s7 }
  0xd0   : > { %s931_s25 = sshll.u32 %s197_s8, 4  ;;  %s2184_s9 = sld [smem:[#allocation4 + %s228_s10]] }
  0xd1   : > { %s199_s24 = scalar_lea.hbm %s2712_s1, %s931_s25 }
  0xd2   : > { %s1208_s30 = scalar_lea.hbm %s199_s24, 16  ;;  %p1211_p10 = scmp.lt.s32.totalorder %s199_s24, %s2712_s1 }
  0xd3   : > { %p1209_p9 = scmp.ne.s32.totalorder %s199_s24, %s1208_s30  ;;  %p1212_p11 = scmp.lt.s32.totalorder %s2036_s23, %s1208_s30 }
  0xd5   : > { %p1213_p12 = por %p1212_p11, %p1211_p10 }
  0xd7   : > { %p1214_p13 = pnand %p1213_p12, %p1209_p9 }
  0xd9   : > { %1217 = shalt.err (!%p1214_p13)  }
  0xda   : > { %s1218_s17 = scalar_lea.vmem %s2161_s11, 16  ;;  %p1223_p2 = scmp.lt.s32.totalorder %s2161_s11, %s2044_s3 }
  0xdb   : > { %p1219_p1 = scmp.ne.s32.totalorder %s2161_s11, %s1218_s17  ;;  %p1224_p3 = scmp.lt.s32.totalorder %s2047_s5, %s1218_s17 }
  0xdd   : > { %p1225_p5 = por %p1224_p3, %p1223_p2 }
  0xdf   : > { %p1226_p7 = pnand %p1225_p5, %p1219_p1 }
  0xe1   : > { %1229 = shalt.err (!%p1226_p7)  }
  0xe2   : > { %211 = dma.hbm_to_vmem [thread:$0]  %s199_s24, 16, %s2161_s11, [#allocation2] }
  0xe3   : > { %s232_s18 = scalar_lea.vmem %s2017_s27, 11 [#allocation5]  ;;  %s244_s8 = sadd.s32 12, %s2009_s22 }
  0xe4   : > { %s932_s6 = sshll.u32 %s213_s26, 4  ;;  %s240_s0 = sshll.u32 %s232_s18, 4  ;;  %s2201_s0 = int_to_ptr.vmem [resolvable:$true] %s240_s0 }
  0xe5   : > { %s215_s25 = scalar_lea.hbm %s2712_s1, %s932_s6 }
  0xe6   : > { %s1230_s21 = scalar_lea.hbm %s215_s25, 16  ;;  %p1233_p9 = scmp.lt.s32.totalorder %s215_s25, %s2712_s1 }
  0xe7   : > { %p1231_p8 = scmp.ne.s32.totalorder %s215_s25, %s1230_s21  ;;  %p1234_p10 = scmp.lt.s32.totalorder %s2036_s23, %s1230_s21 }
  0xe9   : > { %p1235_p11 = por %p1234_p10, %p1233_p9 }
  0xeb   : > { %p1236_p12 = pnand %p1235_p11, %p1231_p8 }
  0xed   : > { %1239 = shalt.err (!%p1236_p12)  }
  0xee   : > { %s1240_s11 = scalar_lea.vmem %s2179_s7, 16  ;;  %p1245_p1 = scmp.lt.s32.totalorder %s2179_s7, %s2044_s3 }
  0xef   : > { %p1241_p13 = scmp.ne.s32.totalorder %s2179_s7, %s1240_s11  ;;  %p1246_p2 = scmp.lt.s32.totalorder %s2047_s5, %s1240_s11 }
  0xf1   : > { %p1247_p3 = por %p1246_p2, %p1245_p1 }
  0xf3   : > { %p1248_p5 = pnand %p1247_p3, %p1241_p13 }
  0xf5   : > { %1251 = shalt.err (!%p1248_p5)  }
  0xf6   : > { %227 = dma.hbm_to_vmem [thread:$0]  %s215_s25, 16, %s2179_s7, [#allocation2] }
  0xf7   : > { %s933_s26 = sshll.u32 %s2184_s9, 4  ;;  %s245_s24 = sld [smem:[#allocation4 + %s244_s8]] }
  0xf8   : > { %s231_s18 = scalar_lea.hbm %s2712_s1, %s933_s26  ;;  %s248_s6 = scalar_lea.vmem %s2017_s27, 12 [#allocation5] }
  0xf9   : > { %s1252_s29 = scalar_lea.hbm %s231_s18, 16  ;;  %p1255_p8 = scmp.lt.s32.totalorder %s231_s18, %s2712_s1 }
  0xfa   : > { %p1253_p7 = scmp.ne.s32.totalorder %s231_s18, %s1252_s29  ;;  %p1256_p9 = scmp.lt.s32.totalorder %s2036_s23, %s1252_s29 }
  0xfc   : > { %p1257_p10 = por %p1256_p9, %p1255_p8 }
  0xfe   : > { %p1258_p11 = pnand %p1257_p10, %p1253_p7 }
 0x100   : > { %1261 = shalt.err (!%p1258_p11)  }
 0x101   : > { %s1262_s7 = scalar_lea.vmem %s2201_s0, 16  ;;  %p1267_p13 = scmp.lt.s32.totalorder %s2201_s0, %s2044_s3 }
 0x102   : > { %p1263_p12 = scmp.ne.s32.totalorder %s2201_s0, %s1262_s7  ;;  %p1268_p1 = scmp.lt.s32.totalorder %s2047_s5, %s1262_s7 }
 0x104   : > { %p1269_p2 = por %p1268_p1, %p1267_p13 }
 0x106   : > { %p1270_p3 = pnand %p1269_p2, %p1263_p12 }
 0x108   : > { %1273 = shalt.err (!%p1270_p3)  }
 0x109   : > { %243 = dma.hbm_to_vmem [thread:$0]  %s231_s18, 16, %s2201_s0, [#allocation2] }
 0x10a   : > { %s256_s9 = sshll.u32 %s248_s6, 4  ;;  %s260_s8 = sadd.s32 13, %s2009_s22  ;;  %s257_s9 = int_to_ptr.vmem [resolvable:$true] %s256_s9 }
 0x10b   : > { %s261_s25 = sld [smem:[#allocation4 + %s260_s8]]  ;;  %s264_s16 = scalar_lea.vmem %s2017_s27, 13 [#allocation5] }
 0x10c   : > { %s276_s30 = sadd.s32 14, %s2009_s22  ;;  %s934_s11 = sshll.u32 %s245_s24, 4 }
 0x10d   : > { %s272_s26 = sshll.u32 %s264_s16, 4  ;;  %s247_s29 = scalar_lea.hbm %s2712_s1, %s934_s11  ;;  %s2234_s26 = int_to_ptr.vmem [resolvable:$true] %s272_s26 }
 0x10e   : > { %s1274_s10 = scalar_lea.hbm %s247_s29, 16  ;;  %p1277_p7 = scmp.lt.s32.totalorder %s247_s29, %s2712_s1 }
 0x10f   : > { %p1275_p5 = scmp.ne.s32.totalorder %s247_s29, %s1274_s10  ;;  %p1278_p8 = scmp.lt.s32.totalorder %s2036_s23, %s1274_s10 }
 0x111   : > { %p1279_p9 = por %p1278_p8, %p1277_p7 }
 0x113   : > { %p1280_p10 = pnand %p1279_p9, %p1275_p5 }
 0x115   : > { %1283 = shalt.err (!%p1280_p10)  }
 0x116   : > { %s1284_s0 = scalar_lea.vmem %s257_s9, 16  ;;  %p1289_p12 = scmp.lt.s32.totalorder %s257_s9, %s2044_s3 }
 0x117   : > { %p1285_p11 = scmp.ne.s32.totalorder %s257_s9, %s1284_s0  ;;  %p1290_p13 = scmp.lt.s32.totalorder %s2047_s5, %s1284_s0 }
 0x119   : > { %p1291_p1 = por %p1290_p13, %p1289_p12 }
 0x11b   : > { %p1292_p2 = pnand %p1291_p1, %p1285_p11 }
 0x11d   : > { %1295 = shalt.err (!%p1292_p2)  }
 0x11e   : > { %259 = dma.hbm_to_vmem [thread:$0]  %s247_s29, 16, %s257_s9, [#allocation2] }
 0x11f   : > { %s277_s24 = sld [smem:[#allocation4 + %s276_s30]]  ;;  %s280_s18 = scalar_lea.vmem %s2017_s27, 14 [#allocation5] }
 0x120   : > { %s935_s6 = sshll.u32 %s261_s25, 4  ;;  %s288_s8 = sshll.u32 %s280_s18, 4  ;;  %s2246_s8 = int_to_ptr.vmem [resolvable:$true] %s288_s8 }
 0x121   : > { %s263_s4 = scalar_lea.hbm %s2712_s1, %s935_s6 }
 0x122   : > { %s1296_s17 = scalar_lea.hbm %s263_s4, 16  ;;  %p1299_p5 = scmp.lt.s32.totalorder %s263_s4, %s2712_s1 }
 0x123   : > { %p1297_p3 = scmp.ne.s32.totalorder %s263_s4, %s1296_s17  ;;  %p1300_p7 = scmp.lt.s32.totalorder %s2036_s23, %s1296_s17 }
 0x125   : > { %p1301_p8 = por %p1300_p7, %p1299_p5 }
 0x127   : > { %p1302_p9 = pnand %p1301_p8, %p1297_p3 }
 0x129   : > { %1305 = shalt.err (!%p1302_p9)  }
 0x12a   : > { %s1306_s9 = scalar_lea.vmem %s2234_s26, 16  ;;  %p1311_p11 = scmp.lt.s32.totalorder %s2234_s26, %s2044_s3 }
 0x12b   : > { %p1307_p10 = scmp.ne.s32.totalorder %s2234_s26, %s1306_s9  ;;  %p1312_p12 = scmp.lt.s32.totalorder %s2047_s5, %s1306_s9 }
 0x12d   : > { %p1313_p13 = por %p1312_p12, %p1311_p11 }
 0x12f   : > { %p1314_p1 = pnand %p1313_p13, %p1307_p10 }
 0x131   : > { %1317 = shalt.err (!%p1314_p1)  }
 0x132   : > { %275 = dma.hbm_to_vmem [thread:$0]  %s263_s4, 16, %s2234_s26, [#allocation2] }
 0x133   : > { %s292_s25 = sadd.s32 15, %s2009_s22  ;;  %s296_s30 = scalar_lea.vmem %s2017_s27, 15 [#allocation5] }
 0x134   : > { %s293_s29 = sld [smem:[#allocation4 + %s292_s25]]  ;;  %s304_s7 = sshll.u32 %s296_s30, 4  ;;  %s2260_s7 = int_to_ptr.vmem [resolvable:$true] %s304_s7 }
 0x135   : > { %s936_s0 = sshll.u32 %s277_s24, 4  ;;  %s308_s11 = sadd.s32 16, %s2009_s22 }
 0x136   : > { %s279_s16 = scalar_lea.hbm %s2712_s1, %s936_s0 }
 0x137   : > { %s1318_s17 = scalar_lea.hbm %s279_s16, 16  ;;  %p1321_p3 = scmp.lt.s32.totalorder %s279_s16, %s2712_s1 }
 0x138   : > { %p1319_p2 = scmp.ne.s32.totalorder %s279_s16, %s1318_s17  ;;  %p1322_p5 = scmp.lt.s32.totalorder %s2036_s23, %s1318_s17 }
 0x13a   : > { %p1323_p7 = por %p1322_p5, %p1321_p3 }
 0x13c   : > { %p1324_p8 = pnand %p1323_p7, %p1319_p2 }
 0x13e   : > { %1327 = shalt.err (!%p1324_p8)  }
 0x13f   : > { %s1328_s26 = scalar_lea.vmem %s2246_s8, 16  ;;  %p1333_p10 = scmp.lt.s32.totalorder %s2246_s8, %s2044_s3 }
 0x140   : > { %p1329_p9 = scmp.ne.s32.totalorder %s2246_s8, %s1328_s26  ;;  %p1334_p11 = scmp.lt.s32.totalorder %s2047_s5, %s1328_s26 }
 0x142   : > { %p1335_p12 = por %p1334_p11, %p1333_p10 }
 0x144   : > { %p1336_p13 = pnand %p1335_p12, %p1329_p9 }
 0x146   : > { %1339 = shalt.err (!%p1336_p13)  }
 0x147   : > { %291 = dma.hbm_to_vmem [thread:$0]  %s279_s16, 16, %s2246_s8, [#allocation2] }
 0x148   : > { %s309_s24 = sld [smem:[#allocation4 + %s308_s11]]  ;;  %s312_s4 = scalar_lea.vmem %s2017_s27, 16 [#allocation5] }
 0x149   : > { %s320_s9 = sshll.u32 %s312_s4, 4  ;;  %s324_s25 = sadd.s32 17, %s2009_s22  ;;  %s2278_s9 = int_to_ptr.vmem [resolvable:$true] %s320_s9 }
 0x14a   : > { %s937_s30 = sshll.u32 %s293_s29, 4  ;;  %s2283_s17 = sld [smem:[#allocation4 + %s324_s25]] }
 0x14b   : > { %s295_s6 = scalar_lea.hbm %s2712_s1, %s937_s30 }
 0x14c   : > { %s1340_s10 = scalar_lea.hbm %s295_s6, 16  ;;  %p1343_p2 = scmp.lt.s32.totalorder %s295_s6, %s2712_s1 }
 0x14d   : > { %p1341_p1 = scmp.ne.s32.totalorder %s295_s6, %s1340_s10  ;;  %p1344_p3 = scmp.lt.s32.totalorder %s2036_s23, %s1340_s10 }
 0x14f   : > { %p1345_p5 = por %p1344_p3, %p1343_p2 }
 0x151   : > { %p1346_p7 = pnand %p1345_p5, %p1341_p1 }
 0x153   : > { %1349 = shalt.err (!%p1346_p7)  }
 0x154   : > { %s1350_s8 = scalar_lea.vmem %s2260_s7, 16  ;;  %p1355_p9 = scmp.lt.s32.totalorder %s2260_s7, %s2044_s3 }
 0x155   : > { %p1351_p8 = scmp.ne.s32.totalorder %s2260_s7, %s1350_s8  ;;  %p1356_p10 = scmp.lt.s32.totalorder %s2047_s5, %s1350_s8 }
 0x157   : > { %p1357_p11 = por %p1356_p10, %p1355_p9 }
 0x159   : > { %p1358_p12 = pnand %p1357_p11, %p1351_p8 }
 0x15b   : > { %1361 = shalt.err (!%p1358_p12)  }
 0x15c   : > { %307 = dma.hbm_to_vmem [thread:$0]  %s295_s6, 16, %s2260_s7, [#allocation2] }
 0x15d   : > { %s328_s29 = scalar_lea.vmem %s2017_s27, 17 [#allocation5]  ;;  %s340_s16 = sadd.s32 18, %s2009_s22 }
 0x15e   : > { %s938_s11 = sshll.u32 %s309_s24, 4  ;;  %s336_s4 = sshll.u32 %s328_s29, 4  ;;  %s2300_s4 = int_to_ptr.vmem [resolvable:$true] %s336_s4 }
 0x15f   : > { %s311_s0 = scalar_lea.hbm %s2712_s1, %s938_s11 }
 0x160   : > { %s1362_s18 = scalar_lea.hbm %s311_s0, 16  ;;  %p1365_p1 = scmp.lt.s32.totalorder %s311_s0, %s2712_s1 }
 0x161   : > { %p1363_p13 = scmp.ne.s32.totalorder %s311_s0, %s1362_s18  ;;  %p1366_p2 = scmp.lt.s32.totalorder %s2036_s23, %s1362_s18 }
 0x163   : > { %p1367_p3 = por %p1366_p2, %p1365_p1 }
 0x165   : > { %p1368_p5 = pnand %p1367_p3, %p1363_p13 }
 0x167   : > { %1371 = shalt.err (!%p1368_p5)  }
 0x168   : > { %s1372_s7 = scalar_lea.vmem %s2278_s9, 16  ;;  %p1377_p8 = scmp.lt.s32.totalorder %s2278_s9, %s2044_s3 }
 0x169   : > { %p1373_p7 = scmp.ne.s32.totalorder %s2278_s9, %s1372_s7  ;;  %p1378_p9 = scmp.lt.s32.totalorder %s2047_s5, %s1372_s7 }
 0x16b   : > { %p1379_p10 = por %p1378_p9, %p1377_p8 }
 0x16d   : > { %p1380_p11 = pnand %p1379_p10, %p1373_p7 }
 0x16f   : > { %1383 = shalt.err (!%p1380_p11)  }
 0x170   : > { %323 = dma.hbm_to_vmem [thread:$0]  %s311_s0, 16, %s2278_s9, [#allocation2] }
 0x171   : > { %s939_s24 = sshll.u32 %s2283_s17, 4  ;;  %s341_s6 = sld [smem:[#allocation4 + %s340_s16]] }
 0x172   : > { %s327_s29 = scalar_lea.hbm %s2712_s1, %s939_s24  ;;  %s344_s11 = scalar_lea.vmem %s2017_s27, 18 [#allocation5] }
 0x173   : > { %s1384_s25 = scalar_lea.hbm %s327_s29, 16  ;;  %p1387_p13 = scmp.lt.s32.totalorder %s327_s29, %s2712_s1 }
 0x174   : > { %p1385_p12 = scmp.ne.s32.totalorder %s327_s29, %s1384_s25  ;;  %p1388_p1 = scmp.lt.s32.totalorder %s2036_s23, %s1384_s25 }
 0x176   : > { %p1389_p2 = por %p1388_p1, %p1387_p13 }
 0x178   : > { %p1390_p3 = pnand %p1389_p2, %p1385_p12 }
 0x17a   : > { %1393 = shalt.err (!%p1390_p3)  }
 0x17b   : > { %s1394_s9 = scalar_lea.vmem %s2300_s4, 16  ;;  %p1399_p7 = scmp.lt.s32.totalorder %s2300_s4, %s2044_s3 }
 0x17c   : > { %p1395_p5 = scmp.ne.s32.totalorder %s2300_s4, %s1394_s9  ;;  %p1400_p8 = scmp.lt.s32.totalorder %s2047_s5, %s1394_s9 }
 0x17e   : > { %p1401_p9 = por %p1400_p8, %p1399_p7 }
 0x180   : > { %p1402_p10 = pnand %p1401_p9, %p1395_p5 }
 0x182   : > { %1405 = shalt.err (!%p1402_p10)  }
 0x183   : > { %339 = dma.hbm_to_vmem [thread:$0]  %s327_s29, 16, %s2300_s4, [#allocation2] }
 0x184   : > { %s352_s17 = sshll.u32 %s344_s11, 4  ;;  %s356_s16 = sadd.s32 19, %s2009_s22  ;;  %s353_s17 = int_to_ptr.vmem [resolvable:$true] %s352_s17 }
 0x185   : > { %s357_s0 = sld [smem:[#allocation4 + %s356_s16]]  ;;  %s360_s10 = scalar_lea.vmem %s2017_s27, 19 [#allocation5] }
 0x186   : > { %s372_s21 = sadd.s32 20, %s2009_s22  ;;  %s940_s7 = sshll.u32 %s341_s6, 4 }
 0x187   : > { %s368_s24 = sshll.u32 %s360_s10, 4  ;;  %s343_s25 = scalar_lea.hbm %s2712_s1, %s940_s7  ;;  %s2333_s24 = int_to_ptr.vmem [resolvable:$true] %s368_s24 }
 0x188   : > { %s1406_s30 = scalar_lea.hbm %s343_s25, 16  ;;  %p1409_p12 = scmp.lt.s32.totalorder %s343_s25, %s2712_s1 }
 0x189   : > { %p1407_p11 = scmp.ne.s32.totalorder %s343_s25, %s1406_s30  ;;  %p1410_p13 = scmp.lt.s32.totalorder %s2036_s23, %s1406_s30 }
 0x18b   : > { %p1411_p1 = por %p1410_p13, %p1409_p12 }
 0x18d   : > { %p1412_p2 = pnand %p1411_p1, %p1407_p11 }
 0x18f   : > { %1415 = shalt.err (!%p1412_p2)  }
 0x190   : > { %s1416_s4 = scalar_lea.vmem %s353_s17, 16  ;;  %p1421_p5 = scmp.lt.s32.totalorder %s353_s17, %s2044_s3 }
 0x191   : > { %p1417_p3 = scmp.ne.s32.totalorder %s353_s17, %s1416_s4  ;;  %p1422_p7 = scmp.lt.s32.totalorder %s2047_s5, %s1416_s4 }
 0x193   : > { %p1423_p8 = por %p1422_p7, %p1421_p5 }
 0x195   : > { %p1424_p9 = pnand %p1423_p8, %p1417_p3 }
 0x197   : > { %1427 = shalt.err (!%p1424_p9)  }
 0x198   : > { %355 = dma.hbm_to_vmem [thread:$0]  %s343_s25, 16, %s353_s17, [#allocation2] }
 0x199   : > { %s373_s6 = sld [smem:[#allocation4 + %s372_s21]]  ;;  %s376_s29 = scalar_lea.vmem %s2017_s27, 20 [#allocation5] }
 0x19a   : > { %s941_s11 = sshll.u32 %s357_s0, 4  ;;  %s384_s16 = sshll.u32 %s376_s29, 4  ;;  %s2345_s16 = int_to_ptr.vmem [resolvable:$true] %s384_s16 }
 0x19b   : > { %s359_s26 = scalar_lea.hbm %s2712_s1, %s941_s11 }
 0x19c   : > { %s1428_s8 = scalar_lea.hbm %s359_s26, 16  ;;  %p1431_p11 = scmp.lt.s32.totalorder %s359_s26, %s2712_s1 }
 0x19d   : > { %p1429_p10 = scmp.ne.s32.totalorder %s359_s26, %s1428_s8  ;;  %p1432_p12 = scmp.lt.s32.totalorder %s2036_s23, %s1428_s8 }
 0x19f   : > { %p1433_p13 = por %p1432_p12, %p1431_p11 }
 0x1a1   : > { %p1434_p1 = pnand %p1433_p13, %p1429_p10 }
 0x1a3   : > { %1437 = shalt.err (!%p1434_p1)  }
 0x1a4   : > { %s1438_s17 = scalar_lea.vmem %s2333_s24, 16  ;;  %p1443_p3 = scmp.lt.s32.totalorder %s2333_s24, %s2044_s3 }
 0x1a5   : > { %p1439_p2 = scmp.ne.s32.totalorder %s2333_s24, %s1438_s17  ;;  %p1444_p5 = scmp.lt.s32.totalorder %s2047_s5, %s1438_s17 }
 0x1a7   : > { %p1445_p7 = por %p1444_p5, %p1443_p3 }
 0x1a9   : > { %p1446_p8 = pnand %p1445_p7, %p1439_p2 }
 0x1ab   : > { %1449 = shalt.err (!%p1446_p8)  }
 0x1ac   : > { %371 = dma.hbm_to_vmem [thread:$0]  %s359_s26, 16, %s2333_s24, [#allocation2] }
 0x1ad   : > { %s388_s0 = sadd.s32 21, %s2009_s22  ;;  %s392_s21 = scalar_lea.vmem %s2017_s27, 21 [#allocation5] }
 0x1ae   : > { %s389_s25 = sld [smem:[#allocation4 + %s388_s0]]  ;;  %s400_s9 = sshll.u32 %s392_s21, 4  ;;  %s2359_s9 = int_to_ptr.vmem [resolvable:$true] %s400_s9 }
 0x1af   : > { %s942_s4 = sshll.u32 %s373_s6, 4  ;;  %s404_s7 = sadd.s32 22, %s2009_s22 }
 0x1b0   : > { %s375_s10 = scalar_lea.hbm %s2712_s1, %s942_s4 }
 0x1b1   : > { %s1450_s8 = scalar_lea.hbm %s375_s10, 16  ;;  %p1453_p10 = scmp.lt.s32.totalorder %s375_s10, %s2712_s1 }
 0x1b2   : > { %p1451_p9 = scmp.ne.s32.totalorder %s375_s10, %s1450_s8  ;;  %p1454_p11 = scmp.lt.s32.totalorder %s2036_s23, %s1450_s8 }
 0x1b4   : > { %p1455_p12 = por %p1454_p11, %p1453_p10 }
 0x1b6   : > { %p1456_p13 = pnand %p1455_p12, %p1451_p9 }
 0x1b8   : > { %1459 = shalt.err (!%p1456_p13)  }
 0x1b9   : > { %s1460_s24 = scalar_lea.vmem %s2345_s16, 16  ;;  %p1465_p2 = scmp.lt.s32.totalorder %s2345_s16, %s2044_s3 }
 0x1ba   : > { %p1461_p1 = scmp.ne.s32.totalorder %s2345_s16, %s1460_s24  ;;  %p1466_p3 = scmp.lt.s32.totalorder %s2047_s5, %s1460_s24 }
 0x1bc   : > { %p1467_p5 = por %p1466_p3, %p1465_p2 }
 0x1be   : > { %p1468_p7 = pnand %p1467_p5, %p1461_p1 }
 0x1c0   : > { %1471 = shalt.err (!%p1468_p7)  }
 0x1c1   : > { %387 = dma.hbm_to_vmem [thread:$0]  %s375_s10, 16, %s2345_s16, [#allocation2] }
 0x1c2   : > { %s405_s6 = sld [smem:[#allocation4 + %s404_s7]]  ;;  %s408_s26 = scalar_lea.vmem %s2017_s27, 22 [#allocation5] }
 0x1c3   : > { %s416_s17 = sshll.u32 %s408_s26, 4  ;;  %s420_s0 = sadd.s32 23, %s2009_s22  ;;  %s2377_s17 = int_to_ptr.vmem [resolvable:$true] %s416_s17 }
 0x1c4   : > { %s943_s21 = sshll.u32 %s389_s25, 4  ;;  %s2382_s8 = sld [smem:[#allocation4 + %s420_s0]] }
 0x1c5   : > { %s391_s11 = scalar_lea.hbm %s2712_s1, %s943_s21 }
 0x1c6   : > { %s1472_s30 = scalar_lea.hbm %s391_s11, 16  ;;  %p1475_p9 = scmp.lt.s32.totalorder %s391_s11, %s2712_s1 }
 0x1c7   : > { %p1473_p8 = scmp.ne.s32.totalorder %s391_s11, %s1472_s30  ;;  %p1476_p10 = scmp.lt.s32.totalorder %s2036_s23, %s1472_s30 }
 0x1c9   : > { %p1477_p11 = por %p1476_p10, %p1475_p9 }
 0x1cb   : > { %p1478_p12 = pnand %p1477_p11, %p1473_p8 }
 0x1cd   : > { %1481 = shalt.err (!%p1478_p12)  }
 0x1ce   : > { %s1482_s16 = scalar_lea.vmem %s2359_s9, 16  ;;  %p1487_p1 = scmp.lt.s32.totalorder %s2359_s9, %s2044_s3 }
 0x1cf   : > { %p1483_p13 = scmp.ne.s32.totalorder %s2359_s9, %s1482_s16  ;;  %p1488_p2 = scmp.lt.s32.totalorder %s2047_s5, %s1482_s16 }
 0x1d1   : > { %p1489_p3 = por %p1488_p2, %p1487_p1 }
 0x1d3   : > { %p1490_p5 = pnand %p1489_p3, %p1483_p13 }
 0x1d5   : > { %1493 = shalt.err (!%p1490_p5)  }
 0x1d6   : > { %403 = dma.hbm_to_vmem [thread:$0]  %s391_s11, 16, %s2359_s9, [#allocation2] }
 0x1d7   : > { %s424_s25 = scalar_lea.vmem %s2017_s27, 23 [#allocation5]  ;;  %s436_s10 = sadd.s32 24, %s2009_s22 }
 0x1d8   : > { %s944_s7 = sshll.u32 %s405_s6, 4  ;;  %s432_s26 = sshll.u32 %s424_s25, 4  ;;  %s2399_s26 = int_to_ptr.vmem [resolvable:$true] %s432_s26 }
 0x1d9   : > { %s407_s4 = scalar_lea.hbm %s2712_s1, %s944_s7 }
 0x1da   : > { %s1494_s29 = scalar_lea.hbm %s407_s4, 16  ;;  %p1497_p8 = scmp.lt.s32.totalorder %s407_s4, %s2712_s1 }
 0x1db   : > { %p1495_p7 = scmp.ne.s32.totalorder %s407_s4, %s1494_s29  ;;  %p1498_p9 = scmp.lt.s32.totalorder %s2036_s23, %s1494_s29 }
 0x1dd   : > { %p1499_p10 = por %p1498_p9, %p1497_p8 }
 0x1df   : > { %p1500_p11 = pnand %p1499_p10, %p1495_p7 }
 0x1e1   : > { %1503 = shalt.err (!%p1500_p11)  }
 0x1e2   : > { %s1504_s9 = scalar_lea.vmem %s2377_s17, 16  ;;  %p1509_p13 = scmp.lt.s32.totalorder %s2377_s17, %s2044_s3 }
 0x1e3   : > { %p1505_p12 = scmp.ne.s32.totalorder %s2377_s17, %s1504_s9  ;;  %p1510_p1 = scmp.lt.s32.totalorder %s2047_s5, %s1504_s9 }
 0x1e5   : > { %p1511_p2 = por %p1510_p1, %p1509_p13 }
 0x1e7   : > { %p1512_p3 = pnand %p1511_p2, %p1505_p12 }
 0x1e9   : > { %1515 = shalt.err (!%p1512_p3)  }
 0x1ea   : > { %419 = dma.hbm_to_vmem [thread:$0]  %s407_s4, 16, %s2377_s17, [#allocation2] }
 0x1eb   : > { %s945_s6 = sshll.u32 %s2382_s8, 4  ;;  %s437_s11 = sld [smem:[#allocation4 + %s436_s10]] }
 0x1ec   : > { %s423_s25 = scalar_lea.hbm %s2712_s1, %s945_s6  ;;  %s440_s7 = scalar_lea.vmem %s2017_s27, 24 [#allocation5] }
 0x1ed   : > { %s1516_s0 = scalar_lea.hbm %s423_s25, 16  ;;  %p1519_p7 = scmp.lt.s32.totalorder %s423_s25, %s2712_s1 }
 0x1ee   : > { %p1517_p5 = scmp.ne.s32.totalorder %s423_s25, %s1516_s0  ;;  %p1520_p8 = scmp.lt.s32.totalorder %s2036_s23, %s1516_s0 }
 0x1f0   : > { %p1521_p9 = por %p1520_p8, %p1519_p7 }
 0x1f2   : > { %p1522_p10 = pnand %p1521_p9, %p1517_p5 }
 0x1f4   : > { %1525 = shalt.err (!%p1522_p10)  }
 0x1f5   : > { %s1526_s17 = scalar_lea.vmem %s2399_s26, 16  ;;  %p1531_p12 = scmp.lt.s32.totalorder %s2399_s26, %s2044_s3 }
 0x1f6   : > { %p1527_p11 = scmp.ne.s32.totalorder %s2399_s26, %s1526_s17  ;;  %p1532_p13 = scmp.lt.s32.totalorder %s2047_s5, %s1526_s17 }
 0x1f8   : > { %p1533_p1 = por %p1532_p13, %p1531_p12 }
 0x1fa   : > { %p1534_p2 = pnand %p1533_p1, %p1527_p11 }
 0x1fc   : > { %1537 = shalt.err (!%p1534_p2)  }
 0x1fd   : > { %435 = dma.hbm_to_vmem [thread:$0]  %s423_s25, 16, %s2399_s26, [#allocation2] }
 0x1fe   : > { %s448_s8 = sshll.u32 %s440_s7, 4  ;;  %s452_s10 = sadd.s32 25, %s2009_s22  ;;  %s449_s8 = int_to_ptr.vmem [resolvable:$true] %s448_s8 }
 0x1ff   : > { %s453_s4 = sld [smem:[#allocation4 + %s452_s10]]  ;;  %s456_s30 = scalar_lea.vmem %s2017_s27, 25 [#allocation5] }
 0x200   : > { %s468_s18 = sadd.s32 26, %s2009_s22  ;;  %s946_s9 = sshll.u32 %s437_s11, 4 }
 0x201   : > { %s464_s6 = sshll.u32 %s456_s30, 4  ;;  %s439_s0 = scalar_lea.hbm %s2712_s1, %s946_s9  ;;  %s2432_s6 = int_to_ptr.vmem [resolvable:$true] %s464_s6 }
 0x202   : > { %s1538_s21 = scalar_lea.hbm %s439_s0, 16  ;;  %p1541_p5 = scmp.lt.s32.totalorder %s439_s0, %s2712_s1 }
 0x203   : > { %p1539_p3 = scmp.ne.s32.totalorder %s439_s0, %s1538_s21  ;;  %p1542_p7 = scmp.lt.s32.totalorder %s2036_s23, %s1538_s21 }
 0x205   : > { %p1543_p8 = por %p1542_p7, %p1541_p5 }
 0x207   : > { %p1544_p9 = pnand %p1543_p8, %p1539_p3 }
 0x209   : > { %1547 = shalt.err (!%p1544_p9)  }
 0x20a   : > { %s1548_s26 = scalar_lea.vmem %s449_s8, 16  ;;  %p1553_p11 = scmp.lt.s32.totalorder %s449_s8, %s2044_s3 }
 0x20b   : > { %p1549_p10 = scmp.ne.s32.totalorder %s449_s8, %s1548_s26  ;;  %p1554_p12 = scmp.lt.s32.totalorder %s2047_s5, %s1548_s26 }
 0x20d   : > { %p1555_p13 = por %p1554_p12, %p1553_p11 }
 0x20f   : > { %p1556_p1 = pnand %p1555_p13, %p1549_p10 }
 0x211   : > { %1559 = shalt.err (!%p1556_p1)  }
 0x212   : > { %451 = dma.hbm_to_vmem [thread:$0]  %s439_s0, 16, %s449_s8, [#allocation2] }
 0x213   : > { %s469_s11 = sld [smem:[#allocation4 + %s468_s18]]  ;;  %s472_s25 = scalar_lea.vmem %s2017_s27, 26 [#allocation5] }
 0x214   : > { %s947_s7 = sshll.u32 %s453_s4, 4  ;;  %s480_s10 = sshll.u32 %s472_s25, 4  ;;  %s2444_s10 = int_to_ptr.vmem [resolvable:$true] %s480_s10 }
 0x215   : > { %s455_s24 = scalar_lea.hbm %s2712_s1, %s947_s7 }
 0x216   : > { %s1560_s16 = scalar_lea.hbm %s455_s24, 16  ;;  %p1563_p3 = scmp.lt.s32.totalorder %s455_s24, %s2712_s1 }
 0x217   : > { %p1561_p2 = scmp.ne.s32.totalorder %s455_s24, %s1560_s16  ;;  %p1564_p5 = scmp.lt.s32.totalorder %s2036_s23, %s1560_s16 }
 0x219   : > { %p1565_p7 = por %p1564_p5, %p1563_p3 }
 0x21b   : > { %p1566_p8 = pnand %p1565_p7, %p1561_p2 }
 0x21d   : > { %1569 = shalt.err (!%p1566_p8)  }
 0x21e   : > { %s1570_s8 = scalar_lea.vmem %s2432_s6, 16  ;;  %p1575_p10 = scmp.lt.s32.totalorder %s2432_s6, %s2044_s3 }
 0x21f   : > { %p1571_p9 = scmp.ne.s32.totalorder %s2432_s6, %s1570_s8  ;;  %p1576_p11 = scmp.lt.s32.totalorder %s2047_s5, %s1570_s8 }
 0x221   : > { %p1577_p12 = por %p1576_p11, %p1575_p10 }
 0x223   : > { %p1578_p13 = pnand %p1577_p12, %p1571_p9 }
 0x225   : > { %1581 = shalt.err (!%p1578_p13)  }
 0x226   : > { %467 = dma.hbm_to_vmem [thread:$0]  %s455_s24, 16, %s2432_s6, [#allocation2] }
 0x227   : > { %s484_s4 = sadd.s32 27, %s2009_s22  ;;  %s488_s18 = scalar_lea.vmem %s2017_s27, 27 [#allocation5] }
 0x228   : > { %s485_s0 = sld [smem:[#allocation4 + %s484_s4]]  ;;  %s496_s17 = sshll.u32 %s488_s18, 4  ;;  %s2458_s17 = int_to_ptr.vmem [resolvable:$true] %s496_s17 }
 0x229   : > { %s948_s26 = sshll.u32 %s469_s11, 4  ;;  %s500_s9 = sadd.s32 28, %s2009_s22 }
 0x22a   : > { %s471_s30 = scalar_lea.hbm %s2712_s1, %s948_s26 }
 0x22b   : > { %s1582_s16 = scalar_lea.hbm %s471_s30, 16  ;;  %p1585_p2 = scmp.lt.s32.totalorder %s471_s30, %s2712_s1 }
 0x22c   : > { %p1583_p1 = scmp.ne.s32.totalorder %s471_s30, %s1582_s16  ;;  %p1586_p3 = scmp.lt.s32.totalorder %s2036_s23, %s1582_s16 }
 0x22e   : > { %p1587_p5 = por %p1586_p3, %p1585_p2 }
 0x230   : > { %p1588_p7 = pnand %p1587_p5, %p1583_p1 }
 0x232   : > { %1591 = shalt.err (!%p1588_p7)  }
 0x233   : > { %s1592_s6 = scalar_lea.vmem %s2444_s10, 16  ;;  %p1597_p9 = scmp.lt.s32.totalorder %s2444_s10, %s2044_s3 }
 0x234   : > { %p1593_p8 = scmp.ne.s32.totalorder %s2444_s10, %s1592_s6  ;;  %p1598_p10 = scmp.lt.s32.totalorder %s2047_s5, %s1592_s6 }
 0x236   : > { %p1599_p11 = por %p1598_p10, %p1597_p9 }
 0x238   : > { %p1600_p12 = pnand %p1599_p11, %p1593_p8 }
 0x23a   : > { %1603 = shalt.err (!%p1600_p12)  }
 0x23b   : > { %483 = dma.hbm_to_vmem [thread:$0]  %s471_s30, 16, %s2444_s10, [#allocation2] }
 0x23c   : > { %s501_s11 = sld [smem:[#allocation4 + %s500_s9]]  ;;  %s504_s24 = scalar_lea.vmem %s2017_s27, 28 [#allocation5] }
 0x23d   : > { %s512_s8 = sshll.u32 %s504_s24, 4  ;;  %s516_s4 = sadd.s32 29, %s2009_s22  ;;  %s2476_s8 = int_to_ptr.vmem [resolvable:$true] %s512_s8 }
 0x23e   : > { %s949_s18 = sshll.u32 %s485_s0, 4  ;;  %s2481_s16 = sld [smem:[#allocation4 + %s516_s4]] }
 0x23f   : > { %s487_s7 = scalar_lea.hbm %s2712_s1, %s949_s18 }
 0x240   : > { %s1604_s21 = scalar_lea.hbm %s487_s7, 16  ;;  %p1607_p1 = scmp.lt.s32.totalorder %s487_s7, %s2712_s1 }
 0x241   : > { %p1605_p13 = scmp.ne.s32.totalorder %s487_s7, %s1604_s21  ;;  %p1608_p2 = scmp.lt.s32.totalorder %s2036_s23, %s1604_s21 }
 0x243   : > { %p1609_p3 = por %p1608_p2, %p1607_p1 }
 0x245   : > { %p1610_p5 = pnand %p1609_p3, %p1605_p13 }
 0x247   : > { %1613 = shalt.err (!%p1610_p5)  }
 0x248   : > { %s1614_s10 = scalar_lea.vmem %s2458_s17, 16  ;;  %p1619_p8 = scmp.lt.s32.totalorder %s2458_s17, %s2044_s3 }
 0x249   : > { %p1615_p7 = scmp.ne.s32.totalorder %s2458_s17, %s1614_s10  ;;  %p1620_p9 = scmp.lt.s32.totalorder %s2047_s5, %s1614_s10 }
 0x24b   : > { %p1621_p10 = por %p1620_p9, %p1619_p8 }
 0x24d   : > { %p1622_p11 = pnand %p1621_p10, %p1615_p7 }
 0x24f   : > { %1625 = shalt.err (!%p1622_p11)  }
 0x250   : > { %499 = dma.hbm_to_vmem [thread:$0]  %s487_s7, 16, %s2458_s17, [#allocation2] }
 0x251   : > { %s520_s0 = scalar_lea.vmem %s2017_s27, 29 [#allocation5]  ;;  %s532_s30 = sadd.s32 30, %s2009_s22 }
 0x252   : > { %s950_s9 = sshll.u32 %s501_s11, 4  ;;  %s528_s24 = sshll.u32 %s520_s0, 4  ;;  %s2498_s24 = int_to_ptr.vmem [resolvable:$true] %s528_s24 }
 0x253   : > { %s503_s26 = scalar_lea.hbm %s2712_s1, %s950_s9 }
 0x254   : > { %s1626_s25 = scalar_lea.hbm %s503_s26, 16  ;;  %p1629_p13 = scmp.lt.s32.totalorder %s503_s26, %s2712_s1 }
 0x255   : > { %p1627_p12 = scmp.ne.s32.totalorder %s503_s26, %s1626_s25  ;;  %p1630_p1 = scmp.lt.s32.totalorder %s2036_s23, %s1626_s25 }
 0x257   : > { %p1631_p2 = por %p1630_p1, %p1629_p13 }
 0x259   : > { %p1632_p3 = pnand %p1631_p2, %p1627_p12 }
 0x25b   : > { %1635 = shalt.err (!%p1632_p3)  }
 0x25c   : > { %s1636_s17 = scalar_lea.vmem %s2476_s8, 16  ;;  %p1641_p7 = scmp.lt.s32.totalorder %s2476_s8, %s2044_s3 }
 0x25d   : > { %p1637_p5 = scmp.ne.s32.totalorder %s2476_s8, %s1636_s17  ;;  %p1642_p8 = scmp.lt.s32.totalorder %s2047_s5, %s1636_s17 }
 0x25f   : > { %p1643_p9 = por %p1642_p8, %p1641_p7 }
 0x261   : > { %p1644_p10 = pnand %p1643_p9, %p1637_p5 }
 0x263   : > { %1647 = shalt.err (!%p1644_p10)  }
 0x264   : > { %515 = dma.hbm_to_vmem [thread:$0]  %s503_s26, 16, %s2476_s8, [#allocation2] }
 0x265   : > { %s951_s11 = sshll.u32 %s2481_s16, 4  ;;  %s533_s7 = sld [smem:[#allocation4 + %s532_s30]] }
 0x266   : > { %s519_s0 = scalar_lea.hbm %s2712_s1, %s951_s11  ;;  %s536_s9 = scalar_lea.vmem %s2017_s27, 30 [#allocation5] }
 0x267   : > { %s1648_s4 = scalar_lea.hbm %s519_s0, 16  ;;  %p1651_p12 = scmp.lt.s32.totalorder %s519_s0, %s2712_s1 }
 0x268   : > { %p1649_p11 = scmp.ne.s32.totalorder %s519_s0, %s1648_s4  ;;  %p1652_p13 = scmp.lt.s32.totalorder %s2036_s23, %s1648_s4 }
 0x26a   : > { %p1653_p1 = por %p1652_p13, %p1651_p12 }
 0x26c   : > { %p1654_p2 = pnand %p1653_p1, %p1649_p11 }
 0x26e   : > { %1657 = shalt.err (!%p1654_p2)  }
 0x26f   : > { %s1658_s8 = scalar_lea.vmem %s2498_s24, 16  ;;  %p1663_p5 = scmp.lt.s32.totalorder %s2498_s24, %s2044_s3 }
 0x270   : > { %p1659_p3 = scmp.ne.s32.totalorder %s2498_s24, %s1658_s8  ;;  %p1664_p7 = scmp.lt.s32.totalorder %s2047_s5, %s1658_s8 }
 0x272   : > { %p1665_p8 = por %p1664_p7, %p1663_p5 }
 0x274   : > { %p1666_p9 = pnand %p1665_p8, %p1659_p3 }
 0x276   : > { %1669 = shalt.err (!%p1666_p9)  }
 0x277   : > { %531 = dma.hbm_to_vmem [thread:$0]  %s519_s0, 16, %s2498_s24, [#allocation2] }
 0x278   : > { %s544_s16 = sshll.u32 %s536_s9, 4  ;;  %s548_s30 = sadd.s32 31, %s2009_s22  ;;  %s545_s16 = int_to_ptr.vmem [resolvable:$true] %s544_s16 }
 0x279   : > { %s549_s26 = sld [smem:[#allocation4 + %s548_s30]]  ;;  %s552_s21 = scalar_lea.vmem %s2017_s27, 31 [#allocation5] }
 0x27a   : > { %s564_s29 = sadd.s32 32, %s2009_s22  ;;  %s952_s17 = sshll.u32 %s533_s7, 4 }
 0x27b   : > { %s560_s11 = sshll.u32 %s552_s21, 4  ;;  %s535_s4 = scalar_lea.hbm %s2712_s1, %s952_s17  ;;  %s2531_s11 = int_to_ptr.vmem [resolvable:$true] %s560_s11 }
 0x27c   : > { %s1670_s18 = scalar_lea.hbm %s535_s4, 16  ;;  %p1673_p11 = scmp.lt.s32.totalorder %s535_s4, %s2712_s1 }
 0x27d   : > { %p1671_p10 = scmp.ne.s32.totalorder %s535_s4, %s1670_s18  ;;  %p1674_p12 = scmp.lt.s32.totalorder %s2036_s23, %s1670_s18 }
 0x27f   : > { %p1675_p13 = por %p1674_p12, %p1673_p11 }
 0x281   : > { %p1676_p1 = pnand %p1675_p13, %p1671_p10 }
 0x283   : > { %1679 = shalt.err (!%p1676_p1)  }
 0x284   : > { %s1680_s24 = scalar_lea.vmem %s545_s16, 16  ;;  %p1685_p3 = scmp.lt.s32.totalorder %s545_s16, %s2044_s3 }
 0x285   : > { %p1681_p2 = scmp.ne.s32.totalorder %s545_s16, %s1680_s24  ;;  %p1686_p5 = scmp.lt.s32.totalorder %s2047_s5, %s1680_s24 }
 0x287   : > { %p1687_p7 = por %p1686_p5, %p1685_p3 }
 0x289   : > { %p1688_p8 = pnand %p1687_p7, %p1681_p2 }
 0x28b   : > { %1691 = shalt.err (!%p1688_p8)  }
 0x28c   : > { %547 = dma.hbm_to_vmem [thread:$0]  %s535_s4, 16, %s545_s16, [#allocation2] }
 0x28d   : > { %s565_s7 = sld [smem:[#allocation4 + %s564_s29]]  ;;  %s568_s0 = scalar_lea.vmem %s2017_s27, 32 [#allocation5] }
 0x28e   : > { %s953_s9 = sshll.u32 %s549_s26, 4  ;;  %s576_s30 = sshll.u32 %s568_s0, 4  ;;  %s2543_s30 = int_to_ptr.vmem [resolvable:$true] %s576_s30 }
 0x28f   : > { %s551_s6 = scalar_lea.hbm %s2712_s1, %s953_s9 }
 0x290   : > { %s1692_s10 = scalar_lea.hbm %s551_s6, 16  ;;  %p1695_p10 = scmp.lt.s32.totalorder %s551_s6, %s2712_s1 }
 0x291   : > { %p1693_p9 = scmp.ne.s32.totalorder %s551_s6, %s1692_s10  ;;  %p1696_p11 = scmp.lt.s32.totalorder %s2036_s23, %s1692_s10 }
 0x293   : > { %p1697_p12 = por %p1696_p11, %p1695_p10 }
 0x295   : > { %p1698_p13 = pnand %p1697_p12, %p1693_p9 }
 0x297   : > { %1701 = shalt.err (!%p1698_p13)  }
 0x298   : > { %s1702_s16 = scalar_lea.vmem %s2531_s11, 16  ;;  %p1707_p2 = scmp.lt.s32.totalorder %s2531_s11, %s2044_s3 }
 0x299   : > { %p1703_p1 = scmp.ne.s32.totalorder %s2531_s11, %s1702_s16  ;;  %p1708_p3 = scmp.lt.s32.totalorder %s2047_s5, %s1702_s16 }
 0x29b   : > { %p1709_p5 = por %p1708_p3, %p1707_p2 }
 0x29d   : > { %p1710_p7 = pnand %p1709_p5, %p1703_p1 }
 0x29f   : > { %1713 = shalt.err (!%p1710_p7)  }
 0x2a0   : > { %563 = dma.hbm_to_vmem [thread:$0]  %s551_s6, 16, %s2531_s11, [#allocation2] }
 0x2a1   : > { %s580_s26 = sadd.s32 33, %s2009_s22  ;;  %s584_s29 = scalar_lea.vmem %s2017_s27, 33 [#allocation5] }
 0x2a2   : > { %s581_s4 = sld [smem:[#allocation4 + %s580_s26]]  ;;  %s592_s8 = sshll.u32 %s584_s29, 4  ;;  %s2557_s8 = int_to_ptr.vmem [resolvable:$true] %s592_s8 }
 0x2a3   : > { %s954_s24 = sshll.u32 %s565_s7, 4  ;;  %s596_s17 = sadd.s32 34, %s2009_s22 }
 0x2a4   : > { %s567_s21 = scalar_lea.hbm %s2712_s1, %s954_s24 }
 0x2a5   : > { %s1714_s10 = scalar_lea.hbm %s567_s21, 16  ;;  %p1717_p9 = scmp.lt.s32.totalorder %s567_s21, %s2712_s1 }
 0x2a6   : > { %p1715_p8 = scmp.ne.s32.totalorder %s567_s21, %s1714_s10  ;;  %p1718_p10 = scmp.lt.s32.totalorder %s2036_s23, %s1714_s10 }
 0x2a8   : > { %p1719_p11 = por %p1718_p10, %p1717_p9 }
 0x2aa   : > { %p1720_p12 = pnand %p1719_p11, %p1715_p8 }
 0x2ac   : > { %1723 = shalt.err (!%p1720_p12)  }
 0x2ad   : > { %s1724_s11 = scalar_lea.vmem %s2543_s30, 16  ;;  %p1729_p1 = scmp.lt.s32.totalorder %s2543_s30, %s2044_s3 }
 0x2ae   : > { %p1725_p13 = scmp.ne.s32.totalorder %s2543_s30, %s1724_s11  ;;  %p1730_p2 = scmp.lt.s32.totalorder %s2047_s5, %s1724_s11 }
 0x2b0   : > { %p1731_p3 = por %p1730_p2, %p1729_p1 }
 0x2b2   : > { %p1732_p5 = pnand %p1731_p3, %p1725_p13 }
 0x2b4   : > { %1735 = shalt.err (!%p1732_p5)  }
 0x2b5   : > { %579 = dma.hbm_to_vmem [thread:$0]  %s567_s21, 16, %s2543_s30, [#allocation2] }
 0x2b6   : > { %s597_s7 = sld [smem:[#allocation4 + %s596_s17]]  ;;  %s600_s6 = scalar_lea.vmem %s2017_s27, 34 [#allocation5] }
 0x2b7   : > { %s608_s16 = sshll.u32 %s600_s6, 4  ;;  %s612_s26 = sadd.s32 35, %s2009_s22  ;;  %s2575_s16 = int_to_ptr.vmem [resolvable:$true] %s608_s16 }
 0x2b8   : > { %s955_s29 = sshll.u32 %s581_s4, 4  ;;  %s2580_s10 = sld [smem:[#allocation4 + %s612_s26]] }
 0x2b9   : > { %s583_s9 = scalar_lea.hbm %s2712_s1, %s955_s29 }
 0x2ba   : > { %s1736_s18 = scalar_lea.hbm %s583_s9, 16  ;;  %p1739_p8 = scmp.lt.s32.totalorder %s583_s9, %s2712_s1 }
 0x2bb   : > { %p1737_p7 = scmp.ne.s32.totalorder %s583_s9, %s1736_s18  ;;  %p1740_p9 = scmp.lt.s32.totalorder %s2036_s23, %s1736_s18 }
 0x2bd   : > { %p1741_p10 = por %p1740_p9, %p1739_p8 }
 0x2bf   : > { %p1742_p11 = pnand %p1741_p10, %p1737_p7 }
 0x2c1   : > { %1745 = shalt.err (!%p1742_p11)  }
 0x2c2   : > { %s1746_s30 = scalar_lea.vmem %s2557_s8, 16  ;;  %p1751_p13 = scmp.lt.s32.totalorder %s2557_s8, %s2044_s3 }
 0x2c3   : > { %p1747_p12 = scmp.ne.s32.totalorder %s2557_s8, %s1746_s30  ;;  %p1752_p1 = scmp.lt.s32.totalorder %s2047_s5, %s1746_s30 }
 0x2c5   : > { %p1753_p2 = por %p1752_p1, %p1751_p13 }
 0x2c7   : > { %p1754_p3 = pnand %p1753_p2, %p1747_p12 }
 0x2c9   : > { %1757 = shalt.err (!%p1754_p3)  }
 0x2ca   : > { %595 = dma.hbm_to_vmem [thread:$0]  %s583_s9, 16, %s2557_s8, [#allocation2] }
 0x2cb   : > { %s616_s4 = scalar_lea.vmem %s2017_s27, 35 [#allocation5]  ;;  %s628_s21 = sadd.s32 36, %s2009_s22 }
 0x2cc   : > { %s956_s17 = sshll.u32 %s597_s7, 4  ;;  %s624_s6 = sshll.u32 %s616_s4, 4  ;;  %s2597_s6 = int_to_ptr.vmem [resolvable:$true] %s624_s6 }
 0x2cd   : > { %s599_s24 = scalar_lea.hbm %s2712_s1, %s956_s17 }
 0x2ce   : > { %s1758_s0 = scalar_lea.hbm %s599_s24, 16  ;;  %p1761_p7 = scmp.lt.s32.totalorder %s599_s24, %s2712_s1 }
 0x2cf   : > { %p1759_p5 = scmp.ne.s32.totalorder %s599_s24, %s1758_s0  ;;  %p1762_p8 = scmp.lt.s32.totalorder %s2036_s23, %s1758_s0 }
 0x2d1   : > { %p1763_p9 = por %p1762_p8, %p1761_p7 }
 0x2d3   : > { %p1764_p10 = pnand %p1763_p9, %p1759_p5 }
 0x2d5   : > { %1767 = shalt.err (!%p1764_p10)  }
 0x2d6   : > { %s1768_s8 = scalar_lea.vmem %s2575_s16, 16  ;;  %p1773_p12 = scmp.lt.s32.totalorder %s2575_s16, %s2044_s3 }
 0x2d7   : > { %p1769_p11 = scmp.ne.s32.totalorder %s2575_s16, %s1768_s8  ;;  %p1774_p13 = scmp.lt.s32.totalorder %s2047_s5, %s1768_s8 }
 0x2d9   : > { %p1775_p1 = por %p1774_p13, %p1773_p12 }
 0x2db   : > { %p1776_p2 = pnand %p1775_p1, %p1769_p11 }
 0x2dd   : > { %1779 = shalt.err (!%p1776_p2)  }
 0x2de   : > { %611 = dma.hbm_to_vmem [thread:$0]  %s599_s24, 16, %s2575_s16, [#allocation2] }
 0x2df   : > { %s957_s7 = sshll.u32 %s2580_s10, 4  ;;  %s629_s9 = sld [smem:[#allocation4 + %s628_s21]] }
 0x2e0   : > { %s615_s4 = scalar_lea.hbm %s2712_s1, %s957_s7  ;;  %s632_s17 = scalar_lea.vmem %s2017_s27, 36 [#allocation5] }
 0x2e1   : > { %s1780_s26 = scalar_lea.hbm %s615_s4, 16  ;;  %p1783_p5 = scmp.lt.s32.totalorder %s615_s4, %s2712_s1 }
 0x2e2   : > { %p1781_p3 = scmp.ne.s32.totalorder %s615_s4, %s1780_s26  ;;  %p1784_p7 = scmp.lt.s32.totalorder %s2036_s23, %s1780_s26 }
 0x2e4   : > { %p1785_p8 = por %p1784_p7, %p1783_p5 }
 0x2e6   : > { %p1786_p9 = pnand %p1785_p8, %p1781_p3 }
 0x2e8   : > { %1789 = shalt.err (!%p1786_p9)  }
 0x2e9   : > { %s1790_s16 = scalar_lea.vmem %s2597_s6, 16  ;;  %p1795_p11 = scmp.lt.s32.totalorder %s2597_s6, %s2044_s3 }
 0x2ea   : > { %p1791_p10 = scmp.ne.s32.totalorder %s2597_s6, %s1790_s16  ;;  %p1796_p12 = scmp.lt.s32.totalorder %s2047_s5, %s1790_s16 }
 0x2ec   : > { %p1797_p13 = por %p1796_p12, %p1795_p11 }
 0x2ee   : > { %p1798_p1 = pnand %p1797_p13, %p1791_p10 }
 0x2f0   : > { %1801 = shalt.err (!%p1798_p1)  }
 0x2f1   : > { %627 = dma.hbm_to_vmem [thread:$0]  %s615_s4, 16, %s2597_s6, [#allocation2] }
 0x2f2   : > { %s640_s10 = sshll.u32 %s632_s17, 4  ;;  %s644_s21 = sadd.s32 37, %s2009_s22  ;;  %s641_s10 = int_to_ptr.vmem [resolvable:$true] %s640_s10 }
 0x2f3   : > { %s645_s24 = sld [smem:[#allocation4 + %s644_s21]]  ;;  %s648_s18 = scalar_lea.vmem %s2017_s27, 37 [#allocation5] }
 0x2f4   : > { %s660_s25 = sadd.s32 38, %s2009_s22  ;;  %s958_s8 = sshll.u32 %s629_s9, 4 }
 0x2f5   : > { %s656_s7 = sshll.u32 %s648_s18, 4  ;;  %s631_s26 = scalar_lea.hbm %s2712_s1, %s958_s8  ;;  %s2630_s7 = int_to_ptr.vmem [resolvable:$true] %s656_s7 }
 0x2f6   : > { %s1802_s29 = scalar_lea.hbm %s631_s26, 16  ;;  %p1805_p3 = scmp.lt.s32.totalorder %s631_s26, %s2712_s1 }
 0x2f7   : > { %p1803_p2 = scmp.ne.s32.totalorder %s631_s26, %s1802_s29  ;;  %p1806_p5 = scmp.lt.s32.totalorder %s2036_s23, %s1802_s29 }
 0x2f9   : > { %p1807_p7 = por %p1806_p5, %p1805_p3 }
 0x2fb   : > { %p1808_p8 = pnand %p1807_p7, %p1803_p2 }
 0x2fd   : > { %1811 = shalt.err (!%p1808_p8)  }
 0x2fe   : > { %s1812_s6 = scalar_lea.vmem %s641_s10, 16  ;;  %p1817_p10 = scmp.lt.s32.totalorder %s641_s10, %s2044_s3 }
 0x2ff   : > { %p1813_p9 = scmp.ne.s32.totalorder %s641_s10, %s1812_s6  ;;  %p1818_p11 = scmp.lt.s32.totalorder %s2047_s5, %s1812_s6 }
 0x301   : > { %p1819_p12 = por %p1818_p11, %p1817_p10 }
 0x303   : > { %p1820_p13 = pnand %p1819_p12, %p1813_p9 }
 0x305   : > { %1823 = shalt.err (!%p1820_p13)  }
 0x306   : > { %643 = dma.hbm_to_vmem [thread:$0]  %s631_s26, 16, %s641_s10, [#allocation2] }
 0x307   : > { %s661_s9 = sld [smem:[#allocation4 + %s660_s25]]  ;;  %s664_s4 = scalar_lea.vmem %s2017_s27, 38 [#allocation5] }
 0x308   : > { %s959_s17 = sshll.u32 %s645_s24, 4  ;;  %s672_s11 = sshll.u32 %s664_s4, 4  ;;  %s673_s11 = int_to_ptr.vmem [resolvable:$true] %s672_s11 }
 0x309   : > { %s647_s8 = scalar_lea.hbm %s2712_s1, %s959_s17 }
 0x30a   : > { %s1824_s30 = scalar_lea.hbm %s647_s8, 16  ;;  %p1827_p2 = scmp.lt.s32.totalorder %s647_s8, %s2712_s1 }
 0x30b   : > { %p1825_p1 = scmp.ne.s32.totalorder %s647_s8, %s1824_s30  ;;  %p1828_p3 = scmp.lt.s32.totalorder %s2036_s23, %s1824_s30 }
 0x30d   : > { %p1829_p5 = por %p1828_p3, %p1827_p2 }
 0x30f   : > { %p1830_p7 = pnand %p1829_p5, %p1825_p1 }
 0x311   : > { %1833 = shalt.err (!%p1830_p7)  }
 0x312   : > { %s1834_s10 = scalar_lea.vmem %s2630_s7, 16  ;;  %p1839_p9 = scmp.lt.s32.totalorder %s2630_s7, %s2044_s3 }
 0x313   : > { %p1835_p8 = scmp.ne.s32.totalorder %s2630_s7, %s1834_s10  ;;  %p1840_p10 = scmp.lt.s32.totalorder %s2047_s5, %s1834_s10 }
 0x315   : > { %p1841_p11 = por %p1840_p10, %p1839_p9 }
 0x317   : > { %p1842_p12 = pnand %p1841_p11, %p1835_p8 }
 0x319   : > { %1845 = shalt.err (!%p1842_p12)  }
 0x31a   : > { %659 = dma.hbm_to_vmem [thread:$0]  %s647_s8, 16, %s2630_s7, [#allocation2] }
 0x31b   : > { %s676_s24 = sadd.s32 39, %s2009_s22  ;;  %s680_s25 = scalar_lea.vmem %s2017_s27, 39 [#allocation5] }
 0x31c   : > { %s677_s26 = sld [smem:[#allocation4 + %s676_s24]]  ;;  %s960_s16 = sshll.u32 %s661_s9, 4 }
 0x31d   : > { %s663_s17 = scalar_lea.hbm %s2712_s1, %s960_s16  ;;  %s688_s21 = sshll.u32 %s680_s25, 4  ;;  %s689_s21 = int_to_ptr.vmem [resolvable:$true] %s688_s21 }
 0x31e   : > { %s1846_s18 = scalar_lea.hbm %s663_s17, 16  ;;  %p1849_p1 = scmp.lt.s32.totalorder %s663_s17, %s2712_s1 }
 0x31f   : > { %p1847_p13 = scmp.ne.s32.totalorder %s663_s17, %s1846_s18  ;;  %p1850_p2 = scmp.lt.s32.totalorder %s2036_s23, %s1846_s18 }
 0x321   : > { %p1851_p3 = por %p1850_p2, %p1849_p1 }
 0x323   : > { %p1852_p5 = pnand %p1851_p3, %p1847_p13 }
 0x325   : > { %1855 = shalt.err (!%p1852_p5)  }
 0x326   : > { %s1856_s22 = scalar_lea.vmem %s673_s11, 16  ;;  %p1861_p8 = scmp.lt.s32.totalorder %s673_s11, %s2044_s3 }
 0x327   : > { %p1857_p7 = scmp.ne.s32.totalorder %s673_s11, %s1856_s22  ;;  %p1862_p9 = scmp.lt.s32.totalorder %s2047_s5, %s1856_s22 }
 0x329   : > { %p1863_p10 = por %p1862_p9, %p1861_p8 }
 0x32b   : > { %p1864_p11 = pnand %p1863_p10, %p1857_p7 }
 0x32d   : > { %1867 = shalt.err (!%p1864_p11)  }
 0x32e   : > { %675 = dma.hbm_to_vmem [thread:$0]  %s663_s17, 16, %s673_s11, [#allocation2] }
 0x32f   : > { %s961_s27 = sshll.u32 %s677_s26, 4 }
 0x330   : > { %s679_s8 = scalar_lea.hbm %s2712_s1, %s961_s27 }
 0x331   : > { %s1868_s0 = scalar_lea.hbm %s679_s8, 16  ;;  %p1871_p13 = scmp.lt.s32.totalorder %s679_s8, %s2712_s1 }
 0x332   : > { %p1869_p12 = scmp.ne.s32.totalorder %s679_s8, %s1868_s0  ;;  %p1872_p1 = scmp.lt.s32.totalorder %s2036_s23, %s1868_s0 }
 0x334   : > { %p1873_p2 = por %p1872_p1, %p1871_p13 }
 0x336   : > { %p1874_p3 = pnand %p1873_p2, %p1869_p12 }
 0x338   : > { %1877 = shalt.err (!%p1874_p3)  }
 0x339   : > { %s1878_s25 = scalar_lea.vmem %s689_s21, 16  ;;  %p1883_p7 = scmp.lt.s32.totalorder %s689_s21, %s2044_s3 }
 0x33a   : > { %p1879_p5 = scmp.ne.s32.totalorder %s689_s21, %s1878_s25  ;;  %p1884_p8 = scmp.lt.s32.totalorder %s2047_s5, %s1878_s25 }
 0x33c   : > { %p1885_p9 = por %p1884_p8, %p1883_p7 }
 0x33e   : > { %p1886_p10 = pnand %p1885_p9, %p1879_p5 }
 0x340   : > { %1889 = shalt.err (!%p1886_p10)  }
 0x341   : > { %691 = dma.hbm_to_vmem [thread:$0]  %s679_s8, 16, %s689_s21, [#allocation2] }
 0x342   : > { %1930 = dma.done.wait [#allocation2], 640 }
 0x343   : > { %1931 = vsyncadd [#allocation2], 4294966656  ;;  %s966_s23 = smul.u32 640, %s1946_s14  ;;  %s2718_s6 = sand.u32 1, %s1942_s13  }
 0x344   : > { %s774_s4 = scalar_lea.sflag [#allocation6], %s2718_s6  ;;  %s1890_s17 = scalar_lea.vmem %s2021_s28, 640 }
 0x345   : > { %s786_s16 = scalar_lea.hbm %s2713_s2, %s966_s23  ;;  %p1891_p11 = scmp.ne.s32.totalorder %s2021_s28, %s1890_s17 }
 0x346   : > { %p1898_p1 = scmp.lt.s32.totalorder %s2047_s5, %s1890_s17 }
 0x347   : > { %p1892_p12 = pnand %p1891_p11, %p1998_p4 }
 0x348   : > { %p1899_p2 = por %p1898_p1, %p1025_p0 }
 0x349   : > { %p1893_p13 = pneg %p1892_p12 }
 0x34b   : > { %p1900_p3 = pnand %p1899_p2, %p1893_p13 }
 0x34d   : > { %1903 = shalt.err (!%p1900_p3)
}
 0x34e   : > { %s1904_s21 = scalar_lea.hbm %s786_s16, 640  ;;  %s1908_s29 = scalar_lea.hbm %s2713_s2, 1280 }
 0x34f   : > { %p1905_p5 = scmp.ne.s32.totalorder %s786_s16, %s1904_s21  ;;  %p1909_p9 = scmp.lt.s32.totalorder %s786_s16, %s2713_s2 }
 0x350   : > { %p1910_p10 = scmp.lt.s32.totalorder %s1908_s29, %s1904_s21 }
 0x351   : > { %p1906_p7 = pnand %p1905_p5, %p1998_p4 }
 0x352   : > { %p1911_p11 = por %p1910_p10, %p1909_p9 }
 0x353   : > { %p1907_p8 = pneg %p1906_p7 }
 0x355   : > { %p1912_p12 = pnand %p1911_p11, %p1907_p8 }
 0x357   : > { %1915 = shalt.err (!%p1912_p12)
}
 0x358   : > { %s1950_s3 = smov 128   ;;  %s1951_s5 = smov 8  }
 0x359   : > { %968 = dma.vmem_to_hbm [thread:$0]  (%p1998_p4), %s2021_s28, 640, %s786_s16, %s774_s4, %s1950_s3, %s1950_s3, %s1951_s5  }
 0x35a PF: > { %p974_p0 = scmp.ge.s32.totalorder %s1946_s14, 1  ;;  %s802_s7 = sand.u32 1, %s1938_s12  }
 0x35b   : > { %s803_s9 = scalar_lea.sflag [#allocation6], %s802_s7 }
 0x35c   : > { %p971_p13 = pnand %p974_p0, %p2002_p6 }
 0x35e   : > { %p972_p1 = pneg %p971_p13 }
 0x360   : > { %1933 = dma.done.wait (%p972_p1), %s803_s9, 640  }
 0x361   : > { %1935 = vsyncadd (%p972_p1), %s803_s9, 4294966656  ;;  %s2719_s8 = sld [smem:[#allocation92_spill]]  ;;  %p16_p2 = scmp.ge.s32.totalorder %s1987_s15, 3  }
 0x362   : > { %s2720_s12 = smov %s1942_s13  ;;  %s2722_s14 = smov %s1987_s15 }
 0x363   :  { %18 = sbr.rel (!%p16_p2) target bundleno = 8 (0x8), region = 283 }
 0x367   : > { %s2721_s13 = smov %s2719_s8 }
 0x368   :  { %808 = vsyncpa [#allocation6], 1 }
 0x369   :  { %810 = vsyncpa [#allocation6 + $0x1], 1 }
 0x36a   :  { %811 = vsyncmov [#allocation2] }
 0x36d   :  { %s812_s14 = vpop.sfrf %811 }
 0x36e   :  { %p965_p4 = scmp.ne.s32.totalorder %s812_s14, 0 }
 0x370   :  { %816 = shalt.err (%p965_p4)  }

</bundles_post_ra>
